<compile_context>
chip_gen: v7x
topology: tpu7x:2x2x1
jax: 0.10.0
libtpu: 0.0.40
codegen_flags: <defaults>
</compile_context>

<pallas_src>
import functools

import jax
import jax.numpy as jnp
from jax.experimental import pallas as pl
from jax.experimental.pallas import tpu as pltpu

H = 128        # LSTM hidden size (module spec: hidden_size=128)
FC_PAD = 128   # lane-dense padded width of the final Linear output


# --------------------------------------------------------------------------
# One fused kernel: conv1 -> conv2 -> BiLSTM(2 layers) -> FC
# --------------------------------------------------------------------------
def hybrid_kernel(x_ref, w1_ref, b1_ref, w2_ref, b2_ref,
                  wih_ref, whh_ref, lb_ref, fcw_ref, fcb_ref,
                  o_ref, seq_scr, pre_scr):
    # x_ref  : (B, S, F)          raw input, channels-last
    # w1_ref : (3, F, 128)   b1_ref: (1, 128)
    # w2_ref : (3, 128, 256) b2_ref: (1, 256)
    # wih_ref: (L, 2H, 8H)  [fwd 4H | bwd 4H], gates packed [i,f,o,g]
    # whh_ref: (L, 2, H, 4H) per direction
    # lb_ref : (L, 1, 8H)    combined b_ih + b_hh
    # fcw_ref: (2H, 128) lane-padded, fcb_ref: (1, 128), o_ref: (B, 128)
    # seq_scr: (T, B, 2H) inter-layer activations; pre_scr: (T, B, 8H) X@Wih+b
    B, S, _ = x_ref.shape
    num_layers = wih_ref.shape[0]
    T = seq_scr.shape[0]

    # ---- Conv1d(k=3,p=1) + ReLU + MaxPool(2,2); batch folded into matmul rows
    def conv_relu_pool(x, w_ref_, b_ref_):
        Bb, L, Cin = x.shape
        Cout = w_ref_.shape[2]
        z = jnp.zeros((Bb, 1, Cin), jnp.float32)
        xp = jnp.concatenate([z, x, z], axis=1)          # zero pad=1 (in-kernel)
        rows = Bb * L
        y = (jnp.dot(xp[:, 0:L, :].reshape(rows, Cin), w_ref_[0],
                     preferred_element_type=jnp.float32)
             + jnp.dot(xp[:, 1:L + 1, :].reshape(rows, Cin), w_ref_[1],
                       preferred_element_type=jnp.float32)
             + jnp.dot(xp[:, 2:L + 2, :].reshape(rows, Cin), w_ref_[2],
                       preferred_element_type=jnp.float32)
             + b_ref_[...])
        y = jnp.maximum(y, 0.0)                          # ReLU
        # MaxPool1d(2,2): L even => row pairs never cross a batch boundary
        pooled = jnp.max(y.reshape(rows // 2, 2, Cout), axis=1)
        return pooled.reshape(Bb, L // 2, Cout)

    h = conv_relu_pool(x_ref[...], w1_ref, b1_ref)       # (B, S//2, 128)
    h = conv_relu_pool(h, w2_ref, b2_ref)                # (B, T, 256)

    # time-major reorder (T, B, 2H) via static slices + leading-dim stack
    seq0 = jnp.stack([h[:, t, :] for t in range(T)], axis=0)

    for layer in range(num_layers):                      # layers are serial
        # layer 0 reads the conv output value directly (no seq_scr copy)
        if layer == 0:
            x_flat = seq0.reshape(T * B, 2 * H)
        else:
            x_flat = seq_scr[...].reshape(T * B, 2 * H)
        # hoisted input projection for BOTH directions, whole sequence, bias fused
        pre = jnp.dot(x_flat, wih_ref[layer],
                      preferred_element_type=jnp.float32) + lb_ref[layer]
        pre_scr[...] = pre.reshape(T, B, 8 * H)

        whh_f = whh_ref[layer, 0]                        # hoisted out of the loop
        whh_b = whh_ref[layer, 1]

        def cell(g, c):
            # gates packed [i, f, o, g]: one sigmoid over 3H, one tanh over H
            s = jax.nn.sigmoid(g[:, 0:3 * H])
            i = s[:, 0:H]
            f = s[:, H:2 * H]
            o = s[:, 2 * H:3 * H]
            gg = jnp.tanh(g[:, 3 * H:4 * H])
            c_new = f * c + i * gg
            return o * jnp.tanh(c_new), c_new

        def step(t, carry):
            h_f, c_f, h_b, c_b = carry
            rt = T - 1 - t
            g_f = pre_scr[t, :, 0:4 * H] + jnp.dot(
                h_f, whh_f, preferred_element_type=jnp.float32)
            g_b = pre_scr[rt, :, 4 * H:8 * H] + jnp.dot(
                h_b, whh_b, preferred_element_type=jnp.float32)
            h_f, c_f = cell(g_f, c_f)
            h_b, c_b = cell(g_b, c_b)
            # write directly into the layer-output buffer (no separate outf/outb)
            seq_scr[t, :, 0:H] = h_f
            seq_scr[rt, :, H:2 * H] = h_b
            return (h_f, c_f, h_b, c_b)

        zz = jnp.zeros((B, H), jnp.float32)
        jax.lax.fori_loop(0, T, step, (zz, zz, zz, zz), unroll=True)

    # final Linear on lstm_out[:, -1, :]; lane-dense 128-wide store
    last = seq_scr[T - 1]                                # (B, 2H)
    o_ref[...] = jnp.dot(last, fcw_ref[...],
                         preferred_element_type=jnp.float32) + fcb_ref[...]


def hybrid_forward(x, p, num_classes):
    B, S, _ = x.shape
    assert S % 4 == 0, "two MaxPool1d(2,2) stages require S % 4 == 0"
    T = S // 4
    out = pl.pallas_call(
        hybrid_kernel,
        out_shape=jax.ShapeDtypeStruct((B, FC_PAD), jnp.float32),
        in_specs=[pl.BlockSpec(memory_space=pltpu.MemorySpace.VMEM)] * 10,
        out_specs=pl.BlockSpec(memory_space=pltpu.MemorySpace.VMEM),
        scratch_shapes=[
            pltpu.VMEM((T, B, 2 * H), jnp.float32),   # inter-layer activations
            pltpu.VMEM((T, B, 8 * H), jnp.float32),   # precomputed X@Wih + b
        ],
    )(x, p["conv1_w"], p["conv1_b"], p["conv2_w"], p["conv2_b"],
      p["lstm_wih"], p["lstm_whh"], p["lstm_b"], p["fc_w"], p["fc_b"])
    return out[:, :num_classes]                        # drop lane padding in JAX


# --------------------------------------------------------------------------
# Deterministic synthetic parameters (no checkpoint load).
# NOTE: gate blocks are packed [i, f, o, g] (sigmoid gates contiguous) and the
# LSTM bias is the combined b_ih + b_hh; a real PyTorch checkpoint packs
# [i, f, g, o] with separate biases and must be reordered/summed on import.
# --------------------------------------------------------------------------
def init_params(key, num_keypoints, num_coordinates, num_classes):
    F = num_keypoints * num_coordinates
    ks = jax.random.split(key, 24)

    def nrm(k, shape, scale=0.1):
        return scale * jax.random.normal(k, shape, dtype=jnp.float32)

    p = {
        "conv1_w": nrm(ks[0], (3, F, 128)),   "conv1_b": nrm(ks[1], (1, 128)),
        "conv2_w": nrm(ks[2], (3, 128, 256)), "conv2_b": nrm(ks[3], (1, 256)),
    }
    # lane-dense FC packing: pad (2H, num_classes) -> (2H, 128) with zeros
    fcw = nrm(ks[4], (2 * H, num_classes))
    fcb = nrm(ks[5], (1, num_classes))
    p["fc_w"] = jnp.zeros((2 * H, FC_PAD), jnp.float32).at[:, :num_classes].set(fcw)
    p["fc_b"] = jnp.zeros((1, FC_PAD), jnp.float32).at[:, :num_classes].set(fcb)

    idx = 6
    wih_l, whh_l, b_l = [], [], []
    for _layer in range(2):
        din = 2 * H                                   # 256 for both layers
        wih_f = nrm(ks[idx], (din, 4 * H)); idx += 1
        whh_f = nrm(ks[idx], (H, 4 * H)); idx += 1
        b_f = nrm(ks[idx], (1, 4 * H)); idx += 1      # == b_ih + b_hh
        wih_b = nrm(ks[idx], (din, 4 * H)); idx += 1
        whh_b = nrm(ks[idx], (H, 4 * H)); idx += 1
        b_b = nrm(ks[idx], (1, 4 * H)); idx += 1
        wih_l.append(jnp.concatenate([wih_f, wih_b], axis=1))   # (256, 1024)
        whh_l.append(jnp.stack([whh_f, whh_b], axis=0))         # (2, 128, 512)
        b_l.append(jnp.concatenate([b_f, b_b], axis=1))         # (1, 1024)
    p["lstm_wih"] = jnp.stack(wih_l, axis=0)   # (2, 256, 1024)
    p["lstm_whh"] = jnp.stack(whh_l, axis=0)   # (2, 2, 128, 512)
    p["lstm_b"] = jnp.stack(b_l, axis=0)       # (2, 1, 1024)
    return p


# --------------------------------------------------------------------------
# Pure-JAX reference (same math, no Pallas) for a correctness check
# --------------------------------------------------------------------------
def ref_forward(x, p, num_classes):
    def conv_ref(x, w, b):
        L = x.shape[1]
        xp = jnp.pad(x, ((0, 0), (1, 1), (0, 0)))
        y = (jnp.einsum("blc,cd->bld", xp[:, 0:L], w[0])
             + jnp.einsum("blc,cd->bld", xp[:, 1:L + 1], w[1])
             + jnp.einsum("blc,cd->bld", xp[:, 2:L + 2], w[2]) + b)
        y = jnp.maximum(y, 0.0)
        Bn, Ln, C = y.shape
        return jnp.max(y.reshape(Bn, Ln // 2, 2, C), axis=2)

    def lstm_ref(seq, wih, whh, b):
        Bn = seq.shape[1]

        def step(carry, x_t):
            h, c = carry
            g = x_t @ wih + h @ whh + b
            i = jax.nn.sigmoid(g[:, :H])
            f = jax.nn.sigmoid(g[:, H:2 * H])
            o = jax.nn.sigmoid(g[:, 2 * H:3 * H])
            gg = jnp.tanh(g[:, 3 * H:])
            c = f * c + i * gg
            h = o * jnp.tanh(c)
            return (h, c), h

        init = (jnp.zeros((Bn, H), jnp.float32), jnp.zeros((Bn, H), jnp.float32))
        _, hs = jax.lax.scan(step, init, seq)
        return hs

    h = conv_ref(x, p["conv1_w"], p["conv1_b"])
    h = conv_ref(h, p["conv2_w"], p["conv2_b"])
    seq = jnp.transpose(h, (1, 0, 2))
    for l in range(2):
        wih_f = p["lstm_wih"][l][:, :4 * H]
        wih_b = p["lstm_wih"][l][:, 4 * H:]
        whh_f = p["lstm_whh"][l, 0]
        whh_b = p["lstm_whh"][l, 1]
        b_f = p["lstm_b"][l][:, :4 * H]
        b_b = p["lstm_b"][l][:, 4 * H:]
        f = lstm_ref(seq, wih_f, whh_f, b_f)
        r = lstm_ref(seq[::-1], wih_b, whh_b, b_b)[::-1]
        seq = jnp.concatenate([f, r], axis=-1)
    full = seq[-1] @ p["fc_w"] + p["fc_b"]
    return full[:, :num_classes]


if __name__ == "__main__":
    B, S = 2, 8                       # batch, sequence_length
    NUM_KP, NUM_COORD, NUM_CLASSES = 4, 2, 5
    key = jax.random.PRNGKey(0)
    kx, kp = jax.random.split(key)
    x = jax.random.normal(kx, (B, S, NUM_KP * NUM_COORD), dtype=jnp.float32)
    params = init_params(kp, NUM_KP, NUM_COORD, NUM_CLASSES)

    fwd = jax.jit(functools.partial(hybrid_forward, num_classes=NUM_CLASSES))
    out = jax.block_until_ready(fwd(x, params))

    ref = ref_forward(x, params, NUM_CLASSES)
    assert out.shape == (B, NUM_CLASSES), out.shape
    assert jnp.allclose(out, ref, atol=1e-2, rtol=1e-2), (out, ref)
    print("KERNEL_OK")
</pallas_src>

<mosaic_0001>
module attributes {stable_mosaic.version = 11 : i64} {
  func.func @hybrid_kernel(%arg0: memref<2x8x8xf32, #tpu.memory_space<vmem>>, %arg1: memref<3x8x128xf32, #tpu.memory_space<vmem>>, %arg2: memref<1x128xf32, #tpu.memory_space<vmem>>, %arg3: memref<3x128x256xf32, #tpu.memory_space<vmem>>, %arg4: memref<1x256xf32, #tpu.memory_space<vmem>>, %arg5: memref<2x256x1024xf32, #tpu.memory_space<vmem>>, %arg6: memref<2x2x128x512xf32, #tpu.memory_space<vmem>>, %arg7: memref<2x1x1024xf32, #tpu.memory_space<vmem>>, %arg8: memref<256x128xf32, #tpu.memory_space<vmem>>, %arg9: memref<1x128xf32, #tpu.memory_space<vmem>>, %arg10: memref<2x128xf32, #tpu.memory_space<vmem>>, %arg11: memref<2x2x256xf32, #tpu.memory_space<vmem>>, %arg12: memref<2x2x1024xf32, #tpu.memory_space<vmem>>) attributes {dimension_semantics = [], scalar_prefetch = 0 : i64, scratch_operands = 2 : i64, tpu.core_type = #tpu.core_type<tc>} {
    %c0 = arith.constant 0 : index
    %c0_0 = arith.constant 0 : index
    %c0_1 = arith.constant 0 : index
    %0 = vector.load %arg0[%c0, %c0_0, %c0_1] : memref<2x8x8xf32, #tpu.memory_space<vmem>>, vector<2x8x8xf32>
    %cst = arith.constant 0.000000e+00 : f32
    %1 = vector.broadcast %cst : f32 to vector<2x1x8xf32>
    %2 = tpu.concatenate %1, %0, %1 in 1 : vector<2x1x8xf32>, vector<2x8x8xf32>, vector<2x1x8xf32> -> vector<2x10x8xf32>
    %3 = vector.extract_strided_slice %2 {offsets = [0, 0, 0], sizes = [2, 8, 8], strides = [1, 1, 1]} : vector<2x10x8xf32> to vector<2x8x8xf32>
    %4 = vector.shape_cast %3 : vector<2x8x8xf32> to vector<16x8xf32>
    %c0_2 = arith.constant 0 : index
    %c0_3 = arith.constant 0 : index
    %c0_4 = arith.constant 0 : index
    %5 = vector.load %arg1[%c0_2, %c0_3, %c0_4] : memref<3x8x128xf32, #tpu.memory_space<vmem>>, vector<1x8x128xf32>
    %6 = vector.shape_cast %5 : vector<1x8x128xf32> to vector<8x128xf32>
    %cst_5 = arith.constant dense<0.000000e+00> : vector<16x128xf32>
    %7 = tpu.matmul %4, %6, %cst_5 {dimension_numbers = #tpu.dot_dimension_numbers<[1], [0], [0], [1], [0, 0, 1, 1], [], []>} : vector<16x8xf32>, vector<8x128xf32>, vector<16x128xf32> -> vector<16x128xf32>
    %8 = vector.extract_strided_slice %2 {offsets = [0, 1, 0], sizes = [2, 8, 8], strides = [1, 1, 1]} : vector<2x10x8xf32> to vector<2x8x8xf32>
    %9 = vector.shape_cast %8 : vector<2x8x8xf32> to vector<16x8xf32>
    %c1 = arith.constant 1 : index
    %c0_6 = arith.constant 0 : index
    %c0_7 = arith.constant 0 : index
    %10 = vector.load %arg1[%c1, %c0_6, %c0_7] : memref<3x8x128xf32, #tpu.memory_space<vmem>>, vector<1x8x128xf32>
    %11 = vector.shape_cast %10 : vector<1x8x128xf32> to vector<8x128xf32>
    %cst_8 = arith.constant dense<0.000000e+00> : vector<16x128xf32>
    %12 = tpu.matmul %9, %11, %cst_8 {dimension_numbers = #tpu.dot_dimension_numbers<[1], [0], [0], [1], [0, 0, 1, 1], [], []>} : vector<16x8xf32>, vector<8x128xf32>, vector<16x128xf32> -> vector<16x128xf32>
    %13 = arith.addf %7, %12 : vector<16x128xf32>
    %14 = vector.extract_strided_slice %2 {offsets = [0, 2, 0], sizes = [2, 8, 8], strides = [1, 1, 1]} : vector<2x10x8xf32> to vector<2x8x8xf32>
    %15 = vector.shape_cast %14 : vector<2x8x8xf32> to vector<16x8xf32>
    %c2 = arith.constant 2 : index
    %c0_9 = arith.constant 0 : index
    %c0_10 = arith.constant 0 : index
    %16 = vector.load %arg1[%c2, %c0_9, %c0_10] : memref<3x8x128xf32, #tpu.memory_space<vmem>>, vector<1x8x128xf32>
    %17 = vector.shape_cast %16 : vector<1x8x128xf32> to vector<8x128xf32>
    %cst_11 = arith.constant dense<0.000000e+00> : vector<16x128xf32>
    %18 = tpu.matmul %15, %17, %cst_11 {dimension_numbers = #tpu.dot_dimension_numbers<[1], [0], [0], [1], [0, 0, 1, 1], [], []>} : vector<16x8xf32>, vector<8x128xf32>, vector<16x128xf32> -> vector<16x128xf32>
    %19 = arith.addf %13, %18 : vector<16x128xf32>
    %c0_12 = arith.constant 0 : index
    %c0_13 = arith.constant 0 : index
    %20 = vector.load %arg2[%c0_12, %c0_13] : memref<1x128xf32, #tpu.memory_space<vmem>>, vector<1x128xf32>
    %21 = vector.broadcast %20 : vector<1x128xf32> to vector<16x128xf32>
    %22 = arith.addf %19, %21 : vector<16x128xf32>
    %cst_14 = arith.constant 0.000000e+00 : f32
    %23 = vector.broadcast %cst_14 : f32 to vector<16x128xf32>
    %24 = arith.maximumf %22, %23 : vector<16x128xf32>
    %25 = vector.shape_cast %24 : vector<16x128xf32> to vector<8x2x128xf32>
    %cst_15 = arith.constant dense<0xFF800000> : vector<8x128xf32>
    %26 = vector.multi_reduction <maximumf>, %25, %cst_15 [1] : vector<8x2x128xf32> to vector<8x128xf32>
    %27 = vector.shape_cast %26 : vector<8x128xf32> to vector<2x4x128xf32>
    %cst_16 = arith.constant 0.000000e+00 : f32
    %28 = vector.broadcast %cst_16 : f32 to vector<2x1x128xf32>
    %29 = tpu.concatenate %28, %27, %28 in 1 : vector<2x1x128xf32>, vector<2x4x128xf32>, vector<2x1x128xf32> -> vector<2x6x128xf32>
    %30 = vector.extract_strided_slice %29 {offsets = [0, 0, 0], sizes = [2, 4, 128], strides = [1, 1, 1]} : vector<2x6x128xf32> to vector<2x4x128xf32>
    %31 = vector.shape_cast %30 : vector<2x4x128xf32> to vector<8x128xf32>
    %c0_17 = arith.constant 0 : index
    %c0_18 = arith.constant 0 : index
    %c0_19 = arith.constant 0 : index
    %32 = vector.load %arg3[%c0_17, %c0_18, %c0_19] : memref<3x128x256xf32, #tpu.memory_space<vmem>>, vector<1x128x256xf32>
    %33 = vector.shape_cast %32 : vector<1x128x256xf32> to vector<128x256xf32>
    %cst_20 = arith.constant dense<0.000000e+00> : vector<8x256xf32>
    %34 = tpu.matmul %31, %33, %cst_20 {dimension_numbers = #tpu.dot_dimension_numbers<[1], [0], [0], [1], [0, 0, 1, 1], [], []>} : vector<8x128xf32>, vector<128x256xf32>, vector<8x256xf32> -> vector<8x256xf32>
    %35 = vector.extract_strided_slice %29 {offsets = [0, 1, 0], sizes = [2, 4, 128], strides = [1, 1, 1]} : vector<2x6x128xf32> to vector<2x4x128xf32>
    %36 = vector.shape_cast %35 : vector<2x4x128xf32> to vector<8x128xf32>
    %c1_21 = arith.constant 1 : index
    %c0_22 = arith.constant 0 : index
    %c0_23 = arith.constant 0 : index
    %37 = vector.load %arg3[%c1_21, %c0_22, %c0_23] : memref<3x128x256xf32, #tpu.memory_space<vmem>>, vector<1x128x256xf32>
    %38 = vector.shape_cast %37 : vector<1x128x256xf32> to vector<128x256xf32>
    %cst_24 = arith.constant dense<0.000000e+00> : vector<8x256xf32>
    %39 = tpu.matmul %36, %38, %cst_24 {dimension_numbers = #tpu.dot_dimension_numbers<[1], [0], [0], [1], [0, 0, 1, 1], [], []>} : vector<8x128xf32>, vector<128x256xf32>, vector<8x256xf32> -> vector<8x256xf32>
    %40 = arith.addf %34, %39 : vector<8x256xf32>
    %41 = vector.extract_strided_slice %29 {offsets = [0, 2, 0], sizes = [2, 4, 128], strides = [1, 1, 1]} : vector<2x6x128xf32> to vector<2x4x128xf32>
    %42 = vector.shape_cast %41 : vector<2x4x128xf32> to vector<8x128xf32>
    %c2_25 = arith.constant 2 : index
    %c0_26 = arith.constant 0 : index
    %c0_27 = arith.constant 0 : index
    %43 = vector.load %arg3[%c2_25, %c0_26, %c0_27] : memref<3x128x256xf32, #tpu.memory_space<vmem>>, vector<1x128x256xf32>
    %44 = vector.shape_cast %43 : vector<1x128x256xf32> to vector<128x256xf32>
    %cst_28 = arith.constant dense<0.000000e+00> : vector<8x256xf32>
    %45 = tpu.matmul %42, %44, %cst_28 {dimension_numbers = #tpu.dot_dimension_numbers<[1], [0], [0], [1], [0, 0, 1, 1], [], []>} : vector<8x128xf32>, vector<128x256xf32>, vector<8x256xf32> -> vector<8x256xf32>
    %46 = arith.addf %40, %45 : vector<8x256xf32>
    %c0_29 = arith.constant 0 : index
    %c0_30 = arith.constant 0 : index
    %47 = vector.load %arg4[%c0_29, %c0_30] : memref<1x256xf32, #tpu.memory_space<vmem>>, vector<1x256xf32>
    %48 = vector.broadcast %47 : vector<1x256xf32> to vector<8x256xf32>
    %49 = arith.addf %46, %48 : vector<8x256xf32>
    %cst_31 = arith.constant 0.000000e+00 : f32
    %50 = vector.broadcast %cst_31 : f32 to vector<8x256xf32>
    %51 = arith.maximumf %49, %50 : vector<8x256xf32>
    %52 = vector.shape_cast %51 : vector<8x256xf32> to vector<4x2x256xf32>
    %cst_32 = arith.constant dense<0xFF800000> : vector<4x256xf32>
    %53 = vector.multi_reduction <maximumf>, %52, %cst_32 [1] : vector<4x2x256xf32> to vector<4x256xf32>
    %54 = vector.shape_cast %53 : vector<4x256xf32> to vector<2x2x256xf32>
    %55 = vector.extract_strided_slice %54 {offsets = [0, 0, 0], sizes = [2, 1, 256], strides = [1, 1, 1]} : vector<2x2x256xf32> to vector<2x1x256xf32>
    %56 = vector.shape_cast %55 : vector<2x1x256xf32> to vector<2x256xf32>
    %57 = vector.extract_strided_slice %54 {offsets = [0, 1, 0], sizes = [2, 1, 256], strides = [1, 1, 1]} : vector<2x2x256xf32> to vector<2x1x256xf32>
    %58 = vector.shape_cast %57 : vector<2x1x256xf32> to vector<2x256xf32>
    %59 = vector.shape_cast %56 : vector<2x256xf32> to vector<1x2x256xf32>
    %60 = vector.shape_cast %58 : vector<2x256xf32> to vector<1x2x256xf32>
    %61 = tpu.concatenate %59, %60 in 0 : vector<1x2x256xf32>, vector<1x2x256xf32> -> vector<2x2x256xf32>
    %62 = vector.shape_cast %61 : vector<2x2x256xf32> to vector<4x256xf32>
    %c0_33 = arith.constant 0 : index
    %c0_34 = arith.constant 0 : index
    %c0_35 = arith.constant 0 : index
    %63 = vector.load %arg5[%c0_33, %c0_34, %c0_35] : memref<2x256x1024xf32, #tpu.memory_space<vmem>>, vector<1x256x1024xf32>
    %64 = vector.shape_cast %63 : vector<1x256x1024xf32> to vector<256x1024xf32>
    %cst_36 = arith.constant dense<0.000000e+00> : vector<4x1024xf32>
    %65 = tpu.matmul %62, %64, %cst_36 {dimension_numbers = #tpu.dot_dimension_numbers<[1], [0], [0], [1], [0, 0, 1, 1], [], []>} : vector<4x256xf32>, vector<256x1024xf32>, vector<4x1024xf32> -> vector<4x1024xf32>
    %c0_37 = arith.constant 0 : index
    %c0_38 = arith.constant 0 : index
    %c0_39 = arith.constant 0 : index
    %66 = vector.load %arg7[%c0_37, %c0_38, %c0_39] : memref<2x1x1024xf32, #tpu.memory_space<vmem>>, vector<1x1x1024xf32>
    %67 = vector.shape_cast %66 : vector<1x1x1024xf32> to vector<1x1024xf32>
    %68 = vector.broadcast %67 : vector<1x1024xf32> to vector<4x1024xf32>
    %69 = arith.addf %65, %68 : vector<4x1024xf32>
    %70 = vector.shape_cast %69 : vector<4x1024xf32> to vector<2x2x1024xf32>
    %c0_40 = arith.constant 0 : index
    %c0_41 = arith.constant 0 : index
    %c0_42 = arith.constant 0 : index
    %71 = vector.load %arg12[%c0_40, %c0_41, %c0_42] : memref<2x2x1024xf32, #tpu.memory_space<vmem>>, vector<2x2x1024xf32>
    tpu.vector_store %arg12[%c0_40, %c0_41, %c0_42], %70 {strides = array<i32>} : memref<2x2x1024xf32, #tpu.memory_space<vmem>>, vector<2x2x1024xf32>,
    %c0_43 = arith.constant 0 : index
    %c0_44 = arith.constant 0 : index
    %c0_45 = arith.constant 0 : index
    %c0_46 = arith.constant 0 : index
    %72 = vector.load %arg6[%c0_43, %c0_44, %c0_45, %c0_46] : memref<2x2x128x512xf32, #tpu.memory_space<vmem>>, vector<1x1x128x512xf32>
    %73 = vector.shape_cast %72 : vector<1x1x128x512xf32> to vector<128x512xf32>
    %c0_47 = arith.constant 0 : index
    %c1_48 = arith.constant 1 : index
    %c0_49 = arith.constant 0 : index
    %c0_50 = arith.constant 0 : index
    %74 = vector.load %arg6[%c0_47, %c1_48, %c0_49, %c0_50] : memref<2x2x128x512xf32, #tpu.memory_space<vmem>>, vector<1x1x128x512xf32>
    %75 = vector.shape_cast %74 : vector<1x1x128x512xf32> to vector<128x512xf32>
    %cst_51 = arith.constant 0.000000e+00 : f32
    %76 = vector.broadcast %cst_51 : f32 to vector<2x128xf32>
    %c0_i32 = arith.constant 0 : i32
    %c1_i32 = arith.constant 1 : i32
    %77 = arith.subi %c1_i32, %c0_i32 : i32
    %78 = arith.index_cast %c0_i32 : i32 to index
    %c0_52 = arith.constant 0 : index
    %c0_53 = arith.constant 0 : index
    %79 = vector.load %arg12[%78, %c0_52, %c0_53] : memref<2x2x1024xf32, #tpu.memory_space<vmem>>, vector<1x2x512xf32>
    %80 = vector.shape_cast %79 : vector<1x2x512xf32> to vector<2x512xf32>
    %cst_54 = arith.constant dense<0.000000e+00> : vector<2x512xf32>
    %81 = tpu.matmul %76, %73, %cst_54 {dimension_numbers = #tpu.dot_dimension_numbers<[1], [0], [0], [1], [0, 0, 1, 1], [], []>} : vector<2x128xf32>, vector<128x512xf32>, vector<2x512xf32> -> vector<2x512xf32>
    %82 = arith.addf %80, %81 : vector<2x512xf32>
    %83 = arith.index_cast %77 : i32 to index
    %c0_55 = arith.constant 0 : index
    %c512 = arith.constant 512 : index
    %84 = vector.load %arg12[%83, %c0_55, %c512] : memref<2x2x1024xf32, #tpu.memory_space<vmem>>, vector<1x2x512xf32>
    %85 = vector.shape_cast %84 : vector<1x2x512xf32> to vector<2x512xf32>
    %cst_56 = arith.constant dense<0.000000e+00> : vector<2x512xf32>
    %86 = tpu.matmul %76, %75, %cst_56 {dimension_numbers = #tpu.dot_dimension_numbers<[1], [0], [0], [1], [0, 0, 1, 1], [], []>} : vector<2x128xf32>, vector<128x512xf32>, vector<2x512xf32> -> vector<2x512xf32>
    %87 = arith.addf %85, %86 : vector<2x512xf32>
    %88 = vector.extract_strided_slice %82 {offsets = [0, 0], sizes = [2, 384], strides = [1, 1]} : vector<2x512xf32> to vector<2x384xf32>
    %89 = arith.negf %88 : vector<2x384xf32>
    %90 = math.exp %89 : vector<2x384xf32>
    %cst_57 = arith.constant 1.000000e+00 : f32
    %91 = vector.broadcast %cst_57 : f32 to vector<2x384xf32>
    %92 = arith.addf %91, %90 : vector<2x384xf32>
    %93 = arith.divf %91, %92 : vector<2x384xf32>
    %94 = vector.extract_strided_slice %93 {offsets = [0, 0], sizes = [2, 128], strides = [1, 1]} : vector<2x384xf32> to vector<2x128xf32>
    %95 = vector.extract_strided_slice %93 {offsets = [0, 128], sizes = [2, 128], strides = [1, 1]} : vector<2x384xf32> to vector<2x128xf32>
    %96 = vector.extract_strided_slice %93 {offsets = [0, 256], sizes = [2, 128], strides = [1, 1]} : vector<2x384xf32> to vector<2x128xf32>
    %97 = vector.extract_strided_slice %82 {offsets = [0, 384], sizes = [2, 128], strides = [1, 1]} : vector<2x512xf32> to vector<2x128xf32>
    %98 = math.tanh %97 : vector<2x128xf32>
    %99 = arith.mulf %95, %76 : vector<2x128xf32>
    %100 = arith.mulf %94, %98 : vector<2x128xf32>
    %101 = arith.addf %99, %100 : vector<2x128xf32>
    %102 = math.tanh %101 : vector<2x128xf32>
    %103 = arith.mulf %96, %102 : vector<2x128xf32>
    %104 = vector.extract_strided_slice %87 {offsets = [0, 0], sizes = [2, 384], strides = [1, 1]} : vector<2x512xf32> to vector<2x384xf32>
    %105 = arith.negf %104 : vector<2x384xf32>
    %106 = math.exp %105 : vector<2x384xf32>
    %cst_58 = arith.constant 1.000000e+00 : f32
    %107 = vector.broadcast %cst_58 : f32 to vector<2x384xf32>
    %108 = arith.addf %107, %106 : vector<2x384xf32>
    %109 = arith.divf %107, %108 : vector<2x384xf32>
    %110 = vector.extract_strided_slice %109 {offsets = [0, 0], sizes = [2, 128], strides = [1, 1]} : vector<2x384xf32> to vector<2x128xf32>
    %111 = vector.extract_strided_slice %109 {offsets = [0, 128], sizes = [2, 128], strides = [1, 1]} : vector<2x384xf32> to vector<2x128xf32>
    %112 = vector.extract_strided_slice %109 {offsets = [0, 256], sizes = [2, 128], strides = [1, 1]} : vector<2x384xf32> to vector<2x128xf32>
    %113 = vector.extract_strided_slice %87 {offsets = [0, 384], sizes = [2, 128], strides = [1, 1]} : vector<2x512xf32> to vector<2x128xf32>
    %114 = math.tanh %113 : vector<2x128xf32>
    %115 = arith.mulf %111, %76 : vector<2x128xf32>
    %116 = arith.mulf %110, %114 : vector<2x128xf32>
    %117 = arith.addf %115, %116 : vector<2x128xf32>
    %118 = math.tanh %117 : vector<2x128xf32>
    %119 = arith.mulf %112, %118 : vector<2x128xf32>
    %120 = arith.index_cast %c0_i32 : i32 to index
    %c0_59 = arith.constant 0 : index
    %c0_60 = arith.constant 0 : index
    %121 = vector.load %arg11[%120, %c0_59, %c0_60] : memref<2x2x256xf32, #tpu.memory_space<vmem>>, vector<1x2x128xf32>
    %122 = vector.shape_cast %121 : vector<1x2x128xf32> to vector<2x128xf32>
    %123 = vector.shape_cast %103 : vector<2x128xf32> to vector<1x2x128xf32>
    tpu.vector_store %arg11[%120, %c0_59, %c0_60], %123 {strides = array<i32>} : memref<2x2x256xf32, #tpu.memory_space<vmem>>, vector<1x2x128xf32>,
    %124 = arith.index_cast %77 : i32 to index
    %c0_61 = arith.constant 0 : index
    %c128 = arith.constant 128 : index
    %125 = vector.load %arg11[%124, %c0_61, %c128] : memref<2x2x256xf32, #tpu.memory_space<vmem>>, vector<1x2x128xf32>
    %126 = vector.shape_cast %125 : vector<1x2x128xf32> to vector<2x128xf32>
    %127 = vector.shape_cast %119 : vector<2x128xf32> to vector<1x2x128xf32>
    tpu.vector_store %arg11[%124, %c0_61, %c128], %127 {strides = array<i32>} : memref<2x2x256xf32, #tpu.memory_space<vmem>>, vector<1x2x128xf32>,
    %c1_i32_62 = arith.constant 1 : i32
    %c1_i32_63 = arith.constant 1 : i32
    %128 = arith.subi %c1_i32_63, %c1_i32_62 : i32
    %129 = arith.index_cast %c1_i32_62 : i32 to index
    %c0_64 = arith.constant 0 : index
    %c0_65 = arith.constant 0 : index
    %130 = vector.load %arg12[%129, %c0_64, %c0_65] : memref<2x2x1024xf32, #tpu.memory_space<vmem>>, vector<1x2x512xf32>
    %131 = vector.shape_cast %130 : vector<1x2x512xf32> to vector<2x512xf32>
    %cst_66 = arith.constant dense<0.000000e+00> : vector<2x512xf32>
    %132 = tpu.matmul %103, %73, %cst_66 {dimension_numbers = #tpu.dot_dimension_numbers<[1], [0], [0], [1], [0, 0, 1, 1], [], []>} : vector<2x128xf32>, vector<128x512xf32>, vector<2x512xf32> -> vector<2x512xf32>
    %133 = arith.addf %131, %132 : vector<2x512xf32>
    %134 = arith.index_cast %128 : i32 to index
    %c0_67 = arith.constant 0 : index
    %c512_68 = arith.constant 512 : index
    %135 = vector.load %arg12[%134, %c0_67, %c512_68] : memref<2x2x1024xf32, #tpu.memory_space<vmem>>, vector<1x2x512xf32>
    %136 = vector.shape_cast %135 : vector<1x2x512xf32> to vector<2x512xf32>
    %cst_69 = arith.constant dense<0.000000e+00> : vector<2x512xf32>
    %137 = tpu.matmul %119, %75, %cst_69 {dimension_numbers = #tpu.dot_dimension_numbers<[1], [0], [0], [1], [0, 0, 1, 1], [], []>} : vector<2x128xf32>, vector<128x512xf32>, vector<2x512xf32> -> vector<2x512xf32>
    %138 = arith.addf %136, %137 : vector<2x512xf32>
    %139 = vector.extract_strided_slice %133 {offsets = [0, 0], sizes = [2, 384], strides = [1, 1]} : vector<2x512xf32> to vector<2x384xf32>
    %140 = arith.negf %139 : vector<2x384xf32>
    %141 = math.exp %140 : vector<2x384xf32>
    %cst_70 = arith.constant 1.000000e+00 : f32
    %142 = vector.broadcast %cst_70 : f32 to vector<2x384xf32>
    %143 = arith.addf %142, %141 : vector<2x384xf32>
    %144 = arith.divf %142, %143 : vector<2x384xf32>
    %145 = vector.extract_strided_slice %144 {offsets = [0, 0], sizes = [2, 128], strides = [1, 1]} : vector<2x384xf32> to vector<2x128xf32>
    %146 = vector.extract_strided_slice %144 {offsets = [0, 128], sizes = [2, 128], strides = [1, 1]} : vector<2x384xf32> to vector<2x128xf32>
    %147 = vector.extract_strided_slice %144 {offsets = [0, 256], sizes = [2, 128], strides = [1, 1]} : vector<2x384xf32> to vector<2x128xf32>
    %148 = vector.extract_strided_slice %133 {offsets = [0, 384], sizes = [2, 128], strides = [1, 1]} : vector<2x512xf32> to vector<2x128xf32>
    %149 = math.tanh %148 : vector<2x128xf32>
    %150 = arith.mulf %146, %101 : vector<2x128xf32>
    %151 = arith.mulf %145, %149 : vector<2x128xf32>
    %152 = arith.addf %150, %151 : vector<2x128xf32>
    %153 = math.tanh %152 : vector<2x128xf32>
    %154 = arith.mulf %147, %153 : vector<2x128xf32>
    %155 = vector.extract_strided_slice %138 {offsets = [0, 0], sizes = [2, 384], strides = [1, 1]} : vector<2x512xf32> to vector<2x384xf32>
    %156 = arith.negf %155 : vector<2x384xf32>
    %157 = math.exp %156 : vector<2x384xf32>
    %cst_71 = arith.constant 1.000000e+00 : f32
    %158 = vector.broadcast %cst_71 : f32 to vector<2x384xf32>
    %159 = arith.addf %158, %157 : vector<2x384xf32>
    %160 = arith.divf %158, %159 : vector<2x384xf32>
    %161 = vector.extract_strided_slice %160 {offsets = [0, 0], sizes = [2, 128], strides = [1, 1]} : vector<2x384xf32> to vector<2x128xf32>
    %162 = vector.extract_strided_slice %160 {offsets = [0, 128], sizes = [2, 128], strides = [1, 1]} : vector<2x384xf32> to vector<2x128xf32>
    %163 = vector.extract_strided_slice %160 {offsets = [0, 256], sizes = [2, 128], strides = [1, 1]} : vector<2x384xf32> to vector<2x128xf32>
    %164 = vector.extract_strided_slice %138 {offsets = [0, 384], sizes = [2, 128], strides = [1, 1]} : vector<2x512xf32> to vector<2x128xf32>
    %165 = math.tanh %164 : vector<2x128xf32>
    %166 = arith.mulf %162, %117 : vector<2x128xf32>
    %167 = arith.mulf %161, %165 : vector<2x128xf32>
    %168 = arith.addf %166, %167 : vector<2x128xf32>
    %169 = math.tanh %168 : vector<2x128xf32>
    %170 = arith.mulf %163, %169 : vector<2x128xf32>
    %171 = arith.index_cast %c1_i32_62 : i32 to index
    %c0_72 = arith.constant 0 : index
    %c0_73 = arith.constant 0 : index
    %172 = vector.load %arg11[%171, %c0_72, %c0_73] : memref<2x2x256xf32, #tpu.memory_space<vmem>>, vector<1x2x128xf32>
    %173 = vector.shape_cast %172 : vector<1x2x128xf32> to vector<2x128xf32>
    %174 = vector.shape_cast %154 : vector<2x128xf32> to vector<1x2x128xf32>
    tpu.vector_store %arg11[%171, %c0_72, %c0_73], %174 {strides = array<i32>} : memref<2x2x256xf32, #tpu.memory_space<vmem>>, vector<1x2x128xf32>,
    %175 = arith.index_cast %128 : i32 to index
    %c0_74 = arith.constant 0 : index
    %c128_75 = arith.constant 128 : index
    %176 = vector.load %arg11[%175, %c0_74, %c128_75] : memref<2x2x256xf32, #tpu.memory_space<vmem>>, vector<1x2x128xf32>
    %177 = vector.shape_cast %176 : vector<1x2x128xf32> to vector<2x128xf32>
    %178 = vector.shape_cast %170 : vector<2x128xf32> to vector<1x2x128xf32>
    tpu.vector_store %arg11[%175, %c0_74, %c128_75], %178 {strides = array<i32>} : memref<2x2x256xf32, #tpu.memory_space<vmem>>, vector<1x2x128xf32>,
    %c2_i32 = arith.constant 2 : i32
    %c0_76 = arith.constant 0 : index
    %c0_77 = arith.constant 0 : index
    %c0_78 = arith.constant 0 : index
    %179 = vector.load %arg11[%c0_76, %c0_77, %c0_78] : memref<2x2x256xf32, #tpu.memory_space<vmem>>, vector<2x2x256xf32>
    %180 = vector.shape_cast %179 : vector<2x2x256xf32> to vector<4x256xf32>
    %c1_79 = arith.constant 1 : index
    %c0_80 = arith.constant 0 : index
    %c0_81 = arith.constant 0 : index
    %181 = vector.load %arg5[%c1_79, %c0_80, %c0_81] : memref<2x256x1024xf32, #tpu.memory_space<vmem>>, vector<1x256x1024xf32>
    %182 = vector.shape_cast %181 : vector<1x256x1024xf32> to vector<256x1024xf32>
    %cst_82 = arith.constant dense<0.000000e+00> : vector<4x1024xf32>
    %183 = tpu.matmul %180, %182, %cst_82 {dimension_numbers = #tpu.dot_dimension_numbers<[1], [0], [0], [1], [0, 0, 1, 1], [], []>} : vector<4x256xf32>, vector<256x1024xf32>, vector<4x1024xf32> -> vector<4x1024xf32>
    %c1_83 = arith.constant 1 : index
    %c0_84 = arith.constant 0 : index
    %c0_85 = arith.constant 0 : index
    %184 = vector.load %arg7[%c1_83, %c0_84, %c0_85] : memref<2x1x1024xf32, #tpu.memory_space<vmem>>, vector<1x1x1024xf32>
    %185 = vector.shape_cast %184 : vector<1x1x1024xf32> to vector<1x1024xf32>
    %186 = vector.broadcast %185 : vector<1x1024xf32> to vector<4x1024xf32>
    %187 = arith.addf %183, %186 : vector<4x1024xf32>
    %188 = vector.shape_cast %187 : vector<4x1024xf32> to vector<2x2x1024xf32>
    %c0_86 = arith.constant 0 : index
    %c0_87 = arith.constant 0 : index
    %c0_88 = arith.constant 0 : index
    %189 = vector.load %arg12[%c0_86, %c0_87, %c0_88] : memref<2x2x1024xf32, #tpu.memory_space<vmem>>, vector<2x2x1024xf32>
    tpu.vector_store %arg12[%c0_86, %c0_87, %c0_88], %188 {strides = array<i32>} : memref<2x2x1024xf32, #tpu.memory_space<vmem>>, vector<2x2x1024xf32>,
    %c1_89 = arith.constant 1 : index
    %c0_90 = arith.constant 0 : index
    %c0_91 = arith.constant 0 : index
    %c0_92 = arith.constant 0 : index
    %190 = vector.load %arg6[%c1_89, %c0_90, %c0_91, %c0_92] : memref<2x2x128x512xf32, #tpu.memory_space<vmem>>, vector<1x1x128x512xf32>
    %191 = vector.shape_cast %190 : vector<1x1x128x512xf32> to vector<128x512xf32>
    %c1_93 = arith.constant 1 : index
    %c1_94 = arith.constant 1 : index
    %c0_95 = arith.constant 0 : index
    %c0_96 = arith.constant 0 : index
    %192 = vector.load %arg6[%c1_93, %c1_94, %c0_95, %c0_96] : memref<2x2x128x512xf32, #tpu.memory_space<vmem>>, vector<1x1x128x512xf32>
    %193 = vector.shape_cast %192 : vector<1x1x128x512xf32> to vector<128x512xf32>
    %cst_97 = arith.constant 0.000000e+00 : f32
    %194 = vector.broadcast %cst_97 : f32 to vector<2x128xf32>
    %c0_i32_98 = arith.constant 0 : i32
    %c1_i32_99 = arith.constant 1 : i32
    %195 = arith.subi %c1_i32_99, %c0_i32_98 : i32
    %196 = arith.index_cast %c0_i32_98 : i32 to index
    %c0_100 = arith.constant 0 : index
    %c0_101 = arith.constant 0 : index
    %197 = vector.load %arg12[%196, %c0_100, %c0_101] : memref<2x2x1024xf32, #tpu.memory_space<vmem>>, vector<1x2x512xf32>
    %198 = vector.shape_cast %197 : vector<1x2x512xf32> to vector<2x512xf32>
    %cst_102 = arith.constant dense<0.000000e+00> : vector<2x512xf32>
    %199 = tpu.matmul %194, %191, %cst_102 {dimension_numbers = #tpu.dot_dimension_numbers<[1], [0], [0], [1], [0, 0, 1, 1], [], []>} : vector<2x128xf32>, vector<128x512xf32>, vector<2x512xf32> -> vector<2x512xf32>
    %200 = arith.addf %198, %199 : vector<2x512xf32>
    %201 = arith.index_cast %195 : i32 to index
    %c0_103 = arith.constant 0 : index
    %c512_104 = arith.constant 512 : index
    %202 = vector.load %arg12[%201, %c0_103, %c512_104] : memref<2x2x1024xf32, #tpu.memory_space<vmem>>, vector<1x2x512xf32>
    %203 = vector.shape_cast %202 : vector<1x2x512xf32> to vector<2x512xf32>
    %cst_105 = arith.constant dense<0.000000e+00> : vector<2x512xf32>
    %204 = tpu.matmul %194, %193, %cst_105 {dimension_numbers = #tpu.dot_dimension_numbers<[1], [0], [0], [1], [0, 0, 1, 1], [], []>} : vector<2x128xf32>, vector<128x512xf32>, vector<2x512xf32> -> vector<2x512xf32>
    %205 = arith.addf %203, %204 : vector<2x512xf32>
    %206 = vector.extract_strided_slice %200 {offsets = [0, 0], sizes = [2, 384], strides = [1, 1]} : vector<2x512xf32> to vector<2x384xf32>
    %207 = arith.negf %206 : vector<2x384xf32>
    %208 = math.exp %207 : vector<2x384xf32>
    %cst_106 = arith.constant 1.000000e+00 : f32
    %209 = vector.broadcast %cst_106 : f32 to vector<2x384xf32>
    %210 = arith.addf %209, %208 : vector<2x384xf32>
    %211 = arith.divf %209, %210 : vector<2x384xf32>
    %212 = vector.extract_strided_slice %211 {offsets = [0, 0], sizes = [2, 128], strides = [1, 1]} : vector<2x384xf32> to vector<2x128xf32>
    %213 = vector.extract_strided_slice %211 {offsets = [0, 128], sizes = [2, 128], strides = [1, 1]} : vector<2x384xf32> to vector<2x128xf32>
    %214 = vector.extract_strided_slice %211 {offsets = [0, 256], sizes = [2, 128], strides = [1, 1]} : vector<2x384xf32> to vector<2x128xf32>
    %215 = vector.extract_strided_slice %200 {offsets = [0, 384], sizes = [2, 128], strides = [1, 1]} : vector<2x512xf32> to vector<2x128xf32>
    %216 = math.tanh %215 : vector<2x128xf32>
    %217 = arith.mulf %213, %194 : vector<2x128xf32>
    %218 = arith.mulf %212, %216 : vector<2x128xf32>
    %219 = arith.addf %217, %218 : vector<2x128xf32>
    %220 = math.tanh %219 : vector<2x128xf32>
    %221 = arith.mulf %214, %220 : vector<2x128xf32>
    %222 = vector.extract_strided_slice %205 {offsets = [0, 0], sizes = [2, 384], strides = [1, 1]} : vector<2x512xf32> to vector<2x384xf32>
    %223 = arith.negf %222 : vector<2x384xf32>
    %224 = math.exp %223 : vector<2x384xf32>
    %cst_107 = arith.constant 1.000000e+00 : f32
    %225 = vector.broadcast %cst_107 : f32 to vector<2x384xf32>
    %226 = arith.addf %225, %224 : vector<2x384xf32>
    %227 = arith.divf %225, %226 : vector<2x384xf32>
    %228 = vector.extract_strided_slice %227 {offsets = [0, 0], sizes = [2, 128], strides = [1, 1]} : vector<2x384xf32> to vector<2x128xf32>
    %229 = vector.extract_strided_slice %227 {offsets = [0, 128], sizes = [2, 128], strides = [1, 1]} : vector<2x384xf32> to vector<2x128xf32>
    %230 = vector.extract_strided_slice %227 {offsets = [0, 256], sizes = [2, 128], strides = [1, 1]} : vector<2x384xf32> to vector<2x128xf32>
    %231 = vector.extract_strided_slice %205 {offsets = [0, 384], sizes = [2, 128], strides = [1, 1]} : vector<2x512xf32> to vector<2x128xf32>
    %232 = math.tanh %231 : vector<2x128xf32>
    %233 = arith.mulf %229, %194 : vector<2x128xf32>
    %234 = arith.mulf %228, %232 : vector<2x128xf32>
    %235 = arith.addf %233, %234 : vector<2x128xf32>
    %236 = math.tanh %235 : vector<2x128xf32>
    %237 = arith.mulf %230, %236 : vector<2x128xf32>
    %238 = arith.index_cast %c0_i32_98 : i32 to index
    %c0_108 = arith.constant 0 : index
    %c0_109 = arith.constant 0 : index
    %239 = vector.load %arg11[%238, %c0_108, %c0_109] : memref<2x2x256xf32, #tpu.memory_space<vmem>>, vector<1x2x128xf32>
    %240 = vector.shape_cast %239 : vector<1x2x128xf32> to vector<2x128xf32>
    %241 = vector.shape_cast %221 : vector<2x128xf32> to vector<1x2x128xf32>
    tpu.vector_store %arg11[%238, %c0_108, %c0_109], %241 {strides = array<i32>} : memref<2x2x256xf32, #tpu.memory_space<vmem>>, vector<1x2x128xf32>,
    %242 = arith.index_cast %195 : i32 to index
    %c0_110 = arith.constant 0 : index
    %c128_111 = arith.constant 128 : index
    %243 = vector.load %arg11[%242, %c0_110, %c128_111] : memref<2x2x256xf32, #tpu.memory_space<vmem>>, vector<1x2x128xf32>
    %244 = vector.shape_cast %243 : vector<1x2x128xf32> to vector<2x128xf32>
    %245 = vector.shape_cast %237 : vector<2x128xf32> to vector<1x2x128xf32>
    tpu.vector_store %arg11[%242, %c0_110, %c128_111], %245 {strides = array<i32>} : memref<2x2x256xf32, #tpu.memory_space<vmem>>, vector<1x2x128xf32>,
    %c1_i32_112 = arith.constant 1 : i32
    %c1_i32_113 = arith.constant 1 : i32
    %246 = arith.subi %c1_i32_113, %c1_i32_112 : i32
    %247 = arith.index_cast %c1_i32_112 : i32 to index
    %c0_114 = arith.constant 0 : index
    %c0_115 = arith.constant 0 : index
    %248 = vector.load %arg12[%247, %c0_114, %c0_115] : memref<2x2x1024xf32, #tpu.memory_space<vmem>>, vector<1x2x512xf32>
    %249 = vector.shape_cast %248 : vector<1x2x512xf32> to vector<2x512xf32>
    %cst_116 = arith.constant dense<0.000000e+00> : vector<2x512xf32>
    %250 = tpu.matmul %221, %191, %cst_116 {dimension_numbers = #tpu.dot_dimension_numbers<[1], [0], [0], [1], [0, 0, 1, 1], [], []>} : vector<2x128xf32>, vector<128x512xf32>, vector<2x512xf32> -> vector<2x512xf32>
    %251 = arith.addf %249, %250 : vector<2x512xf32>
    %252 = arith.index_cast %246 : i32 to index
    %c0_117 = arith.constant 0 : index
    %c512_118 = arith.constant 512 : index
    %253 = vector.load %arg12[%252, %c0_117, %c512_118] : memref<2x2x1024xf32, #tpu.memory_space<vmem>>, vector<1x2x512xf32>
    %254 = vector.shape_cast %253 : vector<1x2x512xf32> to vector<2x512xf32>
    %cst_119 = arith.constant dense<0.000000e+00> : vector<2x512xf32>
    %255 = tpu.matmul %237, %193, %cst_119 {dimension_numbers = #tpu.dot_dimension_numbers<[1], [0], [0], [1], [0, 0, 1, 1], [], []>} : vector<2x128xf32>, vector<128x512xf32>, vector<2x512xf32> -> vector<2x512xf32>
    %256 = arith.addf %254, %255 : vector<2x512xf32>
    %257 = vector.extract_strided_slice %251 {offsets = [0, 0], sizes = [2, 384], strides = [1, 1]} : vector<2x512xf32> to vector<2x384xf32>
    %258 = arith.negf %257 : vector<2x384xf32>
    %259 = math.exp %258 : vector<2x384xf32>
    %cst_120 = arith.constant 1.000000e+00 : f32
    %260 = vector.broadcast %cst_120 : f32 to vector<2x384xf32>
    %261 = arith.addf %260, %259 : vector<2x384xf32>
    %262 = arith.divf %260, %261 : vector<2x384xf32>
    %263 = vector.extract_strided_slice %262 {offsets = [0, 0], sizes = [2, 128], strides = [1, 1]} : vector<2x384xf32> to vector<2x128xf32>
    %264 = vector.extract_strided_slice %262 {offsets = [0, 128], sizes = [2, 128], strides = [1, 1]} : vector<2x384xf32> to vector<2x128xf32>
    %265 = vector.extract_strided_slice %262 {offsets = [0, 256], sizes = [2, 128], strides = [1, 1]} : vector<2x384xf32> to vector<2x128xf32>
    %266 = vector.extract_strided_slice %251 {offsets = [0, 384], sizes = [2, 128], strides = [1, 1]} : vector<2x512xf32> to vector<2x128xf32>
    %267 = math.tanh %266 : vector<2x128xf32>
    %268 = arith.mulf %264, %219 : vector<2x128xf32>
    %269 = arith.mulf %263, %267 : vector<2x128xf32>
    %270 = arith.addf %268, %269 : vector<2x128xf32>
    %271 = math.tanh %270 : vector<2x128xf32>
    %272 = arith.mulf %265, %271 : vector<2x128xf32>
    %273 = vector.extract_strided_slice %256 {offsets = [0, 0], sizes = [2, 384], strides = [1, 1]} : vector<2x512xf32> to vector<2x384xf32>
    %274 = arith.negf %273 : vector<2x384xf32>
    %275 = math.exp %274 : vector<2x384xf32>
    %cst_121 = arith.constant 1.000000e+00 : f32
    %276 = vector.broadcast %cst_121 : f32 to vector<2x384xf32>
    %277 = arith.addf %276, %275 : vector<2x384xf32>
    %278 = arith.divf %276, %277 : vector<2x384xf32>
    %279 = vector.extract_strided_slice %278 {offsets = [0, 0], sizes = [2, 128], strides = [1, 1]} : vector<2x384xf32> to vector<2x128xf32>
    %280 = vector.extract_strided_slice %278 {offsets = [0, 128], sizes = [2, 128], strides = [1, 1]} : vector<2x384xf32> to vector<2x128xf32>
    %281 = vector.extract_strided_slice %278 {offsets = [0, 256], sizes = [2, 128], strides = [1, 1]} : vector<2x384xf32> to vector<2x128xf32>
    %282 = vector.extract_strided_slice %256 {offsets = [0, 384], sizes = [2, 128], strides = [1, 1]} : vector<2x512xf32> to vector<2x128xf32>
    %283 = math.tanh %282 : vector<2x128xf32>
    %284 = arith.mulf %280, %235 : vector<2x128xf32>
    %285 = arith.mulf %279, %283 : vector<2x128xf32>
    %286 = arith.addf %284, %285 : vector<2x128xf32>
    %287 = math.tanh %286 : vector<2x128xf32>
    %288 = arith.mulf %281, %287 : vector<2x128xf32>
    %289 = arith.index_cast %c1_i32_112 : i32 to index
    %c0_122 = arith.constant 0 : index
    %c0_123 = arith.constant 0 : index
    %290 = vector.load %arg11[%289, %c0_122, %c0_123] : memref<2x2x256xf32, #tpu.memory_space<vmem>>, vector<1x2x128xf32>
    %291 = vector.shape_cast %290 : vector<1x2x128xf32> to vector<2x128xf32>
    %292 = vector.shape_cast %272 : vector<2x128xf32> to vector<1x2x128xf32>
    tpu.vector_store %arg11[%289, %c0_122, %c0_123], %292 {strides = array<i32>} : memref<2x2x256xf32, #tpu.memory_space<vmem>>, vector<1x2x128xf32>,
    %293 = arith.index_cast %246 : i32 to index
    %c0_124 = arith.constant 0 : index
    %c128_125 = arith.constant 128 : index
    %294 = vector.load %arg11[%293, %c0_124, %c128_125] : memref<2x2x256xf32, #tpu.memory_space<vmem>>, vector<1x2x128xf32>
    %295 = vector.shape_cast %294 : vector<1x2x128xf32> to vector<2x128xf32>
    %296 = vector.shape_cast %288 : vector<2x128xf32> to vector<1x2x128xf32>
    tpu.vector_store %arg11[%293, %c0_124, %c128_125], %296 {strides = array<i32>} : memref<2x2x256xf32, #tpu.memory_space<vmem>>, vector<1x2x128xf32>,
    %c2_i32_126 = arith.constant 2 : i32
    %c1_127 = arith.constant 1 : index
    %c0_128 = arith.constant 0 : index
    %c0_129 = arith.constant 0 : index
    %297 = vector.load %arg11[%c1_127, %c0_128, %c0_129] : memref<2x2x256xf32, #tpu.memory_space<vmem>>, vector<1x2x256xf32>
    %298 = vector.shape_cast %297 : vector<1x2x256xf32> to vector<2x256xf32>
    %c0_130 = arith.constant 0 : index
    %c0_131 = arith.constant 0 : index
    %299 = vector.load %arg8[%c0_130, %c0_131] : memref<256x128xf32, #tpu.memory_space<vmem>>, vector<256x128xf32>
    %cst_132 = arith.constant dense<0.000000e+00> : vector<2x128xf32>
    %300 = tpu.matmul %298, %299, %cst_132 {dimension_numbers = #tpu.dot_dimension_numbers<[1], [0], [0], [1], [0, 0, 1, 1], [], []>} : vector<2x256xf32>, vector<256x128xf32>, vector<2x128xf32> -> vector<2x128xf32>
    %c0_133 = arith.constant 0 : index
    %c0_134 = arith.constant 0 : index
    %301 = vector.load %arg9[%c0_133, %c0_134] : memref<1x128xf32, #tpu.memory_space<vmem>>, vector<1x128xf32>
    %302 = vector.broadcast %301 : vector<1x128xf32> to vector<2x128xf32>
    %303 = arith.addf %300, %302 : vector<2x128xf32>
    %c0_135 = arith.constant 0 : index
    %c0_136 = arith.constant 0 : index
    %304 = vector.load %arg10[%c0_135, %c0_136] : memref<2x128xf32, #tpu.memory_space<vmem>>, vector<2x128xf32>
    tpu.vector_store %arg10[%c0_135, %c0_136], %303 {strides = array<i32>} : memref<2x128xf32, #tpu.memory_space<vmem>>, vector<2x128xf32>,
    return
  }
}

</mosaic_0001>

<bundles_post_ra>
// kernel: hybrid_forward.1
= control target key start
LH: loop header
LB: loop body
LE: loop exit
PB: predicated region body
PF: predicated region fallthrough
CT: control target
= control target key end

     0   :  { %15 = vsyncpa [#allocation5], 0  ;;  %s6887_s0 = inlined_call_operand.hbm [shape: f32[2,8,8], index: 0, kind: input, shape index: {}]   ;;  %s6888_s1 = inlined_call_operand.hbm [shape: f32[3,8,128], index: 1, kind: input, shape index: {}]   ;;  %s6889_s2 = inlined_call_operand.hbm [shape: f32[1,128], index: 2, kind: input, shape index: {}]   ;;  %s6890_s3 = inlined_call_operand.hbm [shape: f32[3,128,256], index: 3, kind: input, shape index: {}]   ;;  %s6891_s4 = inlined_call_operand.hbm [shape: f32[1,256], index: 4, kind: input, shape index: {}]   ;;  %s6892_s5 = inlined_call_operand.hbm [shape: f32[2,256,1024], index: 5, kind: input, shape index: {}]   ;;  %s6893_s6 = inlined_call_operand.hbm [shape: f32[2,2,128,512], index: 6, kind: input, shape index: {}]   ;;  %s6894_s7 = inlined_call_operand.hbm [shape: f32[2,1,1024], index: 7, kind: input, shape index: {}]   ;;  %s6895_s8 = inlined_call_operand.hbm [shape: f32[256,128], index: 8, kind: input, shape index: {}]   ;;  %s6896_s9 = inlined_call_operand.hbm [shape: f32[1,128], index: 9, kind: input, shape index: {}]   ;;  %s6897_s10 = inlined_call_operand.hbm [shape: f32[2,128], index: 10, kind: output, shape index: {}]  }
   0x1   :  { %16 = vsyncpa [#allocation8], 0 }
   0x2   :  { %17 = vsyncpa [#allocation11], 0 }
   0x3   :  { %18 = vsyncpa [#allocation14], 0 }
   0x4   :  { %19 = vsyncpa [#allocation17], 0 }
   0x5   :  { %20 = vsyncpa [#allocation20], 0 }
   0x6   :  { %21 = vsyncpa [#allocation6], 0  ;;  %s5844_s13 = smov [#allocation7]   ;;  %s5845_s15 = smov [#allocation10]  }
   0x7   :  { %s39_s14 = sshll.u32 %s5844_s13, 4  ;;  %s61_s16 = sshll.u32 %s5845_s15, 4  ;;  %s40_s14 = int_to_ptr.vmem [resolvable:$true] %s39_s14  ;;  %s5920_s16 = int_to_ptr.vmem [resolvable:$true] %s61_s16 }
   0x8   :  { %s5588_s19 = scalar_lea.hbm %s6888_s1, 384 }
   0x9   :  { %p5589_p0 = scmp.ne.s32.totalorder %s6888_s1, %s5588_s19  ;;  %p5592_p1 = scmp.lt.u32.totalorder %s5588_s19, %s6888_s1 }
   0xb   :  { %p5594_p2 = pnand %p5592_p1, %p5589_p0 }
   0xd   :  { %5597 = shalt.err (!%p5594_p2)
}
   0xe   :  { %s5598_s24 = scalar_lea.vmem %s40_s14, 384  ;;  %p5603_p4 = scmp.lt.s32.totalorder %s40_s14, %s40_s14 }
   0xf   :  { %p5599_p3 = scmp.ne.s32.totalorder %s40_s14, %s5598_s24  ;;  %p5604_p5 = scmp.lt.s32.totalorder %s5598_s24, %s5598_s24 }
  0x11   :  { %p5605_p6 = por %p5604_p5, %p5603_p4 }
  0x13   :  { %p5606_p7 = pnand %p5605_p6, %p5599_p3 }
  0x15   :  { %5609 = shalt.err (!%p5606_p7)
}
  0x16   :  { %s5846_s25 = smov 128   ;;  %s5847_s26 = smov 8  }
  0x17   :  { %45 = dma.hbm_to_vmem [thread:$0]  %s6888_s1, 384, %s40_s14, [#allocation8], %s5846_s25, %s5846_s25, %s5847_s26  }
  0x18   :  { %s5610_s11 = scalar_lea.hbm %s6890_s3, 12288 }
  0x19   :  { %p5611_p8 = scmp.ne.s32.totalorder %s6890_s3, %s5610_s11  ;;  %p5614_p9 = scmp.lt.u32.totalorder %s5610_s11, %s6890_s3 }
  0x1b   :  { %p5616_p10 = pnand %p5614_p9, %p5611_p8 }
  0x1d   :  { %5619 = shalt.err (!%p5616_p10)
}
  0x1e   :  { %s5620_s18 = scalar_lea.vmem %s5920_s16, 12288  ;;  %p5625_p12 = scmp.lt.s32.totalorder %s5920_s16, %s5920_s16 }
  0x1f   :  { %p5621_p11 = scmp.ne.s32.totalorder %s5920_s16, %s5620_s18  ;;  %p5626_p13 = scmp.lt.s32.totalorder %s5620_s18, %s5620_s18 }
  0x21   :  { %p5627_p0 = por %p5626_p13, %p5625_p12 }
  0x23   :  { %p5628_p1 = pnand %p5627_p0, %p5621_p11 }
  0x25   :  { %5631 = shalt.err (!%p5628_p1)
}
  0x26   :  { %s5848_s1 = smov 256   ;;  %s5849_s14 = smov 16  }
  0x27   :  { %67 = dma.hbm_to_vmem [thread:$0]  %s6890_s3, 12288, %s5920_s16, [#allocation11], %s5848_s1, %s5848_s1, %s5849_s14  }
  0x28   :  { %s5850_s21 = smov [#allocation13]   ;;  %s5632_s27 = scalar_lea.hbm %s6892_s5, 65536 }
  0x29   :  { %s83_s22 = sshll.u32 %s5850_s21, 4  ;;  %p5633_p2 = scmp.ne.s32.totalorder %s6892_s5, %s5632_s27  ;;  %s84_s22 = int_to_ptr.vmem [resolvable:$true] %s83_s22 }
  0x2a   :  { %p5636_p3 = scmp.lt.u32.totalorder %s5632_s27, %s6892_s5 }
  0x2c   :  { %p5638_p4 = pnand %p5636_p3, %p5633_p2 }
  0x2e   :  { %5641 = shalt.err (!%p5638_p4)
}
  0x2f   :  { %s5642_s12 = scalar_lea.vmem %s84_s22, 65536  ;;  %p5647_p6 = scmp.lt.s32.totalorder %s84_s22, %s84_s22 }
  0x30   :  { %p5643_p5 = scmp.ne.s32.totalorder %s84_s22, %s5642_s12  ;;  %p5648_p7 = scmp.lt.s32.totalorder %s5642_s12, %s5642_s12 }
  0x32   :  { %p5649_p8 = por %p5648_p7, %p5647_p6 }
  0x34   :  { %p5650_p9 = pnand %p5649_p8, %p5643_p5 }
  0x36   :  { %5653 = shalt.err (!%p5650_p9)
}
  0x37   :  { %s5851_s3 = smov 1024   ;;  %s5852_s16 = smov 64  }
  0x38   :  { %89 = dma.hbm_to_vmem [thread:$0]  %s6892_s5, 65536, %s84_s22, [#allocation14], %s5851_s3, %s5851_s3, %s5852_s16  }
  0x39   :  { %s5853_s17 = smov [#allocation16]   ;;  %s5854_s1 = smov [#allocation4]  }
  0x3a   :  { %s107_s18 = sshll.u32 %s5853_s17, 4  ;;  %s27_s14 = sshll.u32 %s5854_s1, 4  ;;  %s108_s18 = int_to_ptr.vmem [resolvable:$true] %s107_s18  ;;  %s28_s14 = int_to_ptr.vmem [resolvable:$true] %s27_s14 }
  0x3b   :  { %s5654_s21 = scalar_lea.hbm %s6894_s7, 256 }
  0x3c   :  { %p5655_p10 = scmp.ne.s32.totalorder %s6894_s7, %s5654_s21  ;;  %p5658_p11 = scmp.lt.u32.totalorder %s5654_s21, %s6894_s7 }
  0x3e   :  { %p5660_p12 = pnand %p5658_p11, %p5655_p10 }
  0x40   :  { %5663 = shalt.err (!%p5660_p12)
}
  0x41   :  { %s5664_s5 = scalar_lea.vmem %s108_s18, 256  ;;  %p5669_p0 = scmp.lt.s32.totalorder %s108_s18, %s108_s18 }
  0x42   :  { %p5665_p13 = scmp.ne.s32.totalorder %s108_s18, %s5664_s5  ;;  %p5670_p1 = scmp.lt.s32.totalorder %s5664_s5, %s5664_s5 }
  0x44   :  { %p5671_p2 = por %p5670_p1, %p5669_p0 }
  0x46   :  { %p5672_p3 = pnand %p5671_p2, %p5665_p13 }
  0x48   :  { %5675 = shalt.err (!%p5672_p3)
}
  0x49   :  { %113 = dma.hbm_to_vmem [thread:$0]  %s6894_s7, 256, %s108_s18, [#allocation17], %s5846_s25, %s5846_s25, %s5847_s26  }
  0x4a   :  { %s5676_s12 = scalar_lea.hbm %s6887_s0, 256 }
  0x4b   :  { %p5677_p4 = scmp.ne.s32.totalorder %s6887_s0, %s5676_s12  ;;  %p5680_p5 = scmp.lt.u32.totalorder %s5676_s12, %s6887_s0 }
  0x4d   :  { %p5682_p6 = pnand %p5680_p5, %p5677_p4 }
  0x4f   :  { %5685 = shalt.err (!%p5682_p6)
}
  0x50   :  { %s5686_s17 = scalar_lea.vmem %s28_s14, 256  ;;  %p5691_p8 = scmp.lt.s32.totalorder %s28_s14, %s28_s14 }
  0x51   :  { %p5687_p7 = scmp.ne.s32.totalorder %s28_s14, %s5686_s17  ;;  %p5692_p9 = scmp.lt.s32.totalorder %s5686_s17, %s5686_s17 }
  0x53   :  { %p5693_p10 = por %p5692_p9, %p5691_p8 }
  0x55   :  { %p5694_p11 = pnand %p5693_p10, %p5687_p7 }
  0x57   :  { %5697 = shalt.err (!%p5694_p11)
}
  0x58   :  { %33 = dma.hbm_to_vmem [thread:$0]  %s6887_s0, 256, %s28_s14, [#allocation5], %s5846_s25, %s5846_s25, %s5847_s26  }
  0x59   :  { %s5855_s1 = smov [#allocation9]   ;;  %s5856_s20 = smov [#allocation12]  }
  0x5a   :  { %s52_s19 = sshll.u32 %s5855_s1, 4  ;;  %s74_s21 = sshll.u32 %s5856_s20, 4  ;;  %s53_s19 = int_to_ptr.vmem [resolvable:$true] %s52_s19  ;;  %s75_s21 = int_to_ptr.vmem [resolvable:$true] %s74_s21 }
  0x5b   :  { %s5698_s27 = scalar_lea.hbm %s6889_s2, 16 }
  0x5c   :  { %p5699_p12 = scmp.ne.s32.totalorder %s6889_s2, %s5698_s27  ;;  %p5702_p13 = scmp.lt.u32.totalorder %s5698_s27, %s6889_s2 }
  0x5e   :  { %p5704_p0 = pnand %p5702_p13, %p5699_p12 }
  0x60   :  { %5707 = shalt.err (!%p5704_p0)
}
  0x61   :  { %s5708_s0 = scalar_lea.vmem %s53_s19, 16  ;;  %s5712_s14 = scalar_lea.vmem %s53_s19, 32 }
  0x62   :  { %p5709_p1 = scmp.ne.s32.totalorder %s53_s19, %s5708_s0  ;;  %p5713_p2 = scmp.lt.s32.totalorder %s53_s19, %s53_s19 }
  0x63   :  { %p5714_p3 = scmp.lt.s32.totalorder %s5712_s14, %s5708_s0 }
  0x65   :  { %p5715_p4 = por %p5714_p3, %p5713_p2 }
  0x67   :  { %p5716_p5 = pnand %p5715_p4, %p5709_p1 }
  0x69   :  { %5719 = shalt.err (!%p5716_p5)
}
  0x6a   :  { %55 = dma.hbm_to_vmem [thread:$0]  %s6889_s2, 16, %s53_s19, [#allocation8]  }
  0x6b   :  { %s5720_s16 = scalar_lea.hbm %s6891_s4, 32 }
  0x6c   :  { %p5721_p6 = scmp.ne.s32.totalorder %s6891_s4, %s5720_s16  ;;  %p5724_p7 = scmp.lt.u32.totalorder %s5720_s16, %s6891_s4 }
  0x6e   :  { %p5726_p8 = pnand %p5724_p7, %p5721_p6 }
  0x70   :  { %5729 = shalt.err (!%p5726_p8)
}
  0x71   :  { %s5730_s18 = scalar_lea.vmem %s75_s21, 32  ;;  %p5735_p10 = scmp.lt.s32.totalorder %s75_s21, %s75_s21 }
  0x72   :  { %p5731_p9 = scmp.ne.s32.totalorder %s75_s21, %s5730_s18  ;;  %p5736_p11 = scmp.lt.s32.totalorder %s5730_s18, %s5730_s18 }
  0x74   :  { %p5737_p12 = por %p5736_p11, %p5735_p10 }
  0x76   :  { %p5738_p13 = pnand %p5737_p12, %p5731_p9 }
  0x78   :  { %5741 = shalt.err (!%p5738_p13)
}
  0x79   :  { %77 = dma.hbm_to_vmem [thread:$0]  %s6891_s4, 32, %s75_s21, [#allocation11]  }
  0x7a   :  { %s5857_s19 = smov [#allocation15]   ;;  %s5742_s27 = scalar_lea.hbm %s6893_s6, 32768 }
  0x7b   :  { %s95_s20 = sshll.u32 %s5857_s19, 4  ;;  %p5743_p0 = scmp.ne.s32.totalorder %s6893_s6, %s5742_s27  ;;  %s96_s20 = int_to_ptr.vmem [resolvable:$true] %s95_s20 }
  0x7c   :  { %p5746_p1 = scmp.lt.u32.totalorder %s5742_s27, %s6893_s6 }
  0x7e   :  { %p5748_p2 = pnand %p5746_p1, %p5743_p0 }
  0x80   :  { %5751 = shalt.err (!%p5748_p2)
}
  0x81   :  { %s5752_s0 = scalar_lea.vmem %s96_s20, 32768  ;;  %p5757_p4 = scmp.lt.s32.totalorder %s96_s20, %s96_s20 }
  0x82   :  { %p5753_p3 = scmp.ne.s32.totalorder %s96_s20, %s5752_s0  ;;  %p5758_p5 = scmp.lt.s32.totalorder %s5752_s0, %s5752_s0 }
  0x84   :  { %p5759_p6 = por %p5758_p5, %p5757_p4 }
  0x86   :  { %p5760_p7 = pnand %p5759_p6, %p5753_p3 }
  0x88   :  { %5763 = shalt.err (!%p5760_p7)
}
  0x89   :  { %s5858_s4 = smov 512   ;;  %s5859_s21 = smov 32  }
  0x8a   :  { %101 = dma.hbm_to_vmem [thread:$0]  %s6893_s6, 32768, %s96_s20, [#allocation14], %s5858_s4, %s5858_s4, %s5859_s21  }
  0x8b   :  { %s5860_s11 = smov [#allocation18]   ;;  %s5861_s3 = smov [#allocation19]  }
  0x8c   :  { %s119_s12 = sshll.u32 %s5860_s11, 4  ;;  %s132_s16 = sshll.u32 %s5861_s3, 4  ;;  %s120_s12 = int_to_ptr.vmem [resolvable:$true] %s119_s12  ;;  %s133_s16 = int_to_ptr.vmem [resolvable:$true] %s132_s16 }
  0x8d   :  { %s5764_s17 = scalar_lea.hbm %s6895_s8, 4096 }
  0x8e   :  { %p5765_p8 = scmp.ne.s32.totalorder %s6895_s8, %s5764_s17  ;;  %p5768_p9 = scmp.lt.u32.totalorder %s5764_s17, %s6895_s8 }
  0x90   :  { %p5770_p10 = pnand %p5768_p9, %p5765_p8 }
  0x92   :  { %5773 = shalt.err (!%p5770_p10)
}
  0x93   :  { %s5774_s6 = scalar_lea.vmem %s120_s12, 4096  ;;  %p5779_p12 = scmp.lt.s32.totalorder %s120_s12, %s120_s12 }
  0x94   :  { %p5775_p11 = scmp.ne.s32.totalorder %s120_s12, %s5774_s6  ;;  %p5780_p13 = scmp.lt.s32.totalorder %s5774_s6, %s5774_s6 }
  0x96   :  { %p5781_p0 = por %p5780_p13, %p5779_p12 }
  0x98   :  { %p5782_p1 = pnand %p5781_p0, %p5775_p11 }
  0x9a   :  { %5785 = shalt.err (!%p5782_p1)
}
  0x9b   :  { %125 = dma.hbm_to_vmem [thread:$0]  %s6895_s8, 4096, %s120_s12, [#allocation17], %s5846_s25, %s5846_s25, %s5847_s26  }
  0x9c   :  { %s5786_s27 = scalar_lea.hbm %s6896_s9, 16 }
  0x9d   :  { %p5787_p2 = scmp.ne.s32.totalorder %s6896_s9, %s5786_s27  ;;  %p5790_p3 = scmp.lt.u32.totalorder %s5786_s27, %s6896_s9 }
  0x9f   :  { %p5792_p4 = pnand %p5790_p3, %p5787_p2 }
  0xa1   :  { %5795 = shalt.err (!%p5792_p4)
}
  0xa2   :  { %s5796_s0 = scalar_lea.vmem %s133_s16, 16  ;;  %s5800_s4 = scalar_lea.vmem %s133_s16, 32 }
  0xa3   :  { %p5797_p5 = scmp.ne.s32.totalorder %s133_s16, %s5796_s0  ;;  %p5801_p6 = scmp.lt.s32.totalorder %s133_s16, %s133_s16 }
  0xa4   :  { %p5802_p7 = scmp.lt.s32.totalorder %s5800_s4, %s5796_s0 }
  0xa6   :  { %p5803_p8 = por %p5802_p7, %p5801_p6 }
  0xa8   :  { %p5804_p9 = pnand %p5803_p8, %p5797_p5 }
  0xaa   :  { %5807 = shalt.err (!%p5804_p9)
}
  0xab   :  { %135 = dma.hbm_to_vmem [thread:$0]  %s6896_s9, 16, %s133_s16, [#allocation20]  }
  0xac   :  { %5830 = dma.done.wait [#allocation5], 256  }
  0xad   :  { %5831 = vsyncadd [#allocation5], 4294967040 }
  0xae   :  { %5832 = dma.done.wait [#allocation8], 400  }
  0xaf   :  { %5833 = vsyncadd [#allocation8], 4294966896 }
  0xb0   :  { %5834 = dma.done.wait [#allocation11], 12320  }
  0xb1   :  { %5835 = vsyncadd [#allocation11], 4294954976 }
  0xb2   :  { %5836 = dma.done.wait [#allocation14], 98304  }
  0xb3   :  { %5837 = vsyncadd [#allocation14], 4294868992 }
  0xb4   :  { %5838 = dma.done.wait [#allocation17], 4352  }
  0xb5   :  { %5839 = vsyncadd [#allocation17], 4294962944 }
  0xb6   :  { %5840 = dma.done.wait [#allocation20], 16  }
  0xb7   :  { %5841 = vsyncadd [#allocation20], 4294967280  ;;  %v179_v0 = vld [vmem:[#allocation7] sm:$0xff]  ;;  %v166_v1 = vld [vmem:[#allocation4] sm:$0xff]  ;;  %vm174_vm0 = vcmask 1040384   ;;  %vm193_vm1 = vcmask 64512  }
  0xb8   :  { %v360_v2 = vld [vmem:[#allocation7 + $0x10] sm:$0xff]  ;;  %4331 = vmatprep.subr.mxu0 %v179_v0  ;;  %v170_v3 = vrot.slane %v166_v1, 7  ;;  %v167_v4 = vld [vmem:[#allocation4 + $0x8] sm:$0xff]  ;;  %v192_v5 = vld [vmem:[#allocation7 + $0x8] sm:$0xff]  ;;  %vm184_vm2 = vcmask 1046528   ;;  %vm352_vm3 = vcmask 1045504  }
  0xb9   :  { %4332 = vmatpush3.msra.mxu0 %v179_v0  ;;  %v171_v6 = vrot.slane %v167_v4, 7  ;;  %4326 = vmatprep.subr.mxu1 %v192_v5  ;;  %v627_v23 = vld [vmem:[#allocation10 + $0x108] sm:$0xff]  ;;  %v629_v24 = vld [vmem:[#allocation10 + $0x118] sm:$0xff]  ;;  %v626_v26 = vld [vmem:[#allocation10 + $0x100] sm:$0xff]  ;;  %vm497_vm4 = vcmask 1041408   ;;  %vm562_vm5 = vcmask 1042434  }
  0xba   :  { %v175_v7 = vsel %vm174_vm0, 0.0, %v170_v3  ;;  %v177_v8 = vsel %vm174_vm0, %v170_v3, 0.0  ;;  %4336 = vmatprep.subr.mxu0 %v360_v2  ;;  %4327 = vmatpush3.msra.mxu1 %v192_v5  ;;  %v4341_v25 = vpack.c.bf16 %v629_v24, %v627_v23  ;;  %v628_v27 = vld [vmem:[#allocation10 + $0x110] sm:$0xff]  ;;  %v631_v29 = vld [vmem:[#allocation10 + $0x128] sm:$0xff]  ;;  %v633_v30 = vld [vmem:[#allocation10 + $0x138] sm:$0xff]  ;;  %v6898_v5 = vmov 0.0  }
  0xbb   :  { %v185_v9 = vrot.slane %v175_v7, 1  ;;  %4333 = vmatprep.mubr.msk.f32.mxu0 %vm193_vm1, %v175_v7  ;;  %v353_v10 = vrot.slane %v175_v7, 2  ;;  %v354_v11 = vrot.slane %v177_v8, 2  ;;  %v176_v12 = vsel %vm174_vm0, 0.0, %v171_v6  ;;  %v630_v32 = vld [vmem:[#allocation10 + $0x120] sm:$0xff]  ;;  %v632_v33 = vld [vmem:[#allocation10 + $0x130] sm:$0xff] }
  0xbc   :  { %v178_v13 = vsel %vm174_vm0, %v171_v6, 0.0  ;;  %v188_v14 = vrot.slane %v176_v12, 1  ;;  %4334 = vmatmul.mubr.msk.f32.vlgmr.msra.gmra.mrb[0].mxu0 %vm193_vm1, %v176_v12  ;;  %v186_v15 = vrot.slane %v177_v8, 1  ;;  %v356_v16 = vrot.slane %v176_v12, 2  ;;  %4342 = vmatprep.subr.bf16.mxu1 %v4341_v25  ;;  %v635_v35 = vld [vmem:[#allocation10 + $0x148] sm:$0xff]  ;;  %v637_v36 = vld [vmem:[#allocation10 + $0x158] sm:$0xff] }
  0xbd   :  { %v357_v17 = vrot.slane %v178_v13, 2  ;;  %4337 = vmatpush3.msra.mxu0 %v360_v2  ;;  %v189_v18 = vrot.slane %v178_v13, 1  ;;  %v355_v19 = vsel %vm352_vm3, %v353_v10, %v354_v11  ;;  %v4343_v28 = vpack.c.bf16 %v628_v27, %v626_v26  ;;  %v634_v38 = vld [vmem:[#allocation10 + $0x140] sm:$0xff]  ;;  %v636_v39 = vld [vmem:[#allocation10 + $0x150] sm:$0xff]  ;;  %v639_v41 = vld [vmem:[#allocation10 + $0x168] sm:$0xff]  ;;  %s5864_s9 = smov [#allocation21]  }
  0xbe   :  { %v187_v20 = vsel %vm184_vm2, %v185_v9, %v186_v15  ;;  %4338 = vmatprep.mubr.msk.f32.mxu0 %vm193_vm1, %v355_v19  ;;  %v4345_v31 = vpack.c.bf16 %v633_v30, %v631_v29  ;;  %v4347_v34 = vpack.c.bf16 %v632_v33, %v630_v32  ;;  %v4349_v37 = vpack.c.bf16 %v637_v36, %v635_v35  ;;  %v641_v42 = vld [vmem:[#allocation10 + $0x178] sm:$0xff]  ;;  %v638_v44 = vld [vmem:[#allocation10 + $0x160] sm:$0xff]  ;;  %v640_v45 = vld [vmem:[#allocation10 + $0x170] sm:$0xff]  ;;  %s4247_s26 = sshll.u32 %s5864_s9, 4  ;;  %s4248_s26 = int_to_ptr.vmem [resolvable:$true] %s4247_s26 }
  0xbf   :  { %4328 = vmatprep.mubr.msk.f32.mxu1 %vm193_vm1, %v187_v20  ;;  %v190_v21 = vsel %vm184_vm2, %v188_v14, %v189_v18  ;;  %v358_v22 = vsel %vm352_vm3, %v356_v16, %v357_v17  ;;  %v4351_v40 = vpack.c.bf16 %v636_v39, %v634_v38  ;;  %v4353_v43 = vpack.c.bf16 %v641_v42, %v639_v41  ;;  %v643_v47 = vld [vmem:[#allocation10 + $0x188] sm:$0xff]  ;;  %v645_v48 = vld [vmem:[#allocation10 + $0x198] sm:$0xff]  ;;  %v642_v50 = vld [vmem:[#allocation10 + $0x180] sm:$0xff]  ;;  %s5808_s21 = scalar_lea.vmem %s4248_s26, 32  ;;  %p5813_p11 = scmp.lt.s32.totalorder %s4248_s26, %s4248_s26 }
  0xc0   :  { %4329 = vmatmul.mubr.msk.f32.vlgmr.msra.gmra.mrb[0].mxu1 %vm193_vm1, %v190_v21  ;;  %v4355_v46 = vpack.c.bf16 %v640_v45, %v638_v44  ;;  %v4357_v49 = vpack.c.bf16 %v645_v48, %v643_v47  ;;  %v644_v51 = vld [vmem:[#allocation10 + $0x190] sm:$0xff]  ;;  %v647_v53 = vld [vmem:[#allocation10 + $0x1a8] sm:$0xff]  ;;  %v649_v54 = vld [vmem:[#allocation10 + $0x1b8] sm:$0xff]  ;;  %v459_v48 = vlaneseq  ;;  %vm564_vm6 = vcmask 1043459   ;;  %p5809_p10 = scmp.ne.s32.totalorder %s4248_s26, %s5808_s21  ;;  %p5814_p12 = scmp.lt.s32.totalorder %s5808_s21, %s5808_s21 }
  0xc1   :  { %4344 = vmatpush1.bf16.msra.mxu1 %v4343_v28  ;;  %v4359_v52 = vpack.c.bf16 %v644_v51, %v642_v50  ;;  %v4361_v55 = vpack.c.bf16 %v649_v54, %v647_v53  ;;  %v646_v56 = vld [vmem:[#allocation10 + $0x1a0] sm:$0xff]  ;;  %v648_v57 = vld [vmem:[#allocation10 + $0x1b0] sm:$0xff]  ;;  %v651_v59 = vld [vmem:[#allocation10 + $0x1c8] sm:$0xff]  ;;  %724 = vmatprep.mubr.f32.mxu1 %v6898_v5  ;;  %vm566_vm7 = vcmask 1044484   ;;  %vm575_vm8 = vcmask 1044480  }
  0xc2   :  { %4346 = vmatprep.subr.bf16.mxu1 %v4345_v31  ;;  %v4363_v58 = vpack.c.bf16 %v648_v57, %v646_v56  ;;  %v653_v60 = vld [vmem:[#allocation10 + $0x1d8] sm:$0xff]  ;;  %v650_v62 = vld [vmem:[#allocation10 + $0x1c0] sm:$0xff]  ;;  %v652_v63 = vld [vmem:[#allocation10 + $0x1d0] sm:$0xff]  ;;  %vm804_vm9 = vcmask 1045508   ;;  %vm614_vm10 = vcmask 1042432   ;;  %vm615_vm11 = vcmask 1046532   ;;  %p5815_p13 = por %p5814_p12, %p5813_p11 }
  0xc3   :  { %v4365_v61 = vpack.c.bf16 %v653_v60, %v651_v59  ;;  %v655_v0 = vld [vmem:[#allocation10 + $0x1e8] sm:$0xff]  ;;  %v4367_v1 = vpack.c.bf16 %v652_v63, %v650_v62  ;;  %v657_v2 = vld [vmem:[#allocation10 + $0x1f8] sm:$0xff]  ;;  %v654_v3 = vld [vmem:[#allocation10 + $0x1e0] sm:$0xff]  ;;  %v6074_v59 = vshrl.u32 %v459_v48, 7  ;;  %vm1361_vm14 = vcmask 1041409  }
  0xc4   :  { %4339 = vmatmul.mubr.msk.f32.vlgmr.msra.gmra.mrb[0].mxu0 %vm193_vm1, %v358_v22  ;;  %v656_v4 = vld [vmem:[#allocation10 + $0x1f0] sm:$0xff]  ;;  %v4369_v6 = vpack.c.bf16 %v657_v2, %v655_v0  ;;  %v579_v7 = vld [vmem:[#allocation10 + $0x8] sm:$0xff]  ;;  %v581_v8 = vld [vmem:[#allocation10 + $0x18] sm:$0xff]  ;;  %p5816_p0 = pnand %p5815_p13, %p5809_p10 }
  0xc5   :  { %4348 = vmatpush1.bf16.msra.mxu1 %v4347_v34  ;;  %v4371_v9 = vpack.c.bf16 %v656_v4, %v654_v3  ;;  %v4373_v10 = vpack.c.bf16 %v581_v8, %v579_v7  ;;  %v1055_v11 = vld [vmem:[#allocation13 + $0x8] sm:$0xff]  ;;  %v1054_v13 = vld [vmem:[#allocation13] sm:$0xff]  ;;  %v4267_v57 = vld [vmem:[#allocation9] ss:$0 sm:$0xff] }
  0xc6   :  { %4350 = vmatprep.subr.bf16.mxu1 %v4349_v37  ;;  %v1063_v12 = vld [vmem:[#allocation13 + $0x48] sm:$0xff]  ;;  %v1062_v15 = vld [vmem:[#allocation13 + $0x40] sm:$0xff]  ;;  %vm6105_vm12 = vmor %vm497_vm4, %vm804_vm9 }
  0xc7   :  { %v4437_v14 = vpack.c.bf16 %v1063_v12, %v1055_v11  ;;  %v4439_v16 = vpack.c.bf16 %v1062_v15, %v1054_v13  ;;  %v1071_v17 = vld [vmem:[#allocation13 + $0x88] sm:$0xff]  ;;  %v1070_v19 = vld [vmem:[#allocation13 + $0x80] sm:$0xff]  ;;  %vm6112_vm13 = vmor %vm614_vm10, %vm615_vm11 }
  0xc8   :  { %v1079_v18 = vld [vmem:[#allocation13 + $0xc8] sm:$0xff]  ;;  %v1078_v20 = vld [vmem:[#allocation13 + $0xc0] sm:$0xff] }
  0xc9   :  { %4352 = vmatpush1.bf16.msra.mxu1 %v4351_v40  ;;  %4438 = vmatprep.subr.bf16.mxu0 %v4437_v14  ;;  %v4441_v21 = vpack.c.bf16 %v1079_v18, %v1071_v17  ;;  %v4443_v22 = vpack.c.bf16 %v1078_v20, %v1070_v19  ;;  %v1087_v23 = vld [vmem:[#allocation13 + $0x108] sm:$0xff]  ;;  %v1086_v26 = vld [vmem:[#allocation13 + $0x100] sm:$0xff] }
  0xca   :  { %4354 = vmatprep.subr.bf16.mxu1 %v4353_v43  ;;  %4440 = vmatpush1.bf16.msra.mxu0 %v4439_v16  ;;  %v1095_v24 = vld [vmem:[#allocation13 + $0x148] sm:$0xff]  ;;  %v1094_v27 = vld [vmem:[#allocation13 + $0x140] sm:$0xff] }
  0xcb   :  { %4442 = vmatprep.subr.bf16.mxu0 %v4441_v21  ;;  %v4445_v25 = vpack.c.bf16 %v1095_v24, %v1087_v23  ;;  %v4447_v28 = vpack.c.bf16 %v1094_v27, %v1086_v26  ;;  %v1103_v29 = vld [vmem:[#allocation13 + $0x188] sm:$0xff]  ;;  %v1102_v31 = vld [vmem:[#allocation13 + $0x180] sm:$0xff] }
  0xcc   :  { %v1111_v30 = vld [vmem:[#allocation13 + $0x1c8] sm:$0xff]  ;;  %v1110_v33 = vld [vmem:[#allocation13 + $0x1c0] sm:$0xff] }
  0xcd   :  { %4356 = vmatpush1.bf16.msra.mxu1 %v4355_v46  ;;  %v4449_v32 = vpack.c.bf16 %v1111_v30, %v1103_v29  ;;  %v4451_v34 = vpack.c.bf16 %v1110_v33, %v1102_v31  ;;  %v1119_v35 = vld [vmem:[#allocation13 + $0x208] sm:$0xff]  ;;  %v1118_v37 = vld [vmem:[#allocation13 + $0x200] sm:$0xff]  ;;  %v5863_v46 = vmov 1983009808  }
  0xce   :  { %4358 = vmatprep.subr.bf16.mxu1 %v4357_v49  ;;  %4444 = vmatpush1.bf16.msra.mxu0 %v4443_v22  ;;  %v1127_v36 = vld [vmem:[#allocation13 + $0x248] sm:$0xff]  ;;  %v1126_v39 = vld [vmem:[#allocation13 + $0x240] sm:$0xff]  ;;  %v457_v47 = vunpack.c.l.s4 %v5863_v46 }
  0xcf   :  { %4446 = vmatprep.subr.bf16.mxu0 %v4445_v25  ;;  %v4453_v38 = vpack.c.bf16 %v1127_v36, %v1119_v35  ;;  %v4455_v40 = vpack.c.bf16 %v1126_v39, %v1118_v37  ;;  %v1135_v41 = vld [vmem:[#allocation13 + $0x288] sm:$0xff]  ;;  %v1134_v43 = vld [vmem:[#allocation13 + $0x280] sm:$0xff] }
  0xd0   :  { %v1143_v42 = vld [vmem:[#allocation13 + $0x2c8] sm:$0xff]  ;;  %v1142_v45 = vld [vmem:[#allocation13 + $0x2c0] sm:$0xff] }
  0xd1   :  { %4360 = vmatpush1.bf16.msra.mxu1 %v4359_v52  ;;  %v4457_v44 = vpack.c.bf16 %v1143_v42, %v1135_v41  ;;  %v4459_v49 = vpack.c.bf16 %v1142_v45, %v1134_v43  ;;  %v1151_v51 = vld [vmem:[#allocation13 + $0x308] sm:$0xff]  ;;  %v1150_v53 = vld [vmem:[#allocation13 + $0x300] sm:$0xff] }
  0xd2   :  { %4362 = vmatprep.subr.bf16.mxu1 %v4361_v55  ;;  %4448 = vmatpush1.bf16.msra.mxu0 %v4447_v28  ;;  %v1159_v52 = vld [vmem:[#allocation13 + $0x348] sm:$0xff]  ;;  %v1158_v56 = vld [vmem:[#allocation13 + $0x340] sm:$0xff] }
  0xd3   :  { %4450 = vmatprep.subr.bf16.mxu0 %v4449_v32  ;;  %v4461_v55 = vpack.c.bf16 %v1159_v52, %v1151_v51  ;;  %v4463_v60 = vpack.c.bf16 %v1158_v56, %v1150_v53  ;;  %v1167_v62 = vld [vmem:[#allocation13 + $0x388] sm:$0xff]  ;;  %v1166_v0 = vld [vmem:[#allocation13 + $0x380] sm:$0xff] }
  0xd4   :  { %v1175_v63 = vld [vmem:[#allocation13 + $0x3c8] sm:$0xff]  ;;  %v1174_v4 = vld [vmem:[#allocation13 + $0x3c0] sm:$0xff] }
  0xd5   :  { %4364 = vmatpush1.bf16.msra.mxu1 %v4363_v58  ;;  %v458_v58 = vunpack.c.0.s8 %v457_v47  ;;  %v4465_v3 = vpack.c.bf16 %v1175_v63, %v1167_v62 }
  0xd6   :  { %4366 = vmatprep.subr.bf16.mxu1 %v4365_v61  ;;  %4452 = vmatpush1.bf16.msra.mxu0 %v4451_v34 }
  0xd7   :  { %4454 = vmatprep.subr.bf16.mxu0 %v4453_v38  ;;  %v6077_v8 = vsub.s32 %v458_v58, %v6074_v59 }
  0xd9   :  { %4368 = vmatpush1.bf16.msra.mxu1 %v4367_v1 }
  0xda   :  { %4370 = vmatprep.subr.bf16.mxu1 %v4369_v6  ;;  %4456 = vmatpush1.bf16.msra.mxu0 %v4455_v40 }
  0xdb   :  { %4458 = vmatprep.subr.bf16.mxu0 %v4457_v44 }
  0xdd   :  { %4372 = vmatpush1.bf16.msra.mxu1 %v4371_v9  ;;  %v4467_v9 = vpack.c.bf16 %v1174_v4, %v1166_v0 }
  0xde   :  { %4374 = vmatprep.subr.bf16.mxu1 %v4373_v10  ;;  %4460 = vmatpush1.bf16.msra.mxu0 %v4459_v49 }
  0xdf   :  { %4462 = vmatprep.subr.bf16.mxu0 %v4461_v55 }
  0xe2   :  { %4464 = vmatpush1.bf16.msra.mxu0 %v4463_v60 }
  0xe3   :  { %4466 = vmatprep.subr.bf16.mxu0 %v4465_v3 }
  0xe6   :  { %4468 = vmatpush1.bf16.msra.mxu0 %v4467_v9 }
 0x193   :  { %v4330_v50 = vpop.f32.mrb[0].mxu1 }
 0x194   :  { %v264_v54 = vpop.f32.mrb[1].mxu1 }
 0x197   :  { %v4340_v61 = vpop.f32.mrb[0].mxu0 }
 0x198   :  { %v5493_v1 = vadd.f32 %v4340_v61, %v4330_v50  ;;  %v431_v2 = vpop.f32.mrb[1].mxu0 }
 0x199   :  { %v5494_v6 = vadd.f32 %v431_v2, %v264_v54 }
 0x19a   :  { %v450_v7 = vadd.f32 %v5493_v1, %v4267_v57 }
 0x19b   :  { %v449_v10 = vadd.f32 %v5494_v6, %v4267_v57 }
 0x19c   :  { %v452_v11 = vmax.f32 %v450_v7, 0.0 }
 0x19d   :  { %v451_v12 = vmax.f32 %v449_v10, 0.0 }
 0x19e   :  { %v472_v13 = vcombine.high %v452_v11, %v452_v11  ;;  %v479_v14 = vrot.slane %v452_v11, %v6077_v8 }
 0x19f   :  { %v455_v15 = vcombine.high %v451_v12, %v451_v12  ;;  %v462_v16 = vrot.slane %v451_v12, %v6077_v8 }
 0x1a0   :  { %v486_v17 = vrot.slane %v472_v13, %v6077_v8  ;;  %v487_v18 = vcombine.high %v479_v14, %v479_v14  ;;  %v526_v19 = vsel %vm497_vm4, %v479_v14, -inf }
 0x1a1   :  { %v527_v20 = vrot.slane %v526_v19, 4  ;;  %v469_v21 = vrot.slane %v455_v15, %v6077_v8  ;;  %v470_v22 = vcombine.high %v462_v16, %v462_v16  ;;  %v498_v23 = vsel %vm497_vm4, %v462_v16, -inf }
 0x1a2   :  { %v488_v24 = vcombine.high %v486_v17, %v486_v17  ;;  %v533_v25 = vsel %vm497_vm4, %v487_v18, -inf  ;;  %v540_v26 = vsel %vm497_vm4, %v486_v17, -inf  ;;  %v499_v27 = vrot.slane %v498_v23, 4 }
 0x1a3   :  { %v528_v28 = vmax.f32 %v526_v19, %v527_v20  ;;  %v534_v29 = vrot.slane %v533_v25, 4  ;;  %v541_v30 = vrot.slane %v540_v26, 4  ;;  %v471_v31 = vcombine.high %v469_v21, %v469_v21 }
 0x1a4   :  { %v547_v32 = vsel %vm497_vm4, %v488_v24, -inf  ;;  %v500_v33 = vmax.f32 %v498_v23, %v499_v27  ;;  %v505_v34 = vsel %vm497_vm4, %v470_v22, -inf  ;;  %v512_v35 = vsel %vm497_vm4, %v469_v21, -inf }
 0x1a5   :  { %v529_v36 = vrot.slane %v528_v28, 2  ;;  %v535_v37 = vmax.f32 %v533_v25, %v534_v29  ;;  %v542_v38 = vmax.f32 %v540_v26, %v541_v30  ;;  %v548_v39 = vrot.slane %v547_v32, 4  ;;  %v606_v30 = vld [vmem:[#allocation10 + $0xe0] sm:$0xff] }
 0x1a6   :  { %v501_v40 = vrot.slane %v500_v33, 2  ;;  %v506_v41 = vrot.slane %v505_v34, 4  ;;  %v513_v42 = vrot.slane %v512_v35, 4  ;;  %v519_v43 = vsel %vm497_vm4, %v471_v31, -inf }
 0x1a7   :  { %v530_v44 = vmax.f32 %v528_v28, %v529_v36  ;;  %v536_v45 = vrot.slane %v535_v37, 2  ;;  %v543_v46 = vrot.slane %v542_v38, 2  ;;  %v549_v47 = vmax.f32 %v547_v32, %v548_v39  ;;  %v580_v39 = vld [vmem:[#allocation10 + $0x10] sm:$0xff] }
 0x1a8   :  { %v502_v48 = vmax.f32 %v500_v33, %v501_v40  ;;  %v507_v49 = vmax.f32 %v505_v34, %v506_v41  ;;  %v514_v50 = vmax.f32 %v512_v35, %v513_v42  ;;  %v520_v51 = vrot.slane %v519_v43, 4 }
 0x1a9   :  { %v531_v52 = vrot.slane %v530_v44, 1  ;;  %v537_v53 = vmax.f32 %v535_v37, %v536_v45  ;;  %v544_v54 = vmax.f32 %v542_v38, %v543_v46  ;;  %v550_v55 = vrot.slane %v549_v47, 2  ;;  %v578_v38 = vld [vmem:[#allocation10] sm:$0xff] }
 0x1aa   :  { %v508_v56 = vrot.slane %v507_v49, 2  ;;  %v515_v57 = vrot.slane %v514_v50, 2  ;;  %v521_v58 = vmax.f32 %v519_v43, %v520_v51  ;;  %v503_v63 = vrot.slane %v502_v48, 1  ;;  %v583_v43 = vld [vmem:[#allocation10 + $0x28] sm:$0xff] }
 0x1ab   :  { %v538_v60 = vrot.slane %v537_v53, 1  ;;  %v545_v61 = vrot.slane %v544_v54, 1  ;;  %v551_v62 = vmax.f32 %v549_v47, %v550_v55  ;;  %v532_v3 = vmax.f32 %v530_v44, %v531_v52  ;;  %v585_v44 = vld [vmem:[#allocation10 + $0x38] sm:$0xff]  ;;  %v582_v52 = vld [vmem:[#allocation10 + $0x20] sm:$0xff]  ;;  %v587_v55 = vld [vmem:[#allocation10 + $0x48] sm:$0xff] }
 0x1ac   :  { %v509_v0 = vmax.f32 %v507_v49, %v508_v56  ;;  %v516_v1 = vmax.f32 %v514_v50, %v515_v57  ;;  %v522_v2 = vrot.slane %v521_v58, 2  ;;  %v504_v14 = vmax.f32 %v502_v48, %v503_v63  ;;  %v589_v56 = vld [vmem:[#allocation10 + $0x58] sm:$0xff] }
 0x1ad   :  { %v539_v4 = vmax.f32 %v537_v53, %v538_v60  ;;  %v546_v6 = vmax.f32 %v544_v54, %v545_v61  ;;  %v552_v7 = vrot.slane %v551_v62, 1  ;;  %v4375_v48 = vpack.c.bf16 %v580_v39, %v578_v38  ;;  %v584_v53 = vld [vmem:[#allocation10 + $0x30] sm:$0xff]  ;;  %v586_v60 = vld [vmem:[#allocation10 + $0x40] sm:$0xff]  ;;  %v593_v63 = vld [vmem:[#allocation10 + $0x78] sm:$0xff] }
 0x1ae   :  { %v510_v9 = vrot.slane %v509_v0, 1  ;;  %v517_v10 = vrot.slane %v516_v1, 1  ;;  %v523_v11 = vmax.f32 %v521_v58, %v522_v2  ;;  %v4377_v51 = vpack.c.bf16 %v585_v44, %v583_v43  ;;  %v588_v61 = vld [vmem:[#allocation10 + $0x50] sm:$0xff]  ;;  %v590_v2 = vld [vmem:[#allocation10 + $0x60] sm:$0xff]  ;;  %v820_v39 = vld [vmem:[#allocation10 + $0x228] sm:$0xff] }
 0x1af   :  { %v553_v12 = vmax.f32 %v551_v62, %v552_v7  ;;  %v568_v13 = vsel %vm562_vm5, %v539_v4, %v532_v3  ;;  %v4379_v57 = vpack.c.bf16 %v584_v53, %v582_v52  ;;  %v4381_v58 = vpack.c.bf16 %v589_v56, %v587_v55  ;;  %v591_v62 = vld [vmem:[#allocation10 + $0x68] sm:$0xff]  ;;  %v592_v3 = vld [vmem:[#allocation10 + $0x70] sm:$0xff]  ;;  %v819_v44 = vld [vmem:[#allocation10 + $0x220] sm:$0xff] }
 0x1b0   :  { %v569_v15 = vsel %vm564_vm6, %v546_v6, %v568_v13  ;;  %v511_v16 = vmax.f32 %v509_v0, %v510_v9  ;;  %v518_v17 = vmax.f32 %v516_v1, %v517_v10  ;;  %v524_v18 = vrot.slane %v523_v11, 1  ;;  %v595_v4 = vld [vmem:[#allocation10 + $0x88] sm:$0xff]  ;;  %v597_v6 = vld [vmem:[#allocation10 + $0x98] sm:$0xff]  ;;  %v594_v10 = vld [vmem:[#allocation10 + $0x80] sm:$0xff] }
 0x1b1   :  { %v570_v19 = vsel %vm566_vm7, %v553_v12, %v569_v15  ;;  %v4383_v0 = vpack.c.bf16 %v588_v61, %v586_v60  ;;  %v4385_v1 = vpack.c.bf16 %v593_v63, %v591_v62  ;;  %v4387_v7 = vpack.c.bf16 %v592_v3, %v590_v2  ;;  %v599_v12 = vld [vmem:[#allocation10 + $0xa8] sm:$0xff]  ;;  %v601_v13 = vld [vmem:[#allocation10 + $0xb8] sm:$0xff]  ;;  %v817_v38 = vld [vmem:[#allocation10 + $0x210] sm:$0xff] }
 0x1b2   :  { %v525_v20 = vmax.f32 %v523_v11, %v524_v18  ;;  %v563_v21 = vsel %vm562_vm5, %v511_v16, %v504_v14  ;;  %v574_v22 = vsel %vm174_vm0, 0.0, %v570_v19  ;;  %v4389_v9 = vpack.c.bf16 %v597_v6, %v595_v4  ;;  %v596_v11 = vld [vmem:[#allocation10 + $0x90] sm:$0xff]  ;;  %v598_v16 = vld [vmem:[#allocation10 + $0xa0] sm:$0xff]  ;;  %v603_v18 = vld [vmem:[#allocation10 + $0xc8] sm:$0xff] }
 0x1b3   :  { %v565_v23 = vsel %vm564_vm6, %v518_v17, %v563_v21  ;;  %v6098_v24 = vsel %vm575_vm8, %v574_v22, 0.0  ;;  %v4391_v14 = vpack.c.bf16 %v596_v11, %v594_v10  ;;  %v4393_v15 = vpack.c.bf16 %v601_v13, %v599_v12  ;;  %v600_v17 = vld [vmem:[#allocation10 + $0xb0] sm:$0xff]  ;;  %v605_v19 = vld [vmem:[#allocation10 + $0xd8] sm:$0xff]  ;;  %v602_v22 = vld [vmem:[#allocation10 + $0xc0] sm:$0xff] }
 0x1b4   :  { %v567_v25 = vsel %vm566_vm7, %v525_v20, %v565_v23  ;;  %v613_v26 = vcombine.high %v6098_v24, %v6098_v24  ;;  %v4271_v32 = vrot.slane %v6098_v24, 10  ;;  %v4269_v35 = vrot.slane %v6098_v24, 9  ;;  %v604_v23 = vld [vmem:[#allocation10 + $0xd0] sm:$0xff]  ;;  %v828_v53 = vld [vmem:[#allocation10 + $0x268] sm:$0xff]  ;;  %v830_v55 = vld [vmem:[#allocation10 + $0x278] sm:$0xff] }
 0x1b5   :  { %v573_v27 = vsel %vm174_vm0, 0.0, %v567_v25  ;;  %v4395_v20 = vpack.c.bf16 %v600_v17, %v598_v16  ;;  %v4397_v21 = vpack.c.bf16 %v605_v19, %v603_v18  ;;  %v607_v25 = vld [vmem:[#allocation10 + $0xe8] sm:$0xff]  ;;  %v825_v52 = vld [vmem:[#allocation10 + $0x250] sm:$0xff]  ;;  %v834_v62 = vld [vmem:[#allocation10 + $0x298] sm:$0xff] }
 0x1b6   :  { %v6110_v29 = vsel %vm575_vm8, %v573_v27, 0.0  ;;  %v623_v31 = vrot.slane %v613_v26, 5  ;;  %v812_v33 = vrot.slane %v613_v26, 6  ;;  %v609_v26 = vld [vmem:[#allocation10 + $0xf8] sm:$0xff]  ;;  %v4399_v27 = vpack.c.bf16 %v604_v23, %v602_v22  ;;  %v829_v60 = vld [vmem:[#allocation10 + $0x270] sm:$0xff]  ;;  %v832_v61 = vld [vmem:[#allocation10 + $0x288] sm:$0xff] }
 0x1b7   :  { %v612_v34 = vcombine.high %v6110_v29, %v6110_v29  ;;  %v731_v36 = vcombine.low %v6110_v29, %v6098_v24  ;;  %v4268_v37 = vrot.slane %v6110_v29, 9  ;;  %v4270_v45 = vrot.slane %v6110_v29, 10  ;;  %v833_v63 = vld [vmem:[#allocation10 + $0x290] sm:$0xff]  ;;  %v835_v4 = vld [vmem:[#allocation10 + $0x2a0] sm:$0xff] }
 0x1b8   :  { %v6125_v40 = vsel %vm6105_vm12, %v4271_v32, %v812_v33  ;;  %v624_v42 = vsel %vm6112_vm13, %v4269_v35, %v623_v31  ;;  %v4401_v28 = vpack.c.bf16 %v609_v26, %v607_v25  ;;  %v608_v31 = vld [vmem:[#allocation10 + $0xf0] sm:$0xff]  ;;  %v816_v32 = vld [vmem:[#allocation10 + $0x208] sm:$0xff]  ;;  %v818_v33 = vld [vmem:[#allocation10 + $0x218] sm:$0xff]  ;;  %v4421_v29 = vpack.c.bf16 %v834_v62, %v832_v61 }
 0x1b9   :  { %v619_v41 = vrot.slane %v612_v34, 5  ;;  %v808_v46 = vrot.slane %v612_v34, 6  ;;  %v4403_v34 = vpack.c.bf16 %v608_v31, %v606_v30  ;;  %v4405_v35 = vpack.c.bf16 %v818_v33, %v816_v32  ;;  %v837_v6 = vld [vmem:[#allocation10 + $0x2b0] sm:$0xff]  ;;  %v839_v12 = vld [vmem:[#allocation10 + $0x2c0] sm:$0xff] }
 0x1ba   :  { %v4427_v10 = vpack.c.bf16 %v837_v6, %v835_v4  ;;  %v841_v13 = vld [vmem:[#allocation10 + $0x2d0] sm:$0xff]  ;;  %v843_v18 = vld [vmem:[#allocation10 + $0x2e0] sm:$0xff] }
 0x1bb   :  { %v620_v47 = vsel %vm6112_vm13, %v4268_v37, %v619_v41  ;;  %v6134_v49 = vsel %vm6105_vm12, %v4270_v45, %v808_v46  ;;  %v815_v37 = vld [vmem:[#allocation10 + $0x200] sm:$0xff]  ;;  %v822_v41 = vld [vmem:[#allocation10 + $0x238] sm:$0xff]  ;;  %v821_v45 = vld [vmem:[#allocation10 + $0x230] sm:$0xff]  ;;  %v4431_v16 = vpack.c.bf16 %v841_v13, %v839_v12 }
 0x1bc   :  { %v658_v50 = vcombine.low %v620_v47, %v624_v42  ;;  %v847_v54 = vcombine.low %v6134_v49, %v6125_v40  ;;  %v4407_v42 = vpack.c.bf16 %v817_v38, %v815_v37  ;;  %v4409_v43 = vpack.c.bf16 %v822_v41, %v820_v39  ;;  %v824_v46 = vld [vmem:[#allocation10 + $0x248] sm:$0xff]  ;;  %v826_v47 = vld [vmem:[#allocation10 + $0x258] sm:$0xff]  ;;  %v845_v19 = vld [vmem:[#allocation10 + $0x2f0] sm:$0xff] }
 0x1bd   :  { %v4435_v22 = vpack.c.bf16 %v845_v19, %v843_v18  ;;  %v1058_v25 = vld [vmem:[#allocation13 + $0x20] sm:$0xff]  ;;  %v1163_v61 = vld [vmem:[#allocation13 + $0x368] sm:$0xff] }
 0x1be   :  { %725 = vmatmul.mubr.f32.vlgmr.msra.gmra.mrb[2].mxu1 %v658_v50  ;;  %v4413_v50 = vpack.c.bf16 %v826_v47, %v824_v46  ;;  %v1066_v26 = vld [vmem:[#allocation13 + $0x60] sm:$0xff]  ;;  %v1187_v13 = vld [vmem:[#allocation13 + $0x428] sm:$0xff] }
 0x1bf   :  { %4376 = vmatpush1.bf16.msra.mxu1 %v4375_v48  ;;  %797 = vmatprep.mubr.f32.mxu1 %v6898_v5  ;;  %v4411_v48 = vpack.c.bf16 %v821_v45, %v819_v44  ;;  %v4567_v30 = vpack.c.bf16 %v1066_v26, %v1058_v25  ;;  %v1074_v32 = vld [vmem:[#allocation13 + $0xa0] sm:$0xff]  ;;  %v1203_v26 = vld [vmem:[#allocation13 + $0x4a8] sm:$0xff] }
 0x1c0   :  { %4378 = vmatprep.subr.bf16.mxu1 %v4377_v51  ;;  %v823_v51 = vld [vmem:[#allocation10 + $0x240] sm:$0xff] }
 0x1c1   :  { %v4415_v56 = vpack.c.bf16 %v825_v52, %v823_v51  ;;  %v1082_v33 = vld [vmem:[#allocation13 + $0xe0] sm:$0xff]  ;;  %v1139_v52 = vld [vmem:[#allocation13 + $0x2a8] sm:$0xff] }
 0x1c2   :  { %v4571_v37 = vpack.c.bf16 %v1082_v33, %v1074_v32  ;;  %v1090_v39 = vld [vmem:[#allocation13 + $0x120] sm:$0xff] }
 0x1c3   :  { %4380 = vmatpush1.bf16.msra.mxu1 %v4379_v57  ;;  %v4417_v57 = vpack.c.bf16 %v830_v55, %v828_v53  ;;  %v1098_v41 = vld [vmem:[#allocation13 + $0x160] sm:$0xff]  ;;  %v1147_v53 = vld [vmem:[#allocation13 + $0x2e8] sm:$0xff] }
 0x1c4   :  { %4382 = vmatprep.subr.bf16.mxu1 %v4381_v58  ;;  %v827_v58 = vld [vmem:[#allocation10 + $0x260] sm:$0xff]  ;;  %v4575_v44 = vpack.c.bf16 %v1098_v41, %v1090_v39  ;;  %v1219_v41 = vld [vmem:[#allocation13 + $0x528] sm:$0xff] }
 0x1c5   :  { %v4419_v24 = vpack.c.bf16 %v829_v60, %v827_v58  ;;  %v1106_v46 = vld [vmem:[#allocation13 + $0x1a0] sm:$0xff]  ;;  %v1155_v60 = vld [vmem:[#allocation13 + $0x328] sm:$0xff] }
 0x1c6   :  { %v1114_v47 = vld [vmem:[#allocation13 + $0x1e0] sm:$0xff] }
 0x1c7   :  { %4384 = vmatpush1.bf16.msra.mxu1 %v4383_v0  ;;  %v836_v0 = vld [vmem:[#allocation10 + $0x2a8] sm:$0xff]  ;;  %v4579_v51 = vpack.c.bf16 %v1114_v47, %v1106_v46 }
 0x1c8   :  { %4386 = vmatprep.subr.bf16.mxu1 %v4385_v1  ;;  %v838_v1 = vld [vmem:[#allocation10 + $0x2b8] sm:$0xff]  ;;  %v1122_v49 = vld [vmem:[#allocation13 + $0x220] sm:$0xff] }
 0x1c9   :  { %v4425_v3 = vpack.c.bf16 %v838_v1, %v836_v0  ;;  %v1146_v58 = vld [vmem:[#allocation13 + $0x2e0] sm:$0xff]  ;;  %v1179_v0 = vld [vmem:[#allocation13 + $0x3e8] sm:$0xff] }
 0x1ca   :  { %v1178_v4 = vld [vmem:[#allocation13 + $0x3e0] sm:$0xff] }
 0x1cb   :  { %4388 = vmatpush1.bf16.msra.mxu1 %v4387_v7  ;;  %v840_v7 = vld [vmem:[#allocation10 + $0x2c8] sm:$0xff] }
 0x1cc   :  { %4390 = vmatprep.subr.bf16.mxu1 %v4389_v9  ;;  %v842_v9 = vld [vmem:[#allocation10 + $0x2d8] sm:$0xff]  ;;  %v1190_v12 = vld [vmem:[#allocation13 + $0x440] sm:$0xff] }
 0x1cd   :  { %v4429_v11 = vpack.c.bf16 %v842_v9, %v840_v7  ;;  %v1183_v7 = vld [vmem:[#allocation13 + $0x408] sm:$0xff]  ;;  %v1206_v25 = vld [vmem:[#allocation13 + $0x4c0] sm:$0xff] }
 0x1ce   :  { %v1191_v9 = vld [vmem:[#allocation13 + $0x448] sm:$0xff]  ;;  %v1222_v39 = vld [vmem:[#allocation13 + $0x540] sm:$0xff] }
 0x1cf   :  { %4392 = vmatpush1.bf16.msra.mxu1 %v4391_v14  ;;  %v844_v14 = vld [vmem:[#allocation10 + $0x2e8] sm:$0xff] }
 0x1d0   :  { %4394 = vmatprep.subr.bf16.mxu1 %v4393_v15  ;;  %v846_v15 = vld [vmem:[#allocation10 + $0x2f8] sm:$0xff] }
 0x1d1   :  { %v4433_v17 = vpack.c.bf16 %v846_v15, %v844_v14  ;;  %v1195_v15 = vld [vmem:[#allocation13 + $0x468] sm:$0xff] }
 0x1d2   :  { %v4597_v18 = vpack.c.bf16 %v1195_v15, %v1187_v13  ;;  %v1266_v15 = vld [vmem:[#allocation13 + $0x6a0] sm:$0xff] }
 0x1d3   :  { %4396 = vmatpush1.bf16.msra.mxu1 %v4395_v20  ;;  %v1059_v20 = vld [vmem:[#allocation13 + $0x28] sm:$0xff] }
 0x1d4   :  { %4398 = vmatprep.subr.bf16.mxu1 %v4397_v21  ;;  %v1067_v21 = vld [vmem:[#allocation13 + $0x68] sm:$0xff] }
 0x1d5   :  { %v4565_v23 = vpack.c.bf16 %v1067_v21, %v1059_v20  ;;  %v1199_v20 = vld [vmem:[#allocation13 + $0x488] sm:$0xff] }
 0x1d6   :  { %v1207_v21 = vld [vmem:[#allocation13 + $0x4c8] sm:$0xff] }
 0x1d7   :  { %4400 = vmatpush1.bf16.msra.mxu1 %v4399_v27  ;;  %v1075_v27 = vld [vmem:[#allocation13 + $0xa8] sm:$0xff] }
 0x1d8   :  { %4402 = vmatprep.subr.bf16.mxu1 %v4401_v28  ;;  %v1083_v28 = vld [vmem:[#allocation13 + $0xe8] sm:$0xff] }
 0x1d9   :  { %v4569_v31 = vpack.c.bf16 %v1083_v28, %v1075_v27  ;;  %v1211_v28 = vld [vmem:[#allocation13 + $0x4e8] sm:$0xff] }
 0x1da   :  { %v4601_v32 = vpack.c.bf16 %v1211_v28, %v1203_v26  ;;  %v1291_v26 = vld [vmem:[#allocation13 + $0x768] sm:$0xff] }
 0x1db   :  { %4404 = vmatpush1.bf16.msra.mxu1 %v4403_v34  ;;  %v1091_v34 = vld [vmem:[#allocation13 + $0x128] sm:$0xff] }
 0x1dc   :  { %4406 = vmatprep.subr.bf16.mxu1 %v4405_v35  ;;  %v1099_v35 = vld [vmem:[#allocation13 + $0x168] sm:$0xff] }
 0x1dd   :  { %v4573_v38 = vpack.c.bf16 %v1099_v35, %v1091_v34  ;;  %v1215_v34 = vld [vmem:[#allocation13 + $0x508] sm:$0xff] }
 0x1de   :  { %798 = vmatmul.mubr.f32.vlgmr.msra.gmra.mrb[2].mxu1 %v731_v36  ;;  %v831_v36 = vld [vmem:[#allocation10 + $0x280] sm:$0xff]  ;;  %v1223_v35 = vld [vmem:[#allocation13 + $0x548] sm:$0xff] }
 0x1df   :  { %4408 = vmatpush1.bf16.msra.mxu1 %v4407_v42  ;;  %913 = vmatprep.mubr.f32.mxu1 %v6898_v5  ;;  %v4423_v2 = vpack.c.bf16 %v833_v63, %v831_v36  ;;  %v1107_v42 = vld [vmem:[#allocation13 + $0x1a8] sm:$0xff]  ;;  %v1162_v36 = vld [vmem:[#allocation13 + $0x360] sm:$0xff] }
 0x1e0   :  { %4410 = vmatprep.subr.bf16.mxu1 %v4409_v43  ;;  %v1115_v43 = vld [vmem:[#allocation13 + $0x1e8] sm:$0xff] }
 0x1e1   :  { %v4577_v45 = vpack.c.bf16 %v1115_v43, %v1107_v42  ;;  %v1171_v63 = vld [vmem:[#allocation13 + $0x3a8] sm:$0xff] }
 0x1e2   :  { %v1227_v43 = vld [vmem:[#allocation13 + $0x568] sm:$0xff] }
 0x1e3   :  { %4412 = vmatpush1.bf16.msra.mxu1 %v4411_v48  ;;  %v1123_v48 = vld [vmem:[#allocation13 + $0x228] sm:$0xff]  ;;  %v4605_v46 = vpack.c.bf16 %v1227_v43, %v1219_v41 }
 0x1e4   :  { %4414 = vmatprep.subr.bf16.mxu1 %v4413_v50  ;;  %v1131_v50 = vld [vmem:[#allocation13 + $0x268] sm:$0xff] }
 0x1e5   :  { %v4581_v40 = vpack.c.bf16 %v1131_v50, %v1123_v48  ;;  %v1231_v48 = vld [vmem:[#allocation13 + $0x588] sm:$0xff] }
 0x1e6   :  { %v1239_v50 = vld [vmem:[#allocation13 + $0x5c8] sm:$0xff] }
 0x1e7   :  { %4416 = vmatpush1.bf16.msra.mxu1 %v4415_v56  ;;  %v4585_v56 = vpack.c.bf16 %v1147_v53, %v1139_v52  ;;  %v1243_v53 = vld [vmem:[#allocation13 + $0x5e8] sm:$0xff] }
 0x1e8   :  { %4418 = vmatprep.subr.bf16.mxu1 %v4417_v57  ;;  %v1138_v57 = vld [vmem:[#allocation13 + $0x2a0] sm:$0xff]  ;;  %v1307_v41 = vld [vmem:[#allocation13 + $0x7e8] sm:$0xff] }
 0x1e9   :  { %v4587_v62 = vpack.c.bf16 %v1146_v58, %v1138_v57 }
 0x1eb   :  { %4420 = vmatpush1.bf16.msra.mxu1 %v4419_v24  ;;  %v4589_v24 = vpack.c.bf16 %v1163_v61, %v1155_v60  ;;  %v1247_v60 = vld [vmem:[#allocation13 + $0x608] sm:$0xff] }
 0x1ec   :  { %4422 = vmatprep.subr.bf16.mxu1 %v4421_v29  ;;  %v1154_v29 = vld [vmem:[#allocation13 + $0x320] sm:$0xff]  ;;  %v1255_v61 = vld [vmem:[#allocation13 + $0x648] sm:$0xff] }
 0x1ed   :  { %v4591_v1 = vpack.c.bf16 %v1162_v36, %v1154_v29  ;;  %v1254_v29 = vld [vmem:[#allocation13 + $0x640] sm:$0xff]  ;;  %v1251_v36 = vld [vmem:[#allocation13 + $0x628] sm:$0xff] }
 0x1ef   :  { %4424 = vmatpush1.bf16.msra.mxu1 %v4423_v2  ;;  %v4593_v2 = vpack.c.bf16 %v1179_v0, %v1171_v63  ;;  %v1259_v0 = vld [vmem:[#allocation13 + $0x668] sm:$0xff] }
 0x1f0   :  { %4426 = vmatprep.subr.bf16.mxu1 %v4425_v3  ;;  %v1170_v3 = vld [vmem:[#allocation13 + $0x3a0] sm:$0xff] }
 0x1f1   :  { %v4595_v6 = vpack.c.bf16 %v1178_v4, %v1170_v3  ;;  %v4613_v3 = vpack.c.bf16 %v1259_v0, %v1251_v36 }
 0x1f3   :  { %4428 = vmatpush1.bf16.msra.mxu1 %v4427_v10  ;;  %v4469_v10 = vpack.c.bf16 %v1191_v9, %v1183_v7  ;;  %v1271_v7 = vld [vmem:[#allocation13 + $0x6c8] sm:$0xff] }
 0x1f4   :  { %4430 = vmatprep.subr.bf16.mxu1 %v4429_v11  ;;  %v1182_v11 = vld [vmem:[#allocation13 + $0x400] sm:$0xff] }
 0x1f5   :  { %v4471_v14 = vpack.c.bf16 %v1190_v12, %v1182_v11  ;;  %4470 = vmatprep.subr.bf16.mxu0 %v4469_v10  ;;  %v1262_v10 = vld [vmem:[#allocation13 + $0x680] sm:$0xff]  ;;  %v1267_v12 = vld [vmem:[#allocation13 + $0x6a8] sm:$0xff] }
 0x1f6   :  { %v1270_v11 = vld [vmem:[#allocation13 + $0x6c0] sm:$0xff] }
 0x1f7   :  { %4432 = vmatpush1.bf16.msra.mxu1 %v4431_v16  ;;  %v1186_v16 = vld [vmem:[#allocation13 + $0x420] sm:$0xff]  ;;  %4472 = vmatpush1.bf16.msra.mxu0 %v4471_v14  ;;  %v4491_v13 = vpack.c.bf16 %v1270_v11, %v1262_v10  ;;  %v1275_v14 = vld [vmem:[#allocation13 + $0x6e8] sm:$0xff] }
 0x1f8   :  { %4434 = vmatprep.subr.bf16.mxu1 %v4433_v17  ;;  %v1194_v17 = vld [vmem:[#allocation13 + $0x460] sm:$0xff] }
 0x1f9   :  { %v4599_v19 = vpack.c.bf16 %v1194_v17, %v1186_v16  ;;  %v1274_v16 = vld [vmem:[#allocation13 + $0x6e0] sm:$0xff]  ;;  %v4617_v17 = vpack.c.bf16 %v1275_v14, %v1267_v12 }
 0x1fb   :  { %4436 = vmatpush1.bf16.msra.mxu1 %v4435_v22  ;;  %v4473_v22 = vpack.c.bf16 %v1207_v21, %v1199_v20  ;;  %v1287_v20 = vld [vmem:[#allocation13 + $0x748] sm:$0xff]  ;;  %v1278_v21 = vld [vmem:[#allocation13 + $0x700] sm:$0xff] }
 0x1fc   :  { %4566 = vmatprep.subr.bf16.mxu1 %v4565_v23  ;;  %v1198_v23 = vld [vmem:[#allocation13 + $0x480] sm:$0xff] }
 0x1fd   :  { %v4475_v27 = vpack.c.bf16 %v1206_v25, %v1198_v23  ;;  %4474 = vmatprep.subr.bf16.mxu0 %v4473_v22  ;;  %v1286_v23 = vld [vmem:[#allocation13 + $0x740] sm:$0xff]  ;;  %v1283_v25 = vld [vmem:[#allocation13 + $0x728] sm:$0xff] }
 0x1fe   :  { %914 = vmatmul.mubr.f32.vlgmr.msra.gmra.mrb[2].mxu1 %v847_v54  ;;  %v1130_v54 = vld [vmem:[#allocation13 + $0x260] sm:$0xff]  ;;  %v4621_v28 = vpack.c.bf16 %v1291_v26, %v1283_v25 }
 0x1ff   :  { %4568 = vmatpush1.bf16.msra.mxu1 %v4567_v30  ;;  %v4583_v55 = vpack.c.bf16 %v1130_v54, %v1122_v49  ;;  %v1202_v30 = vld [vmem:[#allocation13 + $0x4a0] sm:$0xff]  ;;  %4476 = vmatpush1.bf16.msra.mxu0 %v4475_v27  ;;  %v1235_v54 = vld [vmem:[#allocation13 + $0x5a8] sm:$0xff]  ;;  %v4495_v27 = vpack.c.bf16 %v1286_v23, %v1278_v21 }
 0x200   :  { %4570 = vmatprep.subr.bf16.mxu1 %v4569_v31  ;;  %v1210_v31 = vld [vmem:[#allocation13 + $0x4e0] sm:$0xff]  ;;  %v4609_v57 = vpack.c.bf16 %v1243_v53, %v1235_v54  ;;  %v6150_v54 = vsub.s32 0, %v6074_v59  ;;  %v6153_v53 = vsub.s32 1, %v6074_v59 }
 0x201   :  { %v4603_v33 = vpack.c.bf16 %v1210_v31, %v1202_v30  ;;  %v1238_v49 = vld [vmem:[#allocation13 + $0x5c0] sm:$0xff] }
 0x202   :  { %v1282_v30 = vld [vmem:[#allocation13 + $0x720] sm:$0xff] }
 0x203   :  { %4572 = vmatpush1.bf16.msra.mxu1 %v4571_v37  ;;  %v4477_v37 = vpack.c.bf16 %v1223_v35, %v1215_v34  ;;  %v1290_v31 = vld [vmem:[#allocation13 + $0x760] sm:$0xff]  ;;  %v1303_v34 = vld [vmem:[#allocation13 + $0x7c8] sm:$0xff] }
 0x204   :  { %4574 = vmatprep.subr.bf16.mxu1 %v4573_v38  ;;  %v1214_v38 = vld [vmem:[#allocation13 + $0x500] sm:$0xff] }
 0x205   :  { %v4479_v42 = vpack.c.bf16 %v1222_v39, %v1214_v38  ;;  %4478 = vmatprep.subr.bf16.mxu0 %v4477_v37  ;;  %v1294_v35 = vld [vmem:[#allocation13 + $0x780] sm:$0xff]  ;;  %v1299_v39 = vld [vmem:[#allocation13 + $0x7a8] sm:$0xff] }
 0x206   :  { %v1302_v37 = vld [vmem:[#allocation13 + $0x7c0] sm:$0xff] }
 0x207   :  { %4576 = vmatpush1.bf16.msra.mxu1 %v4575_v44  ;;  %v1218_v44 = vld [vmem:[#allocation13 + $0x520] sm:$0xff]  ;;  %4480 = vmatpush1.bf16.msra.mxu0 %v4479_v42  ;;  %v4499_v43 = vpack.c.bf16 %v1302_v37, %v1294_v35 }
 0x208   :  { %4578 = vmatprep.subr.bf16.mxu1 %v4577_v45  ;;  %v1226_v45 = vld [vmem:[#allocation13 + $0x560] sm:$0xff] }
 0x209   :  { %v4607_v47 = vpack.c.bf16 %v1226_v45, %v1218_v44  ;;  %v1298_v42 = vld [vmem:[#allocation13 + $0x7a0] sm:$0xff]  ;;  %v4625_v44 = vpack.c.bf16 %v1307_v41, %v1299_v39 }
 0x20a   :  { %v1306_v45 = vld [vmem:[#allocation13 + $0x7e0] sm:$0xff] }
 0x20b   :  { %4580 = vmatpush1.bf16.msra.mxu1 %v4579_v51  ;;  %v4481_v51 = vpack.c.bf16 %v1239_v50, %v1231_v48  ;;  %v1065_v48 = vld [vmem:[#allocation13 + $0x58] sm:$0xff] }
 0x20c   :  { %4582 = vmatprep.subr.bf16.mxu1 %v4581_v40  ;;  %v1230_v40 = vld [vmem:[#allocation13 + $0x580] sm:$0xff] }
 0x20d   :  { %v4483_v52 = vpack.c.bf16 %v1238_v49, %v1230_v40  ;;  %4482 = vmatprep.subr.bf16.mxu0 %v4481_v51  ;;  %v1712_v51 = vld [vmem:[#allocation15 + $0x8] sm:$0xff] }
 0x20e   :  { %v1716_v40 = vld [vmem:[#allocation15 + $0x28] sm:$0xff] }
 0x20f   :  { %4584 = vmatpush1.bf16.msra.mxu1 %v4583_v55  ;;  %v1234_v55 = vld [vmem:[#allocation13 + $0x5a0] sm:$0xff]  ;;  %4484 = vmatpush1.bf16.msra.mxu0 %v4483_v52  ;;  %v6146_v49 = vpack.c.bf16 %v1716_v40, %v1712_v51  ;;  %v922_v52 = vld [vmem:[#allocation12] sm:$0x3] }
 0x210   :  { %4586 = vmatprep.subr.bf16.mxu1 %v4585_v56  ;;  %v1242_v56 = vld [vmem:[#allocation13 + $0x5e0] sm:$0xff] }
 0x211   :  { %v4611_v58 = vpack.c.bf16 %v1242_v56, %v1234_v55  ;;  %v927_v55 = vrot.slane %v922_v52, %v6150_v54  ;;  %v931_v56 = vrot.slane %v922_v52, %v6153_v53 }
 0x213   :  { %4588 = vmatpush1.bf16.msra.mxu1 %v4587_v62  ;;  %v4485_v62 = vpack.c.bf16 %v1255_v61, %v1247_v60 }
 0x214   :  { %4590 = vmatprep.subr.bf16.mxu1 %v4589_v24  ;;  %v1246_v24 = vld [vmem:[#allocation13 + $0x600] sm:$0xff] }
 0x215   :  { %v4487_v63 = vpack.c.bf16 %v1254_v29, %v1246_v24  ;;  %4486 = vmatprep.subr.bf16.mxu0 %v4485_v62 }
 0x217   :  { %4592 = vmatpush1.bf16.msra.mxu1 %v4591_v1  ;;  %v1250_v1 = vld [vmem:[#allocation13 + $0x620] sm:$0xff]  ;;  %4488 = vmatpush1.bf16.msra.mxu0 %v4487_v63 }
 0x218   :  { %4594 = vmatprep.subr.bf16.mxu1 %v4593_v2  ;;  %v1258_v2 = vld [vmem:[#allocation13 + $0x660] sm:$0xff] }
 0x219   :  { %v4615_v4 = vpack.c.bf16 %v1258_v2, %v1250_v1 }
 0x21b   :  { %4596 = vmatpush1.bf16.msra.mxu1 %v4595_v6  ;;  %v1263_v6 = vld [vmem:[#allocation13 + $0x688] sm:$0xff] }
 0x21c   :  { %4598 = vmatprep.subr.bf16.mxu1 %v4597_v18  ;;  %v4489_v9 = vpack.c.bf16 %v1271_v7, %v1263_v6  ;;  %v4619_v18 = vpack.c.bf16 %v1274_v16, %v1266_v15 }
 0x21e   :  { %4490 = vmatprep.subr.bf16.mxu0 %v4489_v9 }
 0x21f   :  { %4600 = vmatpush1.bf16.msra.mxu1 %v4599_v19  ;;  %v1279_v19 = vld [vmem:[#allocation13 + $0x708] sm:$0xff]  ;;  %4492 = vmatpush1.bf16.msra.mxu0 %v4491_v13 }
 0x220   :  { %4602 = vmatprep.subr.bf16.mxu1 %v4601_v32  ;;  %v4493_v22 = vpack.c.bf16 %v1287_v20, %v1279_v19  ;;  %v1295_v32 = vld [vmem:[#allocation13 + $0x788] sm:$0xff] }
 0x221   :  { %v4497_v38 = vpack.c.bf16 %v1303_v34, %v1295_v32 }
 0x222   :  { %4494 = vmatprep.subr.bf16.mxu0 %v4493_v22 }
 0x223   :  { %4604 = vmatpush1.bf16.msra.mxu1 %v4603_v33  ;;  %v4623_v33 = vpack.c.bf16 %v1290_v31, %v1282_v30  ;;  %4496 = vmatpush1.bf16.msra.mxu0 %v4495_v27 }
 0x224   :  { %4606 = vmatprep.subr.bf16.mxu1 %v4605_v46  ;;  %4498 = vmatprep.subr.bf16.mxu0 %v4497_v38  ;;  %v4627_v46 = vpack.c.bf16 %v1306_v45, %v1298_v42 }
 0x227   :  { %4608 = vmatpush1.bf16.msra.mxu1 %v4607_v47  ;;  %4500 = vmatpush1.bf16.msra.mxu0 %v4499_v43  ;;  %v1057_v47 = vld [vmem:[#allocation13 + $0x18] sm:$0xff] }
 0x228   :  { %4610 = vmatprep.subr.bf16.mxu1 %v4609_v57  ;;  %v4501_v50 = vpack.c.bf16 %v1065_v48, %v1057_v47 }
 0x22a   :  { %4502 = vmatprep.subr.bf16.mxu0 %v4501_v50 }
 0x22b   :  { %4612 = vmatpush1.bf16.msra.mxu1 %v4611_v58 }
 0x22c   :  { %4614 = vmatprep.subr.bf16.mxu1 %v4613_v3 }
 0x22f   :  { %4616 = vmatpush1.bf16.msra.mxu1 %v4615_v4 }
 0x230   :  { %4618 = vmatprep.subr.bf16.mxu1 %v4617_v17 }
 0x233   :  { %4620 = vmatpush1.bf16.msra.mxu1 %v4619_v18 }
 0x234   :  { %4622 = vmatprep.subr.bf16.mxu1 %v4621_v28 }
 0x237   :  { %4624 = vmatpush1.bf16.msra.mxu1 %v4623_v33 }
 0x238   :  { %4626 = vmatprep.subr.bf16.mxu1 %v4625_v44 }
 0x23b   :  { %4628 = vmatpush1.bf16.msra.mxu1 %v4627_v46 }
 0x23c   :  { %4694 = vmatprep.subr.bf16.mxu1 %v6146_v49 }
 0x2d1   :  { %v915_v57 = vpop.f32.mrb[2].mxu1 }
 0x2d2   :  { %v934_v58 = vadd.f32 %v927_v55, %v915_v57  ;;  %v917_v60 = vpop.f32.mrb[3].mxu1 }
 0x2d3   :  { %v935_v61 = vadd.f32 %v931_v56, %v917_v60 }
 0x2d4   :  { %v936_v62 = vmax.f32 %v934_v58, 0.0 }
 0x2d5   :  { %v937_v24 = vmax.f32 %v935_v61, 0.0 }
 0x2d7   :  { %v940_v29 = vcombine.low %v936_v62, %v937_v24  ;;  %v941_v36 = vcombine.high %v936_v62, %v937_v24 }
 0x2d9   :  { %v948_v63 = vrot.slane %v940_v29, %v6077_v8  ;;  %v955_v0 = vrot.slane %v941_v36, %v6077_v8 }
 0x2db   :  { %v956_v1 = vcombine.high %v948_v63, %v948_v63  ;;  %v957_v2 = vcombine.high %v955_v0, %v955_v0  ;;  %v964_v3 = vrot.slane %v948_v63, %v6077_v8  ;;  %v980_v4 = vrot.slane %v955_v0, %v6077_v8 }
 0x2dd   :  { %v965_v6 = vcombine.high %v964_v3, %v964_v3  ;;  %v972_v7 = vrot.slane %v956_v1, %v6077_v8  ;;  %v981_v9 = vcombine.high %v980_v4, %v980_v4  ;;  %v988_v10 = vrot.slane %v957_v2, %v6077_v8 }
 0x2de   :  { %v998_v11 = vsel %vm497_vm4, %v964_v3, -inf  ;;  %v1026_v12 = vsel %vm497_vm4, %v980_v4, -inf }
 0x2df   :  { %v973_v13 = vcombine.high %v972_v7, %v972_v7  ;;  %v989_v14 = vcombine.high %v988_v10, %v988_v10  ;;  %v999_v15 = vrot.slane %v998_v11, 4  ;;  %v1005_v16 = vsel %vm497_vm4, %v965_v6, -inf }
 0x2e0   :  { %v1006_v17 = vrot.slane %v1005_v16, 4  ;;  %v1012_v18 = vsel %vm497_vm4, %v972_v7, -inf  ;;  %v1027_v19 = vrot.slane %v1026_v12, 4  ;;  %v1033_v20 = vsel %vm497_vm4, %v981_v9, -inf }
 0x2e1   :  { %v1000_v21 = vmax.f32 %v998_v11, %v999_v15  ;;  %v1013_v22 = vrot.slane %v1012_v18, 4  ;;  %v1019_v23 = vsel %vm497_vm4, %v973_v13, -inf  ;;  %v1034_v25 = vrot.slane %v1033_v20, 4 }
 0x2e2   :  { %v1007_v26 = vmax.f32 %v1005_v16, %v1006_v17  ;;  %v1020_v27 = vrot.slane %v1019_v23, 4  ;;  %v1028_v28 = vmax.f32 %v1026_v12, %v1027_v19  ;;  %v1040_v30 = vsel %vm497_vm4, %v988_v10, -inf }
 0x2e3   :  { %v1001_v31 = vrot.slane %v1000_v21, 2  ;;  %v1014_v32 = vmax.f32 %v1012_v18, %v1013_v22  ;;  %v1035_v33 = vmax.f32 %v1033_v20, %v1034_v25  ;;  %v1041_v34 = vrot.slane %v1040_v30, 4  ;;  %v1056_v20 = vld [vmem:[#allocation13 + $0x10] sm:$0xff]  ;;  %v1711_v22 = vld [vmem:[#allocation15] sm:$0xff] }
 0x2e4   :  { %v1008_v35 = vrot.slane %v1007_v26, 2  ;;  %v1021_v37 = vmax.f32 %v1019_v23, %v1020_v27  ;;  %v1029_v38 = vrot.slane %v1028_v28, 2  ;;  %v1047_v39 = vsel %vm497_vm4, %v989_v14, -inf  ;;  %v1715_v25 = vld [vmem:[#allocation15 + $0x20] sm:$0xff]  ;;  %v1081_v27 = vld [vmem:[#allocation13 + $0xd8] sm:$0xff] }
 0x2e5   :  { %v1002_v41 = vmax.f32 %v1000_v21, %v1001_v31  ;;  %v1015_v42 = vrot.slane %v1014_v32, 2  ;;  %v1036_v43 = vrot.slane %v1035_v33, 2  ;;  %v1042_v44 = vmax.f32 %v1040_v30, %v1041_v34  ;;  %v1064_v21 = vld [vmem:[#allocation13 + $0x50] sm:$0xff]  ;;  %v1720_v30 = vld [vmem:[#allocation15 + $0x48] sm:$0xff] }
 0x2e6   :  { %v1009_v45 = vmax.f32 %v1007_v26, %v1008_v35  ;;  %v1030_v46 = vmax.f32 %v1028_v28, %v1029_v38  ;;  %v1048_v47 = vrot.slane %v1047_v39, 4  ;;  %v1022_v48 = vrot.slane %v1021_v37, 2  ;;  %v1073_v26 = vld [vmem:[#allocation13 + $0x98] sm:$0xff]  ;;  %v1724_v31 = vld [vmem:[#allocation15 + $0x68] sm:$0xff]  ;;  %v1080_v38 = vld [vmem:[#allocation13 + $0xd0] sm:$0xff] }
 0x2e7   :  { %v1037_v50 = vmax.f32 %v1035_v33, %v1036_v43  ;;  %v1016_v51 = vmax.f32 %v1014_v32, %v1015_v42  ;;  %v1043_v40 = vrot.slane %v1042_v44, 2  ;;  %v1003_v52 = vrot.slane %v1002_v41, 1  ;;  %v1723_v42 = vld [vmem:[#allocation15 + $0x60] sm:$0xff]  ;;  %v1089_v43 = vld [vmem:[#allocation13 + $0x118] sm:$0xff] }
 0x2e8   :  { %v1031_v55 = vrot.slane %v1030_v46, 1  ;;  %v1023_v56 = vmax.f32 %v1021_v37, %v1022_v48  ;;  %v1049_v57 = vmax.f32 %v1047_v39, %v1048_v47  ;;  %v1010_v58 = vrot.slane %v1009_v45, 1  ;;  %v1072_v37 = vld [vmem:[#allocation13 + $0x90] sm:$0xff]  ;;  %v1719_v39 = vld [vmem:[#allocation15 + $0x40] sm:$0xff] }
 0x2e9   :  { %v1038_v60 = vrot.slane %v1037_v50, 1  ;;  %v1017_v61 = vrot.slane %v1016_v51, 1  ;;  %v1044_v62 = vmax.f32 %v1042_v44, %v1043_v40  ;;  %v1004_v4 = vmax.f32 %v1002_v41, %v1003_v52  ;;  %v1097_v44 = vld [vmem:[#allocation13 + $0x158] sm:$0xff]  ;;  %v1096_v40 = vld [vmem:[#allocation13 + $0x150] sm:$0xff]  ;;  %v1727_v52 = vld [vmem:[#allocation15 + $0x80] sm:$0xff] }
 0x2ea   :  { %v1024_v24 = vrot.slane %v1023_v56, 1  ;;  %v1050_v29 = vrot.slane %v1049_v57, 2  ;;  %v1032_v36 = vmax.f32 %v1030_v46, %v1031_v55  ;;  %v1011_v7 = vmax.f32 %v1009_v45, %v1010_v58  ;;  %v1728_v45 = vld [vmem:[#allocation15 + $0x88] sm:$0xff]  ;;  %v1113_v58 = vld [vmem:[#allocation13 + $0x1d8] sm:$0xff] }
 0x2eb   :  { %v1039_v63 = vmax.f32 %v1037_v50, %v1038_v60  ;;  %v1018_v0 = vmax.f32 %v1016_v51, %v1017_v61  ;;  %v1045_v1 = vrot.slane %v1044_v62, 1  ;;  %v4503_v32 = vpack.c.bf16 %v1064_v21, %v1056_v20  ;;  %v1732_v46 = vld [vmem:[#allocation15 + $0xa8] sm:$0xff]  ;;  %v1088_v51 = vld [vmem:[#allocation13 + $0x110] sm:$0xff] }
 0x2ec   :  { %v1025_v2 = vmax.f32 %v1023_v56, %v1024_v24  ;;  %v1051_v3 = vmax.f32 %v1049_v57, %v1050_v29  ;;  %v1360_v6 = vrot.slane %v1032_v36, 7  ;;  %v6179_v34 = vpack.c.bf16 %v1715_v25, %v1711_v22  ;;  %v1731_v56 = vld [vmem:[#allocation15 + $0xa0] sm:$0xff]  ;;  %v1105_v57 = vld [vmem:[#allocation13 + $0x198] sm:$0xff]  ;;  %v1736_v60 = vld [vmem:[#allocation15 + $0xc8] sm:$0xff] }
 0x2ed   :  { %v1367_v9 = vrot.slane %v1039_v63, 7  ;;  %v1046_v10 = vmax.f32 %v1044_v62, %v1045_v1  ;;  %v1363_v11 = vrot.slane %v1018_v0, 6  ;;  %v4505_v35 = vpack.c.bf16 %v1081_v27, %v1073_v26  ;;  %v1740_v61 = vld [vmem:[#allocation15 + $0xe8] sm:$0xff]  ;;  %v1104_v36 = vld [vmem:[#allocation13 + $0x190] sm:$0xff]  ;;  %v1735_v0 = vld [vmem:[#allocation15 + $0xc0] sm:$0xff] }
 0x2ee   :  { %v1052_v12 = vrot.slane %v1051_v3, 1  ;;  %v1369_v13 = vrot.slane %v1025_v2, 6  ;;  %v1362_v14 = vsel %vm1361_vm14, %v1360_v6, %v1004_v4  ;;  %v6183_v41 = vpack.c.bf16 %v1724_v31, %v1720_v30  ;;  %v1112_v63 = vld [vmem:[#allocation13 + $0x1d0] sm:$0xff]  ;;  %v1739_v2 = vld [vmem:[#allocation15 + $0xe0] sm:$0xff]  ;;  %v1129_v4 = vld [vmem:[#allocation13 + $0x258] sm:$0xff] }
 0x2ef   :  { %v1368_v15 = vsel %vm1361_vm14, %v1367_v9, %v1011_v7  ;;  %v1364_v16 = vsel %vm562_vm5, %v1363_v11, %v1362_v14  ;;  %v1365_v17 = vrot.slane %v1046_v10, 5  ;;  %v4507_v47 = vpack.c.bf16 %v1080_v38, %v1072_v37  ;;  %v1744_v6 = vld [vmem:[#allocation15 + $0x108] sm:$0xff]  ;;  %v1743_v14 = vld [vmem:[#allocation15 + $0x100] sm:$0xff]  ;;  %v1136_v26 = vld [vmem:[#allocation13 + $0x290] sm:$0xff] }
 0x2f0   :  { %v1053_v18 = vmax.f32 %v1051_v3, %v1052_v12  ;;  %v1370_v19 = vsel %vm562_vm5, %v1369_v13, %v1368_v15  ;;  %v6189_v48 = vpack.c.bf16 %v1723_v42, %v1719_v39  ;;  %v4509_v50 = vpack.c.bf16 %v1097_v44, %v1089_v43  ;;  %v1121_v3 = vld [vmem:[#allocation13 + $0x218] sm:$0xff]  ;;  %v1748_v7 = vld [vmem:[#allocation15 + $0x128] sm:$0xff]  ;;  %v1120_v12 = vld [vmem:[#allocation13 + $0x210] sm:$0xff] }
 0x2f1   :  { %v6174_v23 = vsel %vm564_vm6, %v1365_v17, %v1364_v16  ;;  %v6192_v55 = vpack.c.bf16 %v1732_v46, %v1728_v45  ;;  %v4511_v62 = vpack.c.bf16 %v1096_v40, %v1088_v51  ;;  %v6196_v24 = vpack.c.bf16 %v1731_v56, %v1727_v52  ;;  %v1128_v13 = vld [vmem:[#allocation13 + $0x250] sm:$0xff]  ;;  %v1747_v16 = vld [vmem:[#allocation15 + $0x120] sm:$0xff]  ;;  %v1137_v17 = vld [vmem:[#allocation13 + $0x298] sm:$0xff] }
 0x2f2   :  { %v1371_v28 = vrot.slane %v1053_v18, 5  ;;  %v4513_v29 = vpack.c.bf16 %v1113_v58, %v1105_v57  ;;  %v6199_v1 = vpack.c.bf16 %v1740_v61, %v1736_v60  ;;  %v4515_v9 = vpack.c.bf16 %v1112_v63, %v1104_v36  ;;  %v1145_v18 = vld [vmem:[#allocation13 + $0x2d8] sm:$0xff]  ;;  %v1756_v20 = vld [vmem:[#allocation15 + $0x168] sm:$0xff]  ;;  %v1144_v27 = vld [vmem:[#allocation13 + $0x2d0] sm:$0xff] }
 0x2f3   :  { %v6202_v10 = vpack.c.bf16 %v1739_v2, %v1735_v0  ;;  %v4517_v11 = vpack.c.bf16 %v1129_v4, %v1121_v3  ;;  %v6205_v15 = vpack.c.bf16 %v1748_v7, %v1744_v6  ;;  %v4519_v21 = vpack.c.bf16 %v1128_v13, %v1120_v12  ;;  %v1755_v31 = vld [vmem:[#allocation15 + $0x160] sm:$0xff]  ;;  %v1760_v37 = vld [vmem:[#allocation15 + $0x188] sm:$0xff]  ;;  %v1152_v44 = vld [vmem:[#allocation13 + $0x310] sm:$0xff] }
 0x2f4   :  { %v6177_v33 = vsel %vm564_vm6, %v1371_v28, %v1370_v19  ;;  %v1752_v19 = vld [vmem:[#allocation15 + $0x148] sm:$0xff]  ;;  %v6208_v22 = vpack.c.bf16 %v1747_v16, %v1743_v14  ;;  %v4521_v25 = vpack.c.bf16 %v1145_v18, %v1137_v17  ;;  %v1751_v28 = vld [vmem:[#allocation15 + $0x140] sm:$0xff]  ;;  %v4523_v39 = vpack.c.bf16 %v1144_v27, %v1136_v26  ;;  %v1160_v45 = vld [vmem:[#allocation13 + $0x350] sm:$0xff] }
 0x2f5   :  { %1439 = vmatprep.mubr.f32.mxu0 %v6177_v33  ;;  %1581 = vmatprep.mubr.f32.mxu1 %v6177_v33  ;;  %v6211_v30 = vpack.c.bf16 %v1756_v20, %v1752_v19  ;;  %v1764_v38 = vld [vmem:[#allocation15 + $0x1a8] sm:$0xff]  ;;  %v6214_v42 = vpack.c.bf16 %v1755_v31, %v1751_v28  ;;  %v1759_v46 = vld [vmem:[#allocation15 + $0x180] sm:$0xff]  ;;  %v1169_v51 = vld [vmem:[#allocation13 + $0x398] sm:$0xff]  ;;  %v4527_v57 = vpack.c.bf16 %v1160_v45, %v1152_v44 }
 0x2f6   :  { %1440 = vmatmul.mubr.f32.vlgmr.msra.gmra.mrb[2].mxu0 %v6174_v23  ;;  %1582 = vmatmul.mubr.f32.vlgmr.msra.gmra.mrb[4].mxu1 %v6174_v23  ;;  %v1177_v40 = vld [vmem:[#allocation13 + $0x3d8] sm:$0xff]  ;;  %v1768_v52 = vld [vmem:[#allocation15 + $0x1c8] sm:$0xff]  ;;  %v1168_v61 = vld [vmem:[#allocation13 + $0x390] sm:$0xff] }
 0x2f7   :  { %4504 = vmatpush1.bf16.msra.mxu0 %v4503_v32  ;;  %1510 = vmatprep.mubr.f32.mxu0 %v6177_v33  ;;  %v1153_v32 = vld [vmem:[#allocation13 + $0x318] sm:$0xff]  ;;  %v1772_v56 = vld [vmem:[#allocation15 + $0x1e8] sm:$0xff]  ;;  %v4529_v60 = vpack.c.bf16 %v1177_v40, %v1169_v51  ;;  %v1771_v63 = vld [vmem:[#allocation15 + $0x1e0] sm:$0xff] }
 0x2f8   :  { %4696 = vmatpush1.bf16.msra.mxu1 %v6179_v34  ;;  %4506 = vmatprep.subr.bf16.mxu0 %v4505_v35  ;;  %v1161_v35 = vld [vmem:[#allocation13 + $0x358] sm:$0xff]  ;;  %v6223_v36 = vpack.c.bf16 %v1772_v56, %v1768_v52  ;;  %v1192_v12 = vld [vmem:[#allocation13 + $0x450] sm:$0xff] }
 0x2f9   :  { %4698 = vmatprep.subr.bf16.mxu1 %v6183_v41  ;;  %1905 = vmatprep.mubr.f32.mxu1 %v6898_v5  ;;  %v4525_v43 = vpack.c.bf16 %v1161_v35, %v1153_v32  ;;  %v1185_v0 = vld [vmem:[#allocation13 + $0x418] sm:$0xff]  ;;  %v1713_v13 = vld [vmem:[#allocation15 + $0x10] sm:$0xff] }
 0x2fa   :  { %v1193_v2 = vld [vmem:[#allocation13 + $0x458] sm:$0xff]  ;;  %v1717_v16 = vld [vmem:[#allocation15 + $0x30] sm:$0xff] }
 0x2fb   :  { %4508 = vmatpush1.bf16.msra.mxu0 %v4507_v47  ;;  %v6217_v47 = vpack.c.bf16 %v1764_v38, %v1760_v37  ;;  %v1714_v3 = vld [vmem:[#allocation15 + $0x18] sm:$0xff]  ;;  %v1200_v27 = vld [vmem:[#allocation13 + $0x490] sm:$0xff] }
 0x2fc   :  { %4700 = vmatpush1.bf16.msra.mxu1 %v6189_v48  ;;  %4510 = vmatprep.subr.bf16.mxu0 %v4509_v50  ;;  %v1763_v50 = vld [vmem:[#allocation15 + $0x1a0] sm:$0xff]  ;;  %v1718_v4 = vld [vmem:[#allocation15 + $0x38] sm:$0xff]  ;;  %v1208_v28 = vld [vmem:[#allocation13 + $0x4d0] sm:$0xff] }
 0x2fd   :  { %4702 = vmatprep.subr.bf16.mxu1 %v6192_v55  ;;  %v6220_v58 = vpack.c.bf16 %v1763_v50, %v1759_v46  ;;  %v6229_v14 = vpack.c.bf16 %v1718_v4, %v1714_v3  ;;  %v1201_v17 = vld [vmem:[#allocation13 + $0x498] sm:$0xff]  ;;  %v1721_v31 = vld [vmem:[#allocation15 + $0x50] sm:$0xff]  ;;  %v4539_v44 = vpack.c.bf16 %v1208_v28, %v1200_v27 }
 0x2fe   :  { %v1209_v18 = vld [vmem:[#allocation13 + $0x4d8] sm:$0xff]  ;;  %v1725_v35 = vld [vmem:[#allocation15 + $0x70] sm:$0xff] }
 0x2ff   :  { %4512 = vmatpush1.bf16.msra.mxu0 %v4511_v62  ;;  %v1176_v62 = vld [vmem:[#allocation13 + $0x3d0] sm:$0xff]  ;;  %v1722_v19 = vld [vmem:[#allocation15 + $0x58] sm:$0xff]  ;;  %v4537_v26 = vpack.c.bf16 %v1209_v18, %v1201_v17  ;;  %v6239_v45 = vpack.c.bf16 %v1725_v35, %v1721_v31 }
 0x300   :  { %4704 = vmatpush1.bf16.msra.mxu1 %v6196_v24  ;;  %4514 = vmatprep.subr.bf16.mxu0 %v4513_v29  ;;  %v1767_v29 = vld [vmem:[#allocation15 + $0x1c0] sm:$0xff]  ;;  %v4531_v6 = vpack.c.bf16 %v1176_v62, %v1168_v61  ;;  %v1726_v20 = vld [vmem:[#allocation15 + $0x78] sm:$0xff]  ;;  %v1216_v50 = vld [vmem:[#allocation13 + $0x510] sm:$0xff] }
 0x301   :  { %4706 = vmatprep.subr.bf16.mxu1 %v6199_v1  ;;  %v6226_v7 = vpack.c.bf16 %v1771_v63, %v1767_v29  ;;  %v6235_v32 = vpack.c.bf16 %v1726_v20, %v1722_v19  ;;  %v1217_v37 = vld [vmem:[#allocation13 + $0x518] sm:$0xff]  ;;  %v1224_v51 = vld [vmem:[#allocation13 + $0x550] sm:$0xff] }
 0x302   :  { %v1225_v38 = vld [vmem:[#allocation13 + $0x558] sm:$0xff]  ;;  %v1729_v40 = vld [vmem:[#allocation15 + $0x90] sm:$0xff]  ;;  %v4543_v29 = vpack.c.bf16 %v1224_v51, %v1216_v50 }
 0x303   :  { %4516 = vmatpush1.bf16.msra.mxu0 %v4515_v9  ;;  %v4533_v9 = vpack.c.bf16 %v1193_v2, %v1185_v0  ;;  %v4541_v46 = vpack.c.bf16 %v1225_v38, %v1217_v37  ;;  %v1733_v56 = vld [vmem:[#allocation15 + $0xb0] sm:$0xff]  ;;  %v1738_v61 = vld [vmem:[#allocation15 + $0xd8] sm:$0xff] }
 0x304   :  { %4708 = vmatpush1.bf16.msra.mxu1 %v6202_v10  ;;  %4518 = vmatprep.subr.bf16.mxu0 %v4517_v11  ;;  %v1184_v11 = vld [vmem:[#allocation13 + $0x410] sm:$0xff]  ;;  %v1742_v62 = vld [vmem:[#allocation15 + $0xf8] sm:$0xff]  ;;  %v6246_v63 = vpack.c.bf16 %v1733_v56, %v1729_v40 }
 0x305   :  { %4710 = vmatprep.subr.bf16.mxu1 %v6205_v15  ;;  %v1232_v2 = vld [vmem:[#allocation13 + $0x590] sm:$0xff]  ;;  %v1265_v31 = vld [vmem:[#allocation13 + $0x698] sm:$0xff] }
 0x306   :  { %v1240_v3 = vld [vmem:[#allocation13 + $0x5d0] sm:$0xff]  ;;  %v1273_v35 = vld [vmem:[#allocation13 + $0x6d8] sm:$0xff] }
 0x307   :  { %4520 = vmatpush1.bf16.msra.mxu0 %v4519_v21  ;;  %v4535_v21 = vpack.c.bf16 %v1192_v12, %v1184_v11  ;;  %v1737_v4 = vld [vmem:[#allocation15 + $0xd0] sm:$0xff]  ;;  %v1249_v11 = vld [vmem:[#allocation13 + $0x618] sm:$0xff]  ;;  %v4547_v17 = vpack.c.bf16 %v1240_v3, %v1232_v2 }
 0x308   :  { %4712 = vmatpush1.bf16.msra.mxu1 %v6208_v22  ;;  %4522 = vmatprep.subr.bf16.mxu0 %v4521_v25  ;;  %v6232_v25 = vpack.c.bf16 %v1717_v16, %v1713_v13  ;;  %v1257_v12 = vld [vmem:[#allocation13 + $0x658] sm:$0xff]  ;;  %v1248_v20 = vld [vmem:[#allocation13 + $0x610] sm:$0xff] }
 0x309   :  { %4714 = vmatprep.subr.bf16.mxu1 %v6211_v30  ;;  %v1746_v13 = vld [vmem:[#allocation15 + $0x118] sm:$0xff]  ;;  %v4549_v19 = vpack.c.bf16 %v1257_v12, %v1249_v11  ;;  %v1749_v28 = vld [vmem:[#allocation15 + $0x130] sm:$0xff] }
 0x30a   :  { %v1750_v16 = vld [vmem:[#allocation15 + $0x138] sm:$0xff]  ;;  %v1272_v50 = vld [vmem:[#allocation13 + $0x6d0] sm:$0xff] }
 0x30b   :  { %4524 = vmatpush1.bf16.msra.mxu0 %v4523_v39  ;;  %v1730_v39 = vld [vmem:[#allocation15 + $0x98] sm:$0xff]  ;;  %v6255_v27 = vpack.c.bf16 %v1750_v16, %v1746_v13  ;;  %v1753_v51 = vld [vmem:[#allocation15 + $0x150] sm:$0xff] }
 0x30c   :  { %4716 = vmatpush1.bf16.msra.mxu1 %v6214_v42  ;;  %4526 = vmatprep.subr.bf16.mxu0 %v4525_v43  ;;  %v1734_v43 = vld [vmem:[#allocation15 + $0xb8] sm:$0xff]  ;;  %v1757_v56 = vld [vmem:[#allocation15 + $0x170] sm:$0xff] }
 0x30d   :  { %4718 = vmatprep.subr.bf16.mxu1 %v6217_v47  ;;  %v6242_v52 = vpack.c.bf16 %v1734_v43, %v1730_v39  ;;  %v1754_v37 = vld [vmem:[#allocation15 + $0x158] sm:$0xff]  ;;  %v1280_v3 = vld [vmem:[#allocation13 + $0x710] sm:$0xff] }
 0x30e   :  { %v1758_v38 = vld [vmem:[#allocation15 + $0x178] sm:$0xff]  ;;  %v1765_v12 = vld [vmem:[#allocation15 + $0x1b0] sm:$0xff] }
 0x30f   :  { %4528 = vmatpush1.bf16.msra.mxu0 %v4527_v57  ;;  %v1233_v57 = vld [vmem:[#allocation13 + $0x598] sm:$0xff]  ;;  %v6261_v40 = vpack.c.bf16 %v1758_v38, %v1754_v37  ;;  %v1773_v38 = vld [vmem:[#allocation15 + $0x1f0] sm:$0xff] }
 0x310   :  { %4720 = vmatpush1.bf16.msra.mxu1 %v6220_v58  ;;  %4530 = vmatprep.subr.bf16.mxu0 %v4529_v60  ;;  %v1241_v60 = vld [vmem:[#allocation13 + $0x5d8] sm:$0xff] }
 0x311   :  { %4722 = vmatprep.subr.bf16.mxu1 %v6223_v36  ;;  %v4545_v0 = vpack.c.bf16 %v1241_v60, %v1233_v57  ;;  %v1281_v57 = vld [vmem:[#allocation13 + $0x718] sm:$0xff] }
 0x312   :  { %v1289_v60 = vld [vmem:[#allocation13 + $0x758] sm:$0xff] }
 0x313   :  { %4532 = vmatpush1.bf16.msra.mxu0 %v4531_v6  ;;  %v6249_v6 = vpack.c.bf16 %v1742_v62, %v1738_v61  ;;  %v1762_v61 = vld [vmem:[#allocation15 + $0x198] sm:$0xff]  ;;  %v4557_v2 = vpack.c.bf16 %v1289_v60, %v1281_v57  ;;  %v1060_v60 = vld [vmem:[#allocation13 + $0x30] sm:$0xff] }
 0x314   :  { %4724 = vmatpush1.bf16.msra.mxu1 %v6226_v7  ;;  %4534 = vmatprep.subr.bf16.mxu0 %v4533_v9  ;;  %v1741_v9 = vld [vmem:[#allocation15 + $0xf0] sm:$0xff]  ;;  %v1766_v62 = vld [vmem:[#allocation15 + $0x1b8] sm:$0xff] }
 0x315   :  { %4726 = vmatprep.subr.bf16.mxu1 %v6229_v14  ;;  %v6252_v18 = vpack.c.bf16 %v1741_v9, %v1737_v4  ;;  %v1288_v4 = vld [vmem:[#allocation13 + $0x750] sm:$0xff]  ;;  %v6267_v11 = vpack.c.bf16 %v1766_v62, %v1762_v61  ;;  %v1297_v13 = vld [vmem:[#allocation13 + $0x798] sm:$0xff] }
 0x316   :  { %v1761_v9 = vld [vmem:[#allocation15 + $0x190] sm:$0xff]  ;;  %v1305_v16 = vld [vmem:[#allocation13 + $0x7d8] sm:$0xff] }
 0x317   :  { %4536 = vmatpush1.bf16.msra.mxu0 %v4535_v21  ;;  %1906 = vmatmul.mubr.f32.vlgmr.msra.gmra.mrb[6].mxu1 %v6898_v5  ;;  %v1256_v21 = vld [vmem:[#allocation13 + $0x650] sm:$0xff]  ;;  %v1077_v62 = vld [vmem:[#allocation13 + $0xb8] sm:$0xff] }
 0x318   :  { %4728 = vmatpush1.bf16.msra.mxu1 %v6232_v25  ;;  %4538 = vmatprep.subr.bf16.mxu0 %v4537_v26  ;;  %v1745_v26 = vld [vmem:[#allocation15 + $0x110] sm:$0xff]  ;;  %v4551_v39 = vpack.c.bf16 %v1256_v21, %v1248_v20  ;;  %v4559_v20 = vpack.c.bf16 %v1288_v4, %v1280_v3  ;;  %v6270_v21 = vpack.c.bf16 %v1765_v12, %v1761_v9  ;;  %v1787_v12 = vld [vmem:[#allocation15 + $0x258] sm:$0xff] }
 0x319   :  { %4730 = vmatprep.subr.bf16.mxu1 %v6235_v32  ;;  %1976 = vmatprep.mubr.f32.mxu1 %v6898_v5  ;;  %v6258_v43 = vpack.c.bf16 %v1749_v28, %v1745_v26  ;;  %v4561_v26 = vpack.c.bf16 %v1305_v16, %v1297_v13  ;;  %v1296_v28 = vld [vmem:[#allocation13 + $0x790] sm:$0xff]  ;;  %v1791_v13 = vld [vmem:[#allocation15 + $0x278] sm:$0xff] }
 0x31a   :  { %v1068_v61 = vld [vmem:[#allocation13 + $0x70] sm:$0xff] }
 0x31b   :  { %4540 = vmatpush1.bf16.msra.mxu0 %v4539_v44  ;;  %v4553_v44 = vpack.c.bf16 %v1273_v35, %v1265_v31  ;;  %v1304_v31 = vld [vmem:[#allocation13 + $0x7d0] sm:$0xff]  ;;  %v4631_v9 = vpack.c.bf16 %v1068_v61, %v1060_v60  ;;  %v1109_v60 = vld [vmem:[#allocation13 + $0x1b8] sm:$0xff] }
 0x31c   :  { %4732 = vmatpush1.bf16.msra.mxu1 %v6239_v45  ;;  %4542 = vmatprep.subr.bf16.mxu0 %v4541_v46  ;;  %v1264_v46 = vld [vmem:[#allocation13 + $0x690] sm:$0xff]  ;;  %v1117_v61 = vld [vmem:[#allocation13 + $0x1f8] sm:$0xff] }
 0x31d   :  { %4734 = vmatprep.subr.bf16.mxu1 %v6242_v52  ;;  %v1769_v35 = vld [vmem:[#allocation15 + $0x1d0] sm:$0xff] }
 0x31e   :  { %v1778_v3 = vld [vmem:[#allocation15 + $0x210] sm:$0xff] }
 0x31f   :  { %4544 = vmatpush1.bf16.msra.mxu0 %v4543_v29  ;;  %v4555_v29 = vpack.c.bf16 %v1272_v50, %v1264_v46  ;;  %v1779_v46 = vld [vmem:[#allocation15 + $0x218] sm:$0xff]  ;;  %v1782_v4 = vld [vmem:[#allocation15 + $0x230] sm:$0xff] }
 0x320   :  { %4736 = vmatpush1.bf16.msra.mxu1 %v6246_v63  ;;  %4546 = vmatprep.subr.bf16.mxu0 %v4545_v0  ;;  %v6264_v0 = vpack.c.bf16 %v1757_v56, %v1753_v51  ;;  %v1783_v50 = vld [vmem:[#allocation15 + $0x238] sm:$0xff]  ;;  %v4563_v51 = vpack.c.bf16 %v1304_v31, %v1296_v28  ;;  %v6276_v56 = vpack.c.bf16 %v1773_v38, %v1769_v35  ;;  %v1786_v35 = vld [vmem:[#allocation15 + $0x250] sm:$0xff] }
 0x321   :  { %4738 = vmatprep.subr.bf16.mxu1 %v6249_v6  ;;  %v6283_v28 = vpack.c.bf16 %v1782_v4, %v1778_v3  ;;  %v6286_v31 = vpack.c.bf16 %v1791_v13, %v1787_v12  ;;  %v1790_v38 = vld [vmem:[#allocation15 + $0x270] sm:$0xff]  ;;  %v1807_v12 = vld [vmem:[#allocation15 + $0x2f8] sm:$0xff]  ;;  %v4641_v13 = vpack.c.bf16 %v1117_v61, %v1109_v60 }
 0x322   :  { %v1798_v3 = vld [vmem:[#allocation15 + $0x2b0] sm:$0xff]  ;;  %v1141_v61 = vld [vmem:[#allocation13 + $0x2b8] sm:$0xff] }
 0x323   :  { %4548 = vmatpush1.bf16.msra.mxu0 %v4547_v17  ;;  %v1770_v17 = vld [vmem:[#allocation15 + $0x1d8] sm:$0xff]  ;;  %v1132_v60 = vld [vmem:[#allocation13 + $0x270] sm:$0xff] }
 0x324   :  { %4740 = vmatpush1.bf16.msra.mxu1 %v6252_v18  ;;  %4550 = vmatprep.subr.bf16.mxu0 %v4549_v19  ;;  %v1774_v19 = vld [vmem:[#allocation15 + $0x1f8] sm:$0xff] }
 0x325   :  { %4742 = vmatprep.subr.bf16.mxu1 %v6255_v27  ;;  %v6273_v37 = vpack.c.bf16 %v1774_v19, %v1770_v17  ;;  %v1076_v17 = vld [vmem:[#allocation13 + $0xb0] sm:$0xff] }
 0x326   :  { %v1084_v19 = vld [vmem:[#allocation13 + $0xf0] sm:$0xff] }
 0x327   :  { %4552 = vmatpush1.bf16.msra.mxu0 %v4551_v39  ;;  %v1061_v39 = vld [vmem:[#allocation13 + $0x38] sm:$0xff] }
 0x328   :  { %4744 = vmatpush1.bf16.msra.mxu1 %v6258_v43  ;;  %4554 = vmatprep.subr.bf16.mxu0 %v4553_v44  ;;  %v1069_v44 = vld [vmem:[#allocation13 + $0x78] sm:$0xff] }
 0x329   :  { %4746 = vmatprep.subr.bf16.mxu1 %v6261_v40  ;;  %v4629_v57 = vpack.c.bf16 %v1069_v44, %v1061_v39  ;;  %v4635_v39 = vpack.c.bf16 %v1084_v19, %v1076_v17  ;;  %v1795_v44 = vld [vmem:[#allocation15 + $0x298] sm:$0xff]  ;;  %v1116_v17 = vld [vmem:[#allocation13 + $0x1f0] sm:$0xff] }
 0x32a   :  { %v1125_v19 = vld [vmem:[#allocation13 + $0x238] sm:$0xff] }
 0x32b   :  { %4556 = vmatpush1.bf16.msra.mxu0 %v4555_v29  ;;  %v1085_v29 = vld [vmem:[#allocation13 + $0xf8] sm:$0xff] }
 0x32c   :  { %4748 = vmatpush1.bf16.msra.mxu1 %v6264_v0  ;;  %4558 = vmatprep.subr.bf16.mxu0 %v4557_v2  ;;  %v6279_v2 = vpack.c.bf16 %v1783_v50, %v1779_v46  ;;  %v4633_v16 = vpack.c.bf16 %v1085_v29, %v1077_v62  ;;  %v1799_v46 = vld [vmem:[#allocation15 + $0x2b8] sm:$0xff]  ;;  %v6291_v62 = vpack.c.bf16 %v1790_v38, %v1786_v35  ;;  %v1794_v29 = vld [vmem:[#allocation15 + $0x290] sm:$0xff] }
 0x32d   :  { %4750 = vmatprep.subr.bf16.mxu1 %v6267_v11  ;;  %v1802_v38 = vld [vmem:[#allocation15 + $0x2d0] sm:$0xff] }
 0x32e   :  { %6932 = vst [vmem:[#allocation29_spill] sm:$0xff] %v6291_v62 }
 0x32f   :  { %4560 = vmatpush1.bf16.msra.mxu0 %v4559_v20  ;;  %v1093_v20 = vld [vmem:[#allocation13 + $0x138] sm:$0xff] }
 0x330   :  { %4752 = vmatpush1.bf16.msra.mxu1 %v6270_v21  ;;  %4562 = vmatprep.subr.bf16.mxu0 %v4561_v26  ;;  %v1101_v26 = vld [vmem:[#allocation13 + $0x178] sm:$0xff] }
 0x331   :  { %4754 = vmatprep.subr.bf16.mxu1 %v6273_v37  ;;  %v4637_v50 = vpack.c.bf16 %v1101_v26, %v1093_v20  ;;  %v1133_v20 = vld [vmem:[#allocation13 + $0x278] sm:$0xff]  ;;  %v6298_v26 = vpack.c.bf16 %v1798_v3, %v1794_v29 }
 0x333   :  { %4564 = vmatpush1.bf16.msra.mxu0 %v4563_v51  ;;  %v1092_v51 = vld [vmem:[#allocation13 + $0x130] sm:$0xff]  ;;  %6934 = vst [vmem:[#allocation31_spill] sm:$0xff] %v6298_v26 }
 0x334   :  { %4756 = vmatpush1.bf16.msra.mxu1 %v6276_v56  ;;  %4630 = vmatprep.subr.bf16.mxu0 %v4629_v57  ;;  %v1100_v57 = vld [vmem:[#allocation13 + $0x170] sm:$0xff] }
 0x335   :  { %4790 = vmatprep.subr.bf16.mxu1 %v6279_v2  ;;  %v4639_v4 = vpack.c.bf16 %v1100_v57, %v1092_v51  ;;  %v1815_v51 = vld [vmem:[#allocation15 + $0x338] sm:$0xff]  ;;  %v1124_v57 = vld [vmem:[#allocation13 + $0x230] sm:$0xff] }
 0x336   :  { %1511 = vmatmul.mubr.f32.vlgmr.msra.gmra.mrb[4].mxu0 %v6174_v23 }
 0x337   :  { %4632 = vmatpush1.bf16.msra.mxu0 %v4631_v9  ;;  %1652 = vmatprep.mubr.f32.mxu0 %v6177_v33  ;;  %v6295_v33 = vpack.c.bf16 %v1799_v46, %v1795_v44  ;;  %v1803_v9 = vld [vmem:[#allocation15 + $0x2d8] sm:$0xff]  ;;  %v1806_v44 = vld [vmem:[#allocation15 + $0x2f0] sm:$0xff] }
 0x338   :  { %1977 = vmatmul.mubr.f32.vlgmr.msra.gmra.mrb[8].mxu1 %v6898_v5  ;;  %4634 = vmatprep.subr.bf16.mxu0 %v4633_v16  ;;  %v1108_v16 = vld [vmem:[#allocation13 + $0x1b0] sm:$0xff]  ;;  %v6301_v35 = vpack.c.bf16 %v1807_v12, %v1803_v9  ;;  %v1811_v46 = vld [vmem:[#allocation15 + $0x318] sm:$0xff]  ;;  %v6304_v29 = vpack.c.bf16 %v1806_v44, %v1802_v38 }
 0x339   :  { %4792 = vmatpush1.bf16.msra.mxu1 %v6283_v28  ;;  %2143 = vmatprep.mubr.f32.mxu1 %v6898_v5  ;;  %6933 = vst [vmem:[#allocation30_spill] sm:$0xff] %v6295_v33  ;;  %v1149_v5 = vld [vmem:[#allocation13 + $0x2f8] sm:$0xff]  ;;  %v6307_v3 = vpack.c.bf16 %v1815_v51, %v1811_v46  ;;  %v1810_v9 = vld [vmem:[#allocation15 + $0x310] sm:$0xff] }
 0x33a   :  { %4794 = vmatprep.subr.bf16.mxu1 %v6286_v31  ;;  %6935 = vst [vmem:[#allocation32_spill] sm:$0xff] %v6301_v35  ;;  %6936 = vst [vmem:[#allocation33_spill] sm:$0xff] %v6304_v29  ;;  %v1814_v12 = vld [vmem:[#allocation15 + $0x330] sm:$0xff] }
 0x33b   :  { %4636 = vmatpush1.bf16.msra.mxu0 %v4635_v39  ;;  %v4643_v39 = vpack.c.bf16 %v1116_v17, %v1108_v16  ;;  %6937 = vst [vmem:[#allocation34_spill] sm:$0xff] %v6307_v3  ;;  %v1819_v16 = vld [vmem:[#allocation15 + $0x358] sm:$0xff]  ;;  %v6310_v38 = vpack.c.bf16 %v1814_v12, %v1810_v9  ;;  %v1818_v46 = vld [vmem:[#allocation15 + $0x350] sm:$0xff] }
 0x33c   :  { %4638 = vmatprep.subr.bf16.mxu0 %v4637_v50  ;;  %v4645_v50 = vpack.c.bf16 %v1133_v20, %v1125_v19  ;;  %v1823_v17 = vld [vmem:[#allocation15 + $0x378] sm:$0xff]  ;;  %v1140_v19 = vld [vmem:[#allocation13 + $0x2b0] sm:$0xff] }
 0x33d   :  { %4796 = vmatpush1.bf16.msra.mxu1 %v6291_v62  ;;  %v1148_v20 = vld [vmem:[#allocation13 + $0x2f0] sm:$0xff]  ;;  %v1165_v62 = vld [vmem:[#allocation13 + $0x378] sm:$0xff]  ;;  %v6313_v44 = vpack.c.bf16 %v1823_v17, %v1819_v16 }
 0x33e   :  { %4798 = vmatprep.subr.bf16.mxu1 %v6295_v33  ;;  %v1157_v33 = vld [vmem:[#allocation13 + $0x338] sm:$0xff]  ;;  %v1822_v51 = vld [vmem:[#allocation15 + $0x370] sm:$0xff] }
 0x33f   :  { %4640 = vmatpush1.bf16.msra.mxu0 %v4639_v4  ;;  %v4647_v4 = vpack.c.bf16 %v1132_v60, %v1124_v57  ;;  %6938 = vst [vmem:[#allocation35_spill] sm:$0xff] %v6313_v44  ;;  %v1827_v57 = vld [vmem:[#allocation15 + $0x398] sm:$0xff]  ;;  %v6316_v9 = vpack.c.bf16 %v1822_v51, %v1818_v46  ;;  %v1826_v16 = vld [vmem:[#allocation15 + $0x390] sm:$0xff] }
 0x340   :  { %4642 = vmatprep.subr.bf16.mxu0 %v4641_v13  ;;  %v4649_v13 = vpack.c.bf16 %v1149_v5, %v1141_v61  ;;  %v1831_v60 = vld [vmem:[#allocation15 + $0x3b8] sm:$0xff]  ;;  %v4653_v5 = vpack.c.bf16 %v1165_v62, %v1157_v33  ;;  %v1164_v61 = vld [vmem:[#allocation13 + $0x370] sm:$0xff] }
 0x341   :  { %4800 = vmatpush1.bf16.msra.mxu1 %v6298_v26  ;;  %v1181_v26 = vld [vmem:[#allocation13 + $0x3f8] sm:$0xff]  ;;  %v6319_v12 = vpack.c.bf16 %v1831_v60, %v1827_v57  ;;  %v1830_v17 = vld [vmem:[#allocation15 + $0x3b0] sm:$0xff] }
 0x342   :  { %4802 = vmatprep.subr.bf16.mxu1 %v6301_v35  ;;  %v1173_v35 = vld [vmem:[#allocation13 + $0x3b8] sm:$0xff]  ;;  %v1172_v33 = vld [vmem:[#allocation13 + $0x3b0] sm:$0xff]  ;;  %v6322_v46 = vpack.c.bf16 %v1830_v17, %v1826_v16 }
 0x343   :  { %4644 = vmatpush1.bf16.msra.mxu0 %v4643_v39  ;;  %v4651_v39 = vpack.c.bf16 %v1148_v20, %v1140_v19  ;;  %v1835_v19 = vld [vmem:[#allocation15 + $0x3d8] sm:$0xff]  ;;  %v4657_v62 = vpack.c.bf16 %v1181_v26, %v1173_v35  ;;  %v1834_v57 = vld [vmem:[#allocation15 + $0x3d0] sm:$0xff] }
 0x344   :  { %4646 = vmatprep.subr.bf16.mxu0 %v4645_v50  ;;  %v1156_v50 = vld [vmem:[#allocation13 + $0x330] sm:$0xff]  ;;  %v1839_v20 = vld [vmem:[#allocation15 + $0x3f8] sm:$0xff] }
 0x345   :  { %4804 = vmatpush1.bf16.msra.mxu1 %v6304_v29  ;;  %v1197_v29 = vld [vmem:[#allocation13 + $0x478] sm:$0xff]  ;;  %v6325_v51 = vpack.c.bf16 %v1839_v20, %v1835_v19  ;;  %v1838_v60 = vld [vmem:[#allocation15 + $0x3f0] sm:$0xff] }
 0x346   :  { %4806 = vmatprep.subr.bf16.mxu1 %v6307_v3  ;;  %v1189_v3 = vld [vmem:[#allocation13 + $0x438] sm:$0xff]  ;;  %v1196_v26 = vld [vmem:[#allocation13 + $0x470] sm:$0xff] }
 0x347   :  { %4648 = vmatpush1.bf16.msra.mxu0 %v4647_v4  ;;  %v4655_v4 = vpack.c.bf16 %v1164_v61, %v1156_v50  ;;  %v4661_v50 = vpack.c.bf16 %v1197_v29, %v1189_v3  ;;  %v1205_v35 = vld [vmem:[#allocation13 + $0x4b8] sm:$0xff]  ;;  %v1204_v19 = vld [vmem:[#allocation13 + $0x4b0] sm:$0xff] }
 0x348   :  { %4650 = vmatprep.subr.bf16.mxu0 %v4649_v13  ;;  %v1180_v13 = vld [vmem:[#allocation13 + $0x3f0] sm:$0xff]  ;;  %v1213_v61 = vld [vmem:[#allocation13 + $0x4f8] sm:$0xff] }
 0x349   :  { %4808 = vmatpush1.bf16.msra.mxu1 %v6310_v38  ;;  %v4665_v17 = vpack.c.bf16 %v1213_v61, %v1205_v35  ;;  %v1212_v20 = vld [vmem:[#allocation13 + $0x4f0] sm:$0xff]  ;;  %v1253_v35 = vld [vmem:[#allocation13 + $0x638] sm:$0xff] }
 0x34a   :  { %4810 = vmatprep.subr.bf16.mxu1 %v6313_v44  ;;  %v6328_v44 = vpack.c.bf16 %v1838_v60, %v1834_v57  ;;  %v4667_v29 = vpack.c.bf16 %v1212_v20, %v1204_v19  ;;  %v6939_v57 = vmov 0.0   ;;  %v1237_v60 = vld [vmem:[#allocation13 + $0x5b8] sm:$0xff]  ;;  %v1260_v19 = vld [vmem:[#allocation13 + $0x670] sm:$0xff] }
 0x34b   :  { %4652 = vmatpush1.bf16.msra.mxu0 %v4651_v39  ;;  %v4659_v39 = vpack.c.bf16 %v1180_v13, %v1172_v33  ;;  %v1229_v33 = vld [vmem:[#allocation13 + $0x578] sm:$0xff]  ;;  %v1228_v13 = vld [vmem:[#allocation13 + $0x570] sm:$0xff] }
 0x34c   :  { %4654 = vmatprep.subr.bf16.mxu0 %v4653_v5  ;;  %v1188_v5 = vld [vmem:[#allocation13 + $0x430] sm:$0xff]  ;;  %v1261_v61 = vld [vmem:[#allocation13 + $0x678] sm:$0xff] }
 0x34d   :  { %4812 = vmatpush1.bf16.msra.mxu1 %v6316_v9  ;;  %v4663_v16 = vpack.c.bf16 %v1196_v26, %v1188_v5  ;;  %v1236_v5 = vld [vmem:[#allocation13 + $0x5b0] sm:$0xff]  ;;  %v1269_v20 = vld [vmem:[#allocation13 + $0x6b8] sm:$0xff] }
 0x34e   :  { %4814 = vmatprep.subr.bf16.mxu1 %v6319_v12  ;;  %v1244_v26 = vld [vmem:[#allocation13 + $0x5f0] sm:$0xff] }
 0x34f   :  { %4656 = vmatpush1.bf16.msra.mxu0 %v4655_v4  ;;  %v1221_v4 = vld [vmem:[#allocation13 + $0x538] sm:$0xff] }
 0x350   :  { %4658 = vmatprep.subr.bf16.mxu0 %v4657_v62  ;;  %v4669_v3 = vpack.c.bf16 %v1229_v33, %v1221_v4  ;;  %v1220_v62 = vld [vmem:[#allocation13 + $0x530] sm:$0xff] }
 0x351   :  { %4816 = vmatpush1.bf16.msra.mxu1 %v6322_v46 }
 0x352   :  { %4818 = vmatprep.subr.bf16.mxu1 %v6325_v51 }
 0x353   :  { %4660 = vmatpush1.bf16.msra.mxu0 %v4659_v39  ;;  %v1245_v39 = vld [vmem:[#allocation13 + $0x5f8] sm:$0xff] }
 0x354   :  { %4662 = vmatprep.subr.bf16.mxu0 %v4661_v50  ;;  %v4671_v50 = vpack.c.bf16 %v1228_v13, %v1220_v62 }
 0x355   :  { %4820 = vmatpush1.bf16.msra.mxu1 %v6328_v44 }
 0x356   :  { %4854 = vmatprep.subr.bf16.mxu1 %v6229_v14  ;;  %v4673_v14 = vpack.c.bf16 %v1245_v39, %v1237_v60  ;;  %v1284_v60 = vld [vmem:[#allocation13 + $0x730] sm:$0xff]  ;;  %v1301_v39 = vld [vmem:[#allocation13 + $0x7b8] sm:$0xff] }
 0x357   :  { %4664 = vmatpush1.bf16.msra.mxu0 %v4663_v16  ;;  %v4675_v16 = vpack.c.bf16 %v1244_v26, %v1236_v5  ;;  %v1300_v5 = vld [vmem:[#allocation13 + $0x7b0] sm:$0xff]  ;;  %v1777_v26 = vld [vmem:[#allocation15 + $0x208] sm:$0xff] }
 0x358   :  { %4666 = vmatprep.subr.bf16.mxu0 %v4665_v17  ;;  %2144 = vmatmul.mubr.f32.vlgmr.msra.gmra.mrb[10].mxu1 %v6939_v57  ;;  %v1252_v17 = vld [vmem:[#allocation13 + $0x630] sm:$0xff] }
 0x359   :  { %4856 = vmatpush1.bf16.msra.mxu1 %v6232_v25  ;;  %2352 = vmatprep.mubr.f32.mxu1 %v6939_v57  ;;  %v4677_v25 = vpack.c.bf16 %v1261_v61, %v1253_v35  ;;  %v4679_v4 = vpack.c.bf16 %v1260_v19, %v1252_v17  ;;  %v1788_v19 = vld [vmem:[#allocation15 + $0x260] sm:$0xff] }
 0x35a   :  { %4858 = vmatprep.subr.bf16.mxu1 %v6235_v32  ;;  %v1277_v32 = vld [vmem:[#allocation13 + $0x6f8] sm:$0xff] }
 0x35b   :  { %4668 = vmatpush1.bf16.msra.mxu0 %v4667_v29  ;;  %v4681_v33 = vpack.c.bf16 %v1277_v32, %v1269_v20  ;;  %v1268_v29 = vld [vmem:[#allocation13 + $0x6b0] sm:$0xff]  ;;  %v1793_v20 = vld [vmem:[#allocation15 + $0x288] sm:$0xff] }
 0x35c   :  { %4670 = vmatprep.subr.bf16.mxu0 %v4669_v3  ;;  %v1285_v3 = vld [vmem:[#allocation13 + $0x738] sm:$0xff]  ;;  %v1797_v32 = vld [vmem:[#allocation15 + $0x2a8] sm:$0xff] }
 0x35d   :  { %4860 = vmatpush1.bf16.msra.mxu1 %v6239_v45  ;;  %v1276_v45 = vld [vmem:[#allocation13 + $0x6f0] sm:$0xff] }
 0x35e   :  { %4862 = vmatprep.subr.bf16.mxu1 %v6242_v52  ;;  %v1293_v52 = vld [vmem:[#allocation13 + $0x778] sm:$0xff]  ;;  %v4683_v62 = vpack.c.bf16 %v1276_v45, %v1268_v29  ;;  %v1801_v29 = vld [vmem:[#allocation15 + $0x2c8] sm:$0xff] }
 0x35f   :  { %4672 = vmatpush1.bf16.msra.mxu0 %v4671_v50  ;;  %v4685_v13 = vpack.c.bf16 %v1293_v52, %v1285_v3  ;;  %v1805_v45 = vld [vmem:[#allocation15 + $0x2e8] sm:$0xff]  ;;  %v1804_v3 = vld [vmem:[#allocation15 + $0x2e0] sm:$0xff] }
 0x360   :  { %4674 = vmatprep.subr.bf16.mxu0 %v4673_v14  ;;  %v1809_v52 = vld [vmem:[#allocation15 + $0x308] sm:$0xff] }
 0x361   :  { %4864 = vmatpush1.bf16.msra.mxu1 %v6246_v63  ;;  %v1292_v63 = vld [vmem:[#allocation13 + $0x770] sm:$0xff] }
 0x362   :  { %4866 = vmatprep.subr.bf16.mxu1 %v6249_v6  ;;  %v1309_v6 = vld [vmem:[#allocation13 + $0x7f8] sm:$0xff]  ;;  %v4687_v50 = vpack.c.bf16 %v1292_v63, %v1284_v60  ;;  %v1808_v63 = vld [vmem:[#allocation15 + $0x300] sm:$0xff] }
 0x363   :  { %4676 = vmatpush1.bf16.msra.mxu0 %v4675_v16  ;;  %v4689_v14 = vpack.c.bf16 %v1309_v6, %v1301_v39  ;;  %v1780_v16 = vld [vmem:[#allocation15 + $0x220] sm:$0xff]  ;;  %v1817_v6 = vld [vmem:[#allocation15 + $0x348] sm:$0xff] }
 0x364   :  { %4678 = vmatprep.subr.bf16.mxu0 %v4677_v25  ;;  %v1789_v25 = vld [vmem:[#allocation15 + $0x268] sm:$0xff]  ;;  %v1812_v39 = vld [vmem:[#allocation15 + $0x320] sm:$0xff] }
 0x365   :  { %4868 = vmatpush1.bf16.msra.mxu1 %v6252_v18  ;;  %v1308_v18 = vld [vmem:[#allocation13 + $0x7f0] sm:$0xff] }
 0x366   :  { %4870 = vmatprep.subr.bf16.mxu1 %v6255_v27  ;;  %v1781_v27 = vld [vmem:[#allocation15 + $0x228] sm:$0xff]  ;;  %v4691_v35 = vpack.c.bf16 %v1308_v18, %v1300_v5  ;;  %v1816_v18 = vld [vmem:[#allocation15 + $0x340] sm:$0xff] }
 0x367   :  { %4680 = vmatpush1.bf16.msra.mxu0 %v4679_v4  ;;  %v6347_v61 = vpack.c.bf16 %v1781_v27, %v1777_v26  ;;  %v1792_v4 = vld [vmem:[#allocation15 + $0x280] sm:$0xff]  ;;  %v1825_v27 = vld [vmem:[#allocation15 + $0x388] sm:$0xff] }
 0x368   :  { %4682 = vmatprep.subr.bf16.mxu0 %v4681_v33  ;;  %v1796_v33 = vld [vmem:[#allocation15 + $0x2a0] sm:$0xff] }
 0x369   :  { %4872 = vmatpush1.bf16.msra.mxu1 %v6258_v43  ;;  %v1776_v43 = vld [vmem:[#allocation15 + $0x200] sm:$0xff] }
 0x36a   :  { %4874 = vmatprep.subr.bf16.mxu1 %v6261_v40  ;;  %v1785_v40 = vld [vmem:[#allocation15 + $0x248] sm:$0xff]  ;;  %v6351_v17 = vpack.c.bf16 %v1780_v16, %v1776_v43  ;;  %v1820_v26 = vld [vmem:[#allocation15 + $0x360] sm:$0xff] }
 0x36b   :  { %4684 = vmatpush1.bf16.msra.mxu0 %v4683_v62  ;;  %v1813_v62 = vld [vmem:[#allocation15 + $0x328] sm:$0xff]  ;;  %v6385_v43 = vpack.c.bf16 %v1820_v26, %v1816_v18 }
 0x36c   :  { %4686 = vmatprep.subr.bf16.mxu0 %v4685_v13  ;;  %v6376_v60 = vpack.c.bf16 %v1813_v62, %v1809_v52  ;;  %v6912_v52 = vsub.s32 2, %v6074_v59  ;;  %v6911_v62 = vsub.s32 3, %v6074_v59 }
 0x36d   :  { %4876 = vmatpush1.bf16.msra.mxu1 %v6264_v0  ;;  %v6354_v0 = vpack.c.bf16 %v1789_v25, %v1785_v40  ;;  %v1824_v40 = vld [vmem:[#allocation15 + $0x380] sm:$0xff] }
 0x36e   :  { %4878 = vmatprep.subr.bf16.mxu1 %v6267_v11  ;;  %v1784_v11 = vld [vmem:[#allocation15 + $0x240] sm:$0xff] }
 0x36f   :  { %4688 = vmatpush1.bf16.msra.mxu0 %v4687_v50  ;;  %v1821_v50 = vld [vmem:[#allocation15 + $0x368] sm:$0xff]  ;;  %v1828_v25 = vld [vmem:[#allocation15 + $0x3a0] sm:$0xff] }
 0x370   :  { %4690 = vmatprep.subr.bf16.mxu0 %v4689_v14  ;;  %v6379_v14 = vpack.c.bf16 %v1812_v39, %v1808_v63  ;;  %v6382_v5 = vpack.c.bf16 %v1821_v50, %v1817_v6 }
 0x371   :  { %4880 = vmatpush1.bf16.msra.mxu1 %v6270_v21  ;;  %v6360_v21 = vpack.c.bf16 %v1788_v19, %v1784_v11  ;;  %v1833_v11 = vld [vmem:[#allocation15 + $0x3c8] sm:$0xff] }
 0x372   :  { %4882 = vmatprep.subr.bf16.mxu1 %v6273_v37  ;;  %v6364_v37 = vpack.c.bf16 %v1797_v32, %v1793_v20  ;;  %v1837_v19 = vld [vmem:[#allocation15 + $0x3e8] sm:$0xff]  ;;  %v6391_v20 = vpack.c.bf16 %v1828_v25, %v1824_v40 }
 0x373   :  { %4692 = vmatpush1.bf16.msra.mxu0 %v4691_v35  ;;  %v1829_v35 = vld [vmem:[#allocation15 + $0x3a8] sm:$0xff]  ;;  %v6394_v32 = vpack.c.bf16 %v1837_v19, %v1833_v11 }
 0x374   :  { %4758 = vmatprep.subr.bf16.mxu0 %v6347_v61  ;;  %v6388_v16 = vpack.c.bf16 %v1829_v35, %v1825_v27 }
 0x375   :  { %4884 = vmatpush1.bf16.msra.mxu1 %v6276_v56  ;;  %v6367_v56 = vpack.c.bf16 %v1796_v33, %v1792_v4  ;;  %v1832_v4 = vld [vmem:[#allocation15 + $0x3c0] sm:$0xff] }
 0x376   :  { %1653 = vmatmul.mubr.f32.vlgmr.msra.gmra.mrb[6].mxu0 %v6174_v23  ;;  %4918 = vmatprep.subr.bf16.mxu1 %v6279_v2  ;;  %v6370_v23 = vpack.c.bf16 %v1805_v45, %v1801_v29  ;;  %v1800_v2 = vld [vmem:[#allocation15 + $0x2c0] sm:$0xff] }
 0x377   :  { %4760 = vmatpush1.bf16.msra.mxu0 %v6351_v17  ;;  %2072 = vmatprep.mubr.f32.mxu0 %v6939_v57  ;;  %v6373_v13 = vpack.c.bf16 %v1804_v3, %v1800_v2  ;;  %v1836_v33 = vld [vmem:[#allocation15 + $0x3e0] sm:$0xff] }
 0x378   :  { %4762 = vmatprep.subr.bf16.mxu0 %v6354_v0  ;;  %v6397_v29 = vpack.c.bf16 %v1836_v33, %v1832_v4 }
 0x37b   :  { %4764 = vmatpush1.bf16.msra.mxu0 %v6360_v21 }
 0x37c   :  { %4766 = vmatprep.subr.bf16.mxu0 %v6364_v37 }
 0x37f   :  { %4768 = vmatpush1.bf16.msra.mxu0 %v6367_v56 }
 0x380   :  { %4770 = vmatprep.subr.bf16.mxu0 %v6370_v23 }
 0x383   :  { %4772 = vmatpush1.bf16.msra.mxu0 %v6373_v13 }
 0x384   :  { %4774 = vmatprep.subr.bf16.mxu0 %v6376_v60 }
 0x387   :  { %4776 = vmatpush1.bf16.msra.mxu0 %v6379_v14 }
 0x388   :  { %4778 = vmatprep.subr.bf16.mxu0 %v6382_v5 }
 0x38b   :  { %4780 = vmatpush1.bf16.msra.mxu0 %v6385_v43 }
 0x38c   :  { %4782 = vmatprep.subr.bf16.mxu0 %v6388_v16 }
 0x38f   :  { %4784 = vmatpush1.bf16.msra.mxu0 %v6391_v20 }
 0x390   :  { %4786 = vmatprep.subr.bf16.mxu0 %v6394_v32 }
 0x393   :  { %4788 = vmatpush1.bf16.msra.mxu0 %v6397_v29 }
 0x394   :  { %4822 = vmatprep.subr.bf16.mxu0 %v6146_v49  ;;  %v6910_v49 = vsub.s32 4, %v6074_v59 }
 0x396   :  { %2073 = vmatmul.mubr.f32.vlgmr.msra.gmra.mrb[8].mxu0 %v6939_v57 }
 0x397   :  { %4824 = vmatpush1.bf16.msra.mxu0 %v6179_v34  ;;  %2281 = vmatprep.mubr.f32.mxu0 %v6939_v57  ;;  %v6421_v34 = vld [vmem:[#allocation16] sm:$0xff] }
 0x398   :  { %4826 = vmatprep.subr.bf16.mxu0 %v6183_v41  ;;  %v6908_v41 = vsub.s32 5, %v6074_v59  ;;  %v1323_v63 = vrot.slane %v6421_v34, %v6912_v52  ;;  %v1327_v39 = vrot.slane %v6421_v34, %v6911_v62  ;;  %v3338_v62 = vld [vmem:[#allocation15 + $0x6f8] sm:$0xff]  ;;  %v3340_v52 = vld [vmem:[#allocation15 + $0x708] sm:$0xff] }
 0x39b   :  { %4828 = vmatpush1.bf16.msra.mxu0 %v6189_v48  ;;  %v1315_v48 = vrot.slane %v6421_v34, %v6150_v54 }
 0x39c   :  { %4830 = vmatprep.subr.bf16.mxu0 %v6192_v55  ;;  %v1331_v55 = vrot.slane %v6421_v34, %v6910_v49  ;;  %v3334_v49 = vld [vmem:[#allocation15 + $0x6d8] sm:$0xff] }
 0x39f   :  { %4832 = vmatpush1.bf16.msra.mxu0 %v6196_v24  ;;  %v1319_v24 = vrot.slane %v6421_v34, %v6153_v53 }
 0x3a0   :  { %4834 = vmatprep.subr.bf16.mxu0 %v6199_v1  ;;  %v1335_v1 = vrot.slane %v6421_v34, %v6908_v41  ;;  %v3332_v41 = vld [vmem:[#allocation15 + $0x6c8] sm:$0xff] }
 0x3a3   :  { %4836 = vmatpush1.bf16.msra.mxu0 %v6202_v10 }
 0x3a4   :  { %4838 = vmatprep.subr.bf16.mxu0 %v6205_v15 }
 0x3a7   :  { %4840 = vmatpush1.bf16.msra.mxu0 %v6208_v22 }
 0x3a8   :  { %4842 = vmatprep.subr.bf16.mxu0 %v6211_v30 }
 0x3ab   :  { %4844 = vmatpush1.bf16.msra.mxu0 %v6214_v42 }
 0x3ac   :  { %4846 = vmatprep.subr.bf16.mxu0 %v6217_v47 }
 0x3af   :  { %4848 = vmatpush1.bf16.msra.mxu0 %v6220_v58 }
 0x3b0   :  { %4850 = vmatprep.subr.bf16.mxu0 %v6223_v36 }
 0x3b3   :  { %4852 = vmatpush1.bf16.msra.mxu0 %v6226_v7 }
 0x3b4   :  { %4886 = vmatprep.subr.bf16.mxu0 %v6347_v61 }
 0x3c9   :  { %v1441_v10 = vpop.f32.mrb[2].mxu0  ;;  %v1583_v15 = vpop.f32.mrb[4].mxu1 }
 0x3ca   :  { %v1442_v22 = vadd.f32 %v1441_v10, %v1315_v48  ;;  %v6434_v30 = vadd.f32 %v1583_v15, %v1331_v55  ;;  %v1443_v42 = vpop.f32.mrb[3].mxu0  ;;  %v1585_v47 = vpop.f32.mrb[5].mxu1 }
 0x3cb   :  { %v1444_v58 = vadd.f32 %v1443_v42, %v1319_v24  ;;  %v6436_v36 = vadd.f32 %v1585_v47, %v1335_v1 }
 0x3cd   :  { %v1667_v7 = vcombine.low %v1442_v22, %v1444_v58  ;;  %v1685_v61 = vcombine.low %v6434_v30, %v6436_v36  ;;  %v6946_v30 = vld [vmem:[#allocation35_spill] sm:$0xff] }
 0x3cf   :  { %v6450_v19 = vrot.slane %v1667_v7, %v6077_v8 }
 0x3ea   :  { %v1907_v45 = vpop.f32.mrb[6].mxu1 }
 0x3eb   :  { %v1909_v2 = vpop.f32.mrb[7].mxu1 }
 0x3ec   :  { %v1987_v3 = vcombine.low %v1907_v45, %v1909_v2 }
 0x3ee   :  { %v1995_v25 = vrot.slane %v1987_v3, %v6077_v8 }
 0x409   :  { %v1512_v6 = vpop.f32.mrb[4].mxu0 }
 0x40a   :  { %v1513_v50 = vadd.f32 %v1512_v6, %v1323_v63  ;;  %v1514_v18 = vpop.f32.mrb[5].mxu0 }
 0x40b   :  { %v1515_v26 = vadd.f32 %v1514_v18, %v1327_v39  ;;  %v1978_v27 = vpop.f32.mrb[8].mxu1 }
 0x40c   :  { %v1980_v35 = vpop.f32.mrb[9].mxu1 }
 0x40d   :  { %v1668_v40 = vcombine.low %v1513_v50, %v1515_v26  ;;  %v1988_v11 = vcombine.low %v1978_v27, %v1980_v35  ;;  %v6909_v27 = vsub.s32 6, %v6074_v59  ;;  %v6907_v35 = vsub.s32 7, %v6074_v59 }
 0x40f   :  { %v6453_v4 = vrot.slane %v1668_v40, %v6077_v8  ;;  %v2002_v33 = vrot.slane %v1988_v11, %v6077_v8  ;;  %v1339_v40 = vrot.slane %v6421_v34, %v6909_v27  ;;  %v3336_v27 = vld [vmem:[#allocation15 + $0x6e8] sm:$0xff] }
 0x411   :  { %v1683_v48 = vcombine.low %v6450_v19, %v6453_v4  ;;  %v1684_v55 = vcombine.high %v6450_v19, %v6453_v4  ;;  %v2003_v24 = vcombine.low %v1995_v25, %v2002_v33  ;;  %v1343_v25 = vrot.slane %v6421_v34, %v6907_v35  ;;  %v2770_v4 = vld [vmem:[#allocation13 + $0xd88] sm:$0xff]  ;;  %v3330_v35 = vld [vmem:[#allocation15 + $0x6b8] sm:$0xff] }
 0x413   :  { %v2005_v1 = vadd.f32 %v2003_v24, %v1683_v48  ;;  %v6942_v48 = vld [vmem:[#allocation31_spill] sm:$0xff]  ;;  %v6943_v24 = vld [vmem:[#allocation32_spill] sm:$0xff] }
 0x415   :  { %v4272_v10 = vmul.f32 -1.442695, %v2005_v1  ;;  %v2180_v42 = vrot.slane %v2005_v1, 6  ;;  %v6944_v1 = vld [vmem:[#allocation33_spill] sm:$0xff] }
 0x417   :  { %5523 = vpow2.f32 %v4272_v10 }
 0x421   :  { %v5524_v15 = vpop.eup %5523 }
 0x422   :  { %v2176_v22 = vadd.f32 1.0, %v5524_v15 }
 0x424   :  { %5525 = vrcp.f32 %v2176_v22 }
 0x425   :  { %5527 = vtanh.f32 %v2180_v42 }
 0x42b   :  { %v6460_v47 = vpop.f32.mrb[10].mxu1 }
 0x42c   :  { %v6462_v58 = vpop.f32.mrb[11].mxu1 }
 0x42d   :  { %v2155_v7 = vcombine.low %v6460_v47, %v6462_v58  ;;  %v2594_v47 = vld [vmem:[#allocation13 + $0x808] sm:$0xff] }
 0x42e   :  { %v5526_v45 = vpop.eup %5525  ;;  %v2602_v58 = vld [vmem:[#allocation13 + $0x848] sm:$0xff] }
 0x42f   :  { %v2184_v2 = vrot.slane %v5526_v45, 2  ;;  %v5528_v3 = vpop.eup %5527  ;;  %v2190_v50 = vrot.slane %v5526_v45, 4 }
 0x430   :  { %v2187_v63 = vmul.f32 %v5528_v3, %v5526_v45  ;;  %v4949_v45 = vpack.c.bf16 %v2602_v58, %v2594_v47  ;;  %v2593_v3 = vld [vmem:[#allocation13 + $0x800] sm:$0xff]  ;;  %v2643_v47 = vld [vmem:[#allocation13 + $0x990] sm:$0xff] }
 0x431   :  { %v2186_v39 = vmul.f32 0.0, %v2184_v2  ;;  %v2604_v2 = vld [vmem:[#allocation13 + $0x858] sm:$0xff]  ;;  %v2651_v58 = vld [vmem:[#allocation13 + $0x9d0] sm:$0xff] }
 0x433   :  { %v6466_v6 = vadd.f32 %v2187_v63, %v2186_v39  ;;  %v2601_v63 = vld [vmem:[#allocation13 + $0x840] sm:$0xff] }
 0x435   :  { %5529 = vtanh.f32 %v6466_v6 }
 0x43f   :  { %v5530_v18 = vpop.eup %5529 }
 0x440   :  { %v2192_v26 = vmul.f32 %v5530_v18, %v2190_v50  ;;  %v4951_v50 = vpack.c.bf16 %v2601_v63, %v2593_v3  ;;  %v2595_v18 = vld [vmem:[#allocation13 + $0x810] sm:$0xff]  ;;  %v2660_v3 = vld [vmem:[#allocation13 + $0xa18] sm:$0xff] }
 0x442   :  { %2213 = vst [vmem:[#allocation2] sm:$0x3] %v2192_v26  ;;  %2282 = vmatmul.mubr.f32.vlgmr.msra.gmra.mrb[10].mxu0 %v2192_v26  ;;  %2353 = vmatmul.mubr.f32.vlgmr.msra.gmra.mrb[12].mxu1 %v2192_v26  ;;  %v2603_v26 = vld [vmem:[#allocation13 + $0x850] sm:$0xff] }
 0x443   :  { %4888 = vmatpush1.bf16.msra.mxu0 %v6351_v17  ;;  %4920 = vmatpush1.bf16.msra.mxu1 %v6283_v28  ;;  %v6940_v17 = vld [vmem:[#allocation29_spill] sm:$0xff]  ;;  %v6941_v28 = vld [vmem:[#allocation30_spill] sm:$0xff] }
 0x444   :  { %4890 = vmatprep.subr.bf16.mxu0 %v6354_v0  ;;  %4922 = vmatprep.subr.bf16.mxu1 %v6286_v31 }
 0x445   :  { %2447 = vmatprep.mubr.f32.mxu0 %v6939_v57  ;;  %2518 = vmatprep.mubr.f32.mxu1 %v6939_v57 }
 0x447   :  { %4892 = vmatpush1.bf16.msra.mxu0 %v6360_v21  ;;  %4924 = vmatpush1.bf16.msra.mxu1 %v6940_v17  ;;  %v6495_v21 = vrot.slane %v1685_v61, %v6077_v8  ;;  %v2618_v17 = vld [vmem:[#allocation13 + $0x8c8] sm:$0xff] }
 0x448   :  { %4894 = vmatprep.subr.bf16.mxu0 %v6364_v37  ;;  %4926 = vmatprep.subr.bf16.mxu1 %v6941_v28  ;;  %v2612_v28 = vld [vmem:[#allocation13 + $0x898] sm:$0xff] }
 0x449   :  { %v1654_v31 = vpop.f32.mrb[6].mxu0 }
 0x44a   :  { %v1655_v0 = vadd.f32 %v1654_v31, %v1339_v40  ;;  %v1656_v11 = vpop.f32.mrb[7].mxu0  ;;  %v5015_v40 = vpack.c.bf16 %v2603_v26, %v2595_v18  ;;  %v2665_v18 = vld [vmem:[#allocation13 + $0xa40] sm:$0xff] }
 0x44b   :  { %v1657_v33 = vadd.f32 %v1656_v11, %v1343_v25  ;;  %4896 = vmatpush1.bf16.msra.mxu0 %v6367_v56  ;;  %4928 = vmatpush1.bf16.msra.mxu1 %v6942_v48  ;;  %v6945_v56 = vld [vmem:[#allocation34_spill] sm:$0xff]  ;;  %v2610_v25 = vld [vmem:[#allocation13 + $0x888] sm:$0xff] }
 0x44c   :  { %4898 = vmatprep.subr.bf16.mxu0 %v6370_v23  ;;  %4930 = vmatprep.subr.bf16.mxu1 %v6943_v24  ;;  %v4953_v31 = vpack.c.bf16 %v2618_v17, %v2610_v25  ;;  %v2609_v11 = vld [vmem:[#allocation13 + $0x880] sm:$0xff]  ;;  %v2659_v25 = vld [vmem:[#allocation13 + $0xa10] sm:$0xff] }
 0x44d   :  { %v1686_v34 = vcombine.low %v1655_v0, %v1657_v33  ;;  %v2620_v0 = vld [vmem:[#allocation13 + $0x8d8] sm:$0xff]  ;;  %v2617_v33 = vld [vmem:[#allocation13 + $0x8c0] sm:$0xff]  ;;  %v2667_v17 = vld [vmem:[#allocation13 + $0xa50] sm:$0xff] }
 0x44e   :  { %v5017_v48 = vpack.c.bf16 %v2620_v0, %v2612_v28  ;;  %v4955_v24 = vpack.c.bf16 %v2617_v33, %v2609_v11  ;;  %v5031_v28 = vpack.c.bf16 %v2667_v17, %v2659_v25  ;;  %v2682_v0 = vld [vmem:[#allocation13 + $0xac8] sm:$0xff]  ;;  %v2676_v11 = vld [vmem:[#allocation13 + $0xa98] sm:$0xff] }
 0x44f   :  { %v6498_v37 = vrot.slane %v1686_v34, %v6077_v8  ;;  %4900 = vmatpush1.bf16.msra.mxu0 %v6373_v13  ;;  %4932 = vmatpush1.bf16.msra.mxu1 %v6944_v1  ;;  %v2611_v34 = vld [vmem:[#allocation13 + $0x890] sm:$0xff] }
 0x450   :  { %4902 = vmatprep.subr.bf16.mxu0 %v6376_v60  ;;  %4934 = vmatprep.subr.bf16.mxu1 %v6945_v56  ;;  %v2619_v1 = vld [vmem:[#allocation13 + $0x8d0] sm:$0xff] }
 0x451   :  { %v1701_v23 = vcombine.low %v6495_v21, %v6498_v37  ;;  %v1702_v10 = vcombine.high %v6495_v21, %v6498_v37  ;;  %v5019_v56 = vpack.c.bf16 %v2619_v1, %v2611_v34  ;;  %v2681_v34 = vld [vmem:[#allocation13 + $0xac0] sm:$0xff] }
 0x452   :  { %v2597_v37 = vld [vmem:[#allocation13 + $0x820] sm:$0xff] }
 0x453   :  { %4904 = vmatpush1.bf16.msra.mxu0 %v6379_v14  ;;  %4936 = vmatpush1.bf16.msra.mxu1 %v6310_v38 }
 0x454   :  { %4906 = vmatprep.subr.bf16.mxu0 %v6382_v5  ;;  %4938 = vmatprep.subr.bf16.mxu1 %v6946_v30  ;;  %v2634_v30 = vld [vmem:[#allocation13 + $0x948] sm:$0xff] }
 0x457   :  { %4908 = vmatpush1.bf16.msra.mxu0 %v6385_v43  ;;  %4940 = vmatpush1.bf16.msra.mxu1 %v6316_v9  ;;  %v2169_v9 = vrot.slane %v2155_v7, %v6077_v8  ;;  %v2596_v7 = vld [vmem:[#allocation13 + $0x818] sm:$0xff] }
 0x458   :  { %4910 = vmatprep.subr.bf16.mxu0 %v6388_v16  ;;  %4942 = vmatprep.subr.bf16.mxu1 %v6319_v12  ;;  %v5013_v39 = vpack.c.bf16 %v2604_v2, %v2596_v7  ;;  %v5027_v7 = vpack.c.bf16 %v2651_v58, %v2643_v47  ;;  %v2666_v2 = vld [vmem:[#allocation13 + $0xa48] sm:$0xff]  ;;  %v2713_v47 = vld [vmem:[#allocation13 + $0xbc0] sm:$0xff] }
 0x45b   :  { %4912 = vmatpush1.bf16.msra.mxu0 %v6391_v20  ;;  %4944 = vmatpush1.bf16.msra.mxu1 %v6322_v46 }
 0x45c   :  { %4914 = vmatprep.subr.bf16.mxu0 %v6394_v32  ;;  %4946 = vmatprep.subr.bf16.mxu1 %v6325_v51 }
 0x45f   :  { %4916 = vmatpush1.bf16.msra.mxu0 %v6397_v29  ;;  %4948 = vmatpush1.bf16.msra.mxu1 %v6328_v44 }
 0x460   :  { %4950 = vmatprep.subr.bf16.mxu0 %v4949_v45  ;;  %5014 = vmatprep.subr.bf16.mxu1 %v5013_v39  ;;  %v2658_v45 = vld [vmem:[#allocation13 + $0xa08] sm:$0xff]  ;;  %v2668_v39 = vld [vmem:[#allocation13 + $0xa58] sm:$0xff] }
 0x461   :  { %v4965_v63 = vpack.c.bf16 %v2666_v2, %v2658_v45  ;;  %v5029_v26 = vpack.c.bf16 %v2668_v39, %v2660_v3  ;;  %v2707_v45 = vld [vmem:[#allocation13 + $0xb90] sm:$0xff] }
 0x462   :  { %v2715_v2 = vld [vmem:[#allocation13 + $0xbd0] sm:$0xff] }
 0x463   :  { %v5043_v3 = vpack.c.bf16 %v2715_v2, %v2707_v45 }
 0x469   :  { %v2074_v38 = vpop.f32.mrb[8].mxu0 }
 0x46a   :  { %v2076_v13 = vpop.f32.mrb[9].mxu0 }
 0x46b   :  { %v2154_v60 = vcombine.low %v2074_v38, %v2076_v13  ;;  %v2628_v38 = vld [vmem:[#allocation13 + $0x918] sm:$0xff] }
 0x46d   :  { %v2162_v14 = vrot.slane %v2154_v60, %v6077_v8  ;;  %v2625_v60 = vld [vmem:[#allocation13 + $0x900] sm:$0xff] }
 0x46f   :  { %v2170_v12 = vcombine.low %v2162_v14, %v2169_v9  ;;  %v2636_v9 = vld [vmem:[#allocation13 + $0x958] sm:$0xff]  ;;  %v2633_v14 = vld [vmem:[#allocation13 + $0x940] sm:$0xff] }
 0x471   :  { %v2172_v5 = vadd.f32 %v2170_v12, %v1702_v10  ;;  %v2626_v10 = vld [vmem:[#allocation13 + $0x908] sm:$0xff]  ;;  %v5021_v12 = vpack.c.bf16 %v2636_v9, %v2628_v38 }
 0x472   :  { %v4957_v13 = vpack.c.bf16 %v2634_v30, %v2626_v10  ;;  %v2675_v10 = vld [vmem:[#allocation13 + $0xa90] sm:$0xff]  ;;  %v2698_v9 = vld [vmem:[#allocation13 + $0xb48] sm:$0xff] }
 0x473   :  { %v4273_v43 = vmul.f32 -1.442695, %v2172_v5  ;;  %v2200_v20 = vrot.slane %v2172_v5, 6  ;;  %v4959_v5 = vpack.c.bf16 %v2633_v14, %v2625_v60  ;;  %v2683_v30 = vld [vmem:[#allocation13 + $0xad0] sm:$0xff]  ;;  %v2692_v60 = vld [vmem:[#allocation13 + $0xb18] sm:$0xff] }
 0x474   :  { %v5035_v38 = vpack.c.bf16 %v2683_v30, %v2675_v10 }
 0x475   :  { %5531 = vpow2.f32 %v4273_v43  ;;  %v2627_v43 = vld [vmem:[#allocation13 + $0x910] sm:$0xff] }
 0x47f   :  { %v5532_v46 = vpop.eup %5531 }
 0x480   :  { %v2196_v16 = vadd.f32 1.0, %v5532_v46  ;;  %v2635_v46 = vld [vmem:[#allocation13 + $0x950] sm:$0xff] }
 0x482   :  { %5533 = vrcp.f32 %v2196_v16  ;;  %v5023_v16 = vpack.c.bf16 %v2635_v46, %v2627_v43  ;;  %v2697_v43 = vld [vmem:[#allocation13 + $0xb40] sm:$0xff] }
 0x483   :  { %5535 = vtanh.f32 %v2200_v20  ;;  %v2642_v20 = vld [vmem:[#allocation13 + $0x988] sm:$0xff] }
 0x48c   :  { %v5534_v51 = vpop.eup %5533 }
 0x48d   :  { %v2204_v32 = vrot.slane %v5534_v51, 2  ;;  %v5536_v29 = vpop.eup %5535  ;;  %v2210_v15 = vrot.slane %v5534_v51, 4 }
 0x48e   :  { %v2207_v44 = vmul.f32 %v5536_v29, %v5534_v51  ;;  %v2650_v51 = vld [vmem:[#allocation13 + $0x9c8] sm:$0xff] }
 0x48f   :  { %v2206_v36 = vmul.f32 0.0, %v2204_v32  ;;  %v2644_v32 = vld [vmem:[#allocation13 + $0x998] sm:$0xff]  ;;  %v4961_v29 = vpack.c.bf16 %v2650_v51, %v2642_v20  ;;  %v2691_v20 = vld [vmem:[#allocation13 + $0xb10] sm:$0xff] }
 0x490   :  { %v2699_v51 = vld [vmem:[#allocation13 + $0xb50] sm:$0xff] }
 0x491   :  { %v6524_v61 = vadd.f32 %v2207_v44, %v2206_v36  ;;  %v2652_v44 = vld [vmem:[#allocation13 + $0x9d8] sm:$0xff]  ;;  %v2641_v36 = vld [vmem:[#allocation13 + $0x980] sm:$0xff] }
 0x493   :  { %5537 = vtanh.f32 %v6524_v61 }
 0x49d   :  { %v5538_v22 = vpop.eup %5537 }
 0x49e   :  { %v2212_v42 = vmul.f32 %v5538_v22, %v2210_v15  ;;  %v2649_v15 = vld [vmem:[#allocation13 + $0x9c0] sm:$0xff]  ;;  %v5025_v22 = vpack.c.bf16 %v2652_v44, %v2644_v32  ;;  %v5039_v32 = vpack.c.bf16 %v2699_v51, %v2691_v20  ;;  %v2714_v44 = vld [vmem:[#allocation13 + $0xbc8] sm:$0xff]  ;;  %v2739_v20 = vld [vmem:[#allocation13 + $0xc90] sm:$0xff] }
 0x49f   :  { %v2747_v51 = vld [vmem:[#allocation13 + $0xcd0] sm:$0xff] }
 0x4a0   :  { %2215 = vst [vmem:[#allocation2 + $0x6] sm:$0x3] %v2212_v42  ;;  %2448 = vmatmul.mubr.f32.vlgmr.msra.gmra.mrb[12].mxu0 %v2212_v42  ;;  %2519 = vmatmul.mubr.f32.vlgmr.msra.gmra.mrb[14].mxu1 %v2212_v42  ;;  %v4963_v42 = vpack.c.bf16 %v2649_v15, %v2641_v36  ;;  %v2708_v36 = vld [vmem:[#allocation13 + $0xb98] sm:$0xff] }
 0x4a1   :  { %4952 = vmatpush1.bf16.msra.mxu0 %v4951_v50  ;;  %5016 = vmatpush1.bf16.msra.mxu1 %v5015_v40  ;;  %v2657_v50 = vld [vmem:[#allocation13 + $0xa00] sm:$0xff] }
 0x4a2   :  { %4954 = vmatprep.subr.bf16.mxu0 %v4953_v31  ;;  %5018 = vmatprep.subr.bf16.mxu1 %v5017_v48  ;;  %v4967_v40 = vpack.c.bf16 %v2665_v18, %v2657_v50  ;;  %v2674_v31 = vld [vmem:[#allocation13 + $0xa88] sm:$0xff]  ;;  %v2684_v48 = vld [vmem:[#allocation13 + $0xad8] sm:$0xff] }
 0x4a3   :  { %v4969_v33 = vpack.c.bf16 %v2682_v0, %v2674_v31  ;;  %v5033_v1 = vpack.c.bf16 %v2684_v48, %v2676_v11  ;;  %v2722_v50 = vld [vmem:[#allocation13 + $0xc08] sm:$0xff]  ;;  %v2721_v31 = vld [vmem:[#allocation13 + $0xc00] sm:$0xff] }
 0x4a4   :  { %v2730_v18 = vld [vmem:[#allocation13 + $0xc48] sm:$0xff]  ;;  %v2729_v0 = vld [vmem:[#allocation13 + $0xc40] sm:$0xff] }
 0x4a5   :  { %4956 = vmatpush1.bf16.msra.mxu0 %v4955_v24  ;;  %5020 = vmatpush1.bf16.msra.mxu1 %v5019_v56  ;;  %v2673_v24 = vld [vmem:[#allocation13 + $0xa80] sm:$0xff]  ;;  %v4981_v17 = vpack.c.bf16 %v2730_v18, %v2722_v50  ;;  %v2780_v18 = vld [vmem:[#allocation13 + $0xdd8] sm:$0xff] }
 0x4a6   :  { %4958 = vmatprep.subr.bf16.mxu0 %v4957_v13  ;;  %5022 = vmatprep.subr.bf16.mxu1 %v5021_v12  ;;  %v4971_v56 = vpack.c.bf16 %v2681_v34, %v2673_v24  ;;  %v2690_v13 = vld [vmem:[#allocation13 + $0xb08] sm:$0xff]  ;;  %v2700_v12 = vld [vmem:[#allocation13 + $0xb58] sm:$0xff]  ;;  %v4983_v24 = vpack.c.bf16 %v2729_v0, %v2721_v31  ;;  %v2723_v34 = vld [vmem:[#allocation13 + $0xc10] sm:$0xff] }
 0x4a7   :  { %v4973_v14 = vpack.c.bf16 %v2698_v9, %v2690_v13  ;;  %v5037_v46 = vpack.c.bf16 %v2700_v12, %v2692_v60  ;;  %v2746_v13 = vld [vmem:[#allocation13 + $0xcc8] sm:$0xff]  ;;  %v2740_v9 = vld [vmem:[#allocation13 + $0xc98] sm:$0xff]  ;;  %v2737_v12 = vld [vmem:[#allocation13 + $0xc80] sm:$0xff] }
 0x4a8   :  { %v2779_v31 = vld [vmem:[#allocation13 + $0xdd0] sm:$0xff] }
 0x4a9   :  { %4960 = vmatpush1.bf16.msra.mxu0 %v4959_v5  ;;  %5024 = vmatpush1.bf16.msra.mxu1 %v5023_v16  ;;  %v2689_v5 = vld [vmem:[#allocation13 + $0xb00] sm:$0xff] }
 0x4aa   :  { %4962 = vmatprep.subr.bf16.mxu0 %v4961_v29  ;;  %5026 = vmatprep.subr.bf16.mxu1 %v5025_v22  ;;  %v4975_v16 = vpack.c.bf16 %v2697_v43, %v2689_v5  ;;  %v2706_v29 = vld [vmem:[#allocation13 + $0xb88] sm:$0xff]  ;;  %v2716_v22 = vld [vmem:[#allocation13 + $0xbd8] sm:$0xff]  ;;  %v2745_v5 = vld [vmem:[#allocation13 + $0xcc0] sm:$0xff] }
 0x4ab   :  { %v4977_v15 = vpack.c.bf16 %v2714_v44, %v2706_v29  ;;  %v5041_v58 = vpack.c.bf16 %v2716_v22, %v2708_v36  ;;  %v2754_v44 = vld [vmem:[#allocation13 + $0xd08] sm:$0xff] }
 0x4ac   :  { %v2762_v36 = vld [vmem:[#allocation13 + $0xd48] sm:$0xff] }
 0x4ad   :  { %4964 = vmatpush1.bf16.msra.mxu0 %v4963_v42  ;;  %5028 = vmatpush1.bf16.msra.mxu1 %v5027_v7  ;;  %v2705_v42 = vld [vmem:[#allocation13 + $0xb80] sm:$0xff]  ;;  %v4989_v22 = vpack.c.bf16 %v2762_v36, %v2754_v44  ;;  %v2803_v44 = vld [vmem:[#allocation13 + $0xe90] sm:$0xff] }
 0x4ae   :  { %4966 = vmatprep.subr.bf16.mxu0 %v4965_v63  ;;  %5030 = vmatprep.subr.bf16.mxu1 %v5029_v26  ;;  %v4979_v7 = vpack.c.bf16 %v2713_v47, %v2705_v42  ;;  %v2724_v26 = vld [vmem:[#allocation13 + $0xc18] sm:$0xff]  ;;  %v2753_v47 = vld [vmem:[#allocation13 + $0xd00] sm:$0xff]  ;;  %v2811_v36 = vld [vmem:[#allocation13 + $0xed0] sm:$0xff] }
 0x4af   :  { %v2764_v42 = vld [vmem:[#allocation13 + $0xd58] sm:$0xff] }
 0x4b1   :  { %4968 = vmatpush1.bf16.msra.mxu0 %v4967_v40  ;;  %5032 = vmatpush1.bf16.msra.mxu1 %v5031_v28  ;;  %v2732_v28 = vld [vmem:[#allocation13 + $0xc58] sm:$0xff] }
 0x4b2   :  { %4970 = vmatprep.subr.bf16.mxu0 %v4969_v33  ;;  %5034 = vmatprep.subr.bf16.mxu1 %v5033_v1  ;;  %v5045_v48 = vpack.c.bf16 %v2732_v28, %v2724_v26  ;;  %v2731_v1 = vld [vmem:[#allocation13 + $0xc50] sm:$0xff]  ;;  %v2769_v26 = vld [vmem:[#allocation13 + $0xd80] sm:$0xff] }
 0x4b3   :  { %v2771_v28 = vld [vmem:[#allocation13 + $0xd90] sm:$0xff] }
 0x4b4   :  { %v5059_v0 = vpack.c.bf16 %v2779_v31, %v2771_v28  ;;  %v2841_v31 = vld [vmem:[#allocation13 + $0xfc0] sm:$0xff] }
 0x4b5   :  { %4972 = vmatpush1.bf16.msra.mxu0 %v4971_v56  ;;  %5036 = vmatpush1.bf16.msra.mxu1 %v5035_v38  ;;  %v5047_v56 = vpack.c.bf16 %v2731_v1, %v2723_v34  ;;  %v2738_v38 = vld [vmem:[#allocation13 + $0xc88] sm:$0xff]  ;;  %v2796_v34 = vld [vmem:[#allocation13 + $0xe58] sm:$0xff]  ;;  %v2785_v1 = vld [vmem:[#allocation13 + $0xe00] sm:$0xff] }
 0x4b6   :  { %4974 = vmatprep.subr.bf16.mxu0 %v4973_v14  ;;  %5038 = vmatprep.subr.bf16.mxu1 %v5037_v46  ;;  %v4985_v60 = vpack.c.bf16 %v2746_v13, %v2738_v38  ;;  %v2748_v14 = vld [vmem:[#allocation13 + $0xcd8] sm:$0xff]  ;;  %v2787_v38 = vld [vmem:[#allocation13 + $0xe10] sm:$0xff] }
 0x4b7   :  { %v5049_v46 = vpack.c.bf16 %v2748_v14, %v2740_v9  ;;  %v2795_v13 = vld [vmem:[#allocation13 + $0xe50] sm:$0xff]  ;;  %v2810_v14 = vld [vmem:[#allocation13 + $0xec8] sm:$0xff] }
 0x4b8   :  { %v5063_v9 = vpack.c.bf16 %v2795_v13, %v2787_v38 }
 0x4b9   :  { %4976 = vmatpush1.bf16.msra.mxu0 %v4975_v16  ;;  %5040 = vmatpush1.bf16.msra.mxu1 %v5039_v32  ;;  %v4987_v16 = vpack.c.bf16 %v2745_v5, %v2737_v12  ;;  %v5051_v32 = vpack.c.bf16 %v2747_v51, %v2739_v20  ;;  %v2804_v12 = vld [vmem:[#allocation13 + $0xe98] sm:$0xff] }
 0x4ba   :  { %4978 = vmatprep.subr.bf16.mxu0 %v4977_v15  ;;  %5042 = vmatprep.subr.bf16.mxu1 %v5041_v58  ;;  %v2756_v15 = vld [vmem:[#allocation13 + $0xd18] sm:$0xff]  ;;  %v2761_v58 = vld [vmem:[#allocation13 + $0xd40] sm:$0xff] }
 0x4bb   :  { %v5053_v45 = vpack.c.bf16 %v2764_v42, %v2756_v15  ;;  %v4991_v2 = vpack.c.bf16 %v2761_v58, %v2753_v47  ;;  %v2818_v15 = vld [vmem:[#allocation13 + $0xf08] sm:$0xff]  ;;  %v5067_v47 = vpack.c.bf16 %v2811_v36, %v2803_v44 }
 0x4bc   :  { %v2826_v58 = vld [vmem:[#allocation13 + $0xf48] sm:$0xff] }
 0x4bd   :  { %4980 = vmatpush1.bf16.msra.mxu0 %v4979_v7  ;;  %5044 = vmatpush1.bf16.msra.mxu1 %v5043_v3  ;;  %v2755_v3 = vld [vmem:[#allocation13 + $0xd10] sm:$0xff] }
 0x4be   :  { %4982 = vmatprep.subr.bf16.mxu0 %v4981_v17  ;;  %5046 = vmatprep.subr.bf16.mxu1 %v5045_v48  ;;  %v2788_v48 = vld [vmem:[#allocation13 + $0xe18] sm:$0xff] }
 0x4c1   :  { %4984 = vmatpush1.bf16.msra.mxu0 %v4983_v24  ;;  %5048 = vmatpush1.bf16.msra.mxu1 %v5047_v56  ;;  %v2793_v56 = vld [vmem:[#allocation13 + $0xe40] sm:$0xff] }
 0x4c2   :  { %4986 = vmatprep.subr.bf16.mxu0 %v4985_v60  ;;  %5050 = vmatprep.subr.bf16.mxu1 %v5049_v46  ;;  %v2802_v60 = vld [vmem:[#allocation13 + $0xe88] sm:$0xff]  ;;  %v2801_v46 = vld [vmem:[#allocation13 + $0xe80] sm:$0xff] }
 0x4c3   :  { %v5001_v5 = vpack.c.bf16 %v2810_v14, %v2802_v60 }
 0x4c5   :  { %4988 = vmatpush1.bf16.msra.mxu0 %v4987_v16  ;;  %5052 = vmatpush1.bf16.msra.mxu1 %v5051_v32  ;;  %v2809_v16 = vld [vmem:[#allocation13 + $0xec0] sm:$0xff] }
 0x4c6   :  { %4990 = vmatprep.subr.bf16.mxu0 %v4989_v22  ;;  %5054 = vmatprep.subr.bf16.mxu1 %v5053_v45  ;;  %v5003_v32 = vpack.c.bf16 %v2809_v16, %v2801_v46  ;;  %v2828_v45 = vld [vmem:[#allocation13 + $0xf58] sm:$0xff] }
 0x4c9   :  { %4992 = vmatpush1.bf16.msra.mxu0 %v4991_v2  ;;  %v5005_v2 = vpack.c.bf16 %v2826_v58, %v2818_v15 }
 0x515   :  { %v2283_v63 = vpop.f32.mrb[10].mxu0  ;;  %v2354_v39 = vpop.f32.mrb[12].mxu1 }
 0x516   :  { %v2285_v40 = vpop.f32.mrb[11].mxu0  ;;  %v2356_v25 = vpop.f32.mrb[13].mxu1 }
 0x517   :  { %v2363_v11 = vcombine.low %v2283_v63, %v2285_v40  ;;  %v2364_v33 = vcombine.low %v2354_v39, %v2356_v25  ;;  %v2763_v63 = vld [vmem:[#allocation13 + $0xd50] sm:$0xff]  ;;  %v2772_v39 = vld [vmem:[#allocation13 + $0xd98] sm:$0xff]  ;;  %v2777_v40 = vld [vmem:[#allocation13 + $0xdc0] sm:$0xff] }
 0x518   :  { %v5055_v19 = vpack.c.bf16 %v2763_v63, %v2755_v3  ;;  %v5057_v25 = vpack.c.bf16 %v2780_v18, %v2772_v39  ;;  %v4995_v17 = vpack.c.bf16 %v2777_v40, %v2769_v26  ;;  %v2817_v63 = vld [vmem:[#allocation13 + $0xf00] sm:$0xff]  ;;  %v2827_v39 = vld [vmem:[#allocation13 + $0xf50] sm:$0xff]  ;;  %v2842_v18 = vld [vmem:[#allocation13 + $0xfc8] sm:$0xff] }
 0x519   :  { %v2371_v10 = vrot.slane %v2363_v11, %v6077_v8  ;;  %v2378_v30 = vrot.slane %v2364_v33, %v6077_v8  ;;  %v2786_v11 = vld [vmem:[#allocation13 + $0xe08] sm:$0xff]  ;;  %v2836_v40 = vld [vmem:[#allocation13 + $0xf98] sm:$0xff] }
 0x51a   :  { %5056 = vmatpush1.bf16.msra.mxu1 %v5055_v19  ;;  %v2794_v33 = vld [vmem:[#allocation13 + $0xe48] sm:$0xff]  ;;  %v2825_v19 = vld [vmem:[#allocation13 + $0xf40] sm:$0xff] }
 0x51b   :  { %v2379_v43 = vcombine.low %v2371_v10, %v2378_v30  ;;  %5058 = vmatprep.subr.bf16.mxu1 %v5057_v25  ;;  %v4997_v24 = vpack.c.bf16 %v2794_v33, %v2786_v11  ;;  %v5061_v10 = vpack.c.bf16 %v2796_v34, %v2788_v48  ;;  %v4999_v30 = vpack.c.bf16 %v2793_v56, %v2785_v1  ;;  %v2844_v25 = vld [vmem:[#allocation13 + $0xfd8] sm:$0xff]  ;;  %v2843_v11 = vld [vmem:[#allocation13 + $0xfd0] sm:$0xff]  ;;  %v2606_v34 = vld [vmem:[#allocation13 + $0x868] sm:$0xff] }
 0x51c   :  { %v5073_v28 = vpack.c.bf16 %v2844_v25, %v2836_v40  ;;  %v2600_v1 = vld [vmem:[#allocation13 + $0x838] sm:$0xff]  ;;  %v2614_v40 = vld [vmem:[#allocation13 + $0x8a8] sm:$0xff] }
 0x51d   :  { %v6532_v29 = vadd.f32 %v2379_v43, %v1684_v55  ;;  %v2778_v55 = vld [vmem:[#allocation13 + $0xdc8] sm:$0xff]  ;;  %v2812_v43 = vld [vmem:[#allocation13 + $0xed8] sm:$0xff] }
 0x51e   :  { %v4993_v50 = vpack.c.bf16 %v2778_v55, %v2770_v4  ;;  %5060 = vmatpush1.bf16.msra.mxu1 %v5059_v0  ;;  %v5065_v51 = vpack.c.bf16 %v2812_v43, %v2804_v12  ;;  %v2819_v4 = vld [vmem:[#allocation13 + $0xf10] sm:$0xff]  ;;  %v5007_v55 = vpack.c.bf16 %v2825_v19, %v2817_v63  ;;  %v2622_v25 = vld [vmem:[#allocation13 + $0x8e8] sm:$0xff] }
 0x51f   :  { %v4274_v7 = vmul.f32 -1.442695, %v6532_v29  ;;  %5062 = vmatprep.subr.bf16.mxu1 %v5061_v10  ;;  %v2555_v42 = vrot.slane %v6532_v29, 6  ;;  %v5071_v29 = vpack.c.bf16 %v2827_v39, %v2819_v4  ;;  %v2835_v0 = vld [vmem:[#allocation13 + $0xf90] sm:$0xff]  ;;  %v2608_v10 = vld [vmem:[#allocation13 + $0x878] sm:$0xff] }
 0x520   :  { %4994 = vmatprep.subr.bf16.mxu0 %v4993_v50  ;;  %v2834_v50 = vld [vmem:[#allocation13 + $0xf88] sm:$0xff]  ;;  %v5075_v48 = vpack.c.bf16 %v2843_v11, %v2835_v0  ;;  %v2613_v11 = vld [vmem:[#allocation13 + $0x8a0] sm:$0xff] }
 0x521   :  { %5539 = vpow2.f32 %v4274_v7  ;;  %4996 = vmatpush1.bf16.msra.mxu0 %v4995_v17  ;;  %v2820_v7 = vld [vmem:[#allocation13 + $0xf18] sm:$0xff]  ;;  %v5009_v26 = vpack.c.bf16 %v2842_v18, %v2834_v50  ;;  %v2833_v17 = vld [vmem:[#allocation13 + $0xf80] sm:$0xff] }
 0x522   :  { %4998 = vmatprep.subr.bf16.mxu0 %v4997_v24  ;;  %5064 = vmatpush1.bf16.msra.mxu1 %v5063_v9  ;;  %v5069_v3 = vpack.c.bf16 %v2828_v45, %v2820_v7  ;;  %v5011_v33 = vpack.c.bf16 %v2841_v31, %v2833_v17  ;;  %v2598_v24 = vld [vmem:[#allocation13 + $0x828] sm:$0xff]  ;;  %v2616_v17 = vld [vmem:[#allocation13 + $0x8b8] sm:$0xff] }
 0x523   :  { %5066 = vmatprep.subr.bf16.mxu1 %v5065_v51  ;;  %v5077_v56 = vpack.c.bf16 %v2606_v34, %v2598_v24  ;;  %v2623_v24 = vld [vmem:[#allocation13 + $0x8f0] sm:$0xff]  ;;  %v2630_v34 = vld [vmem:[#allocation13 + $0x928] sm:$0xff] }
 0x525   :  { %5000 = vmatpush1.bf16.msra.mxu0 %v4999_v30  ;;  %v5141_v30 = vpack.c.bf16 %v2608_v10, %v2600_v1  ;;  %v5081_v1 = vpack.c.bf16 %v2622_v25, %v2614_v40  ;;  %v2638_v10 = vld [vmem:[#allocation13 + $0x968] sm:$0xff]  ;;  %v2688_v40 = vld [vmem:[#allocation13 + $0xaf8] sm:$0xff] }
 0x526   :  { %5002 = vmatprep.subr.bf16.mxu0 %v5001_v5  ;;  %5068 = vmatpush1.bf16.msra.mxu1 %v5067_v47 }
 0x527   :  { %5070 = vmatprep.subr.bf16.mxu1 %v5069_v3 }
 0x529   :  { %5004 = vmatpush1.bf16.msra.mxu0 %v5003_v32 }
 0x52a   :  { %5006 = vmatprep.subr.bf16.mxu0 %v5005_v2  ;;  %5072 = vmatpush1.bf16.msra.mxu1 %v5071_v29  ;;  %v2599_v29 = vld [vmem:[#allocation13 + $0x830] sm:$0xff] }
 0x52b   :  { %v5540_v20 = vpop.eup %5539  ;;  %5074 = vmatprep.subr.bf16.mxu1 %v5073_v28  ;;  %v2624_v28 = vld [vmem:[#allocation13 + $0x8f8] sm:$0xff] }
 0x52c   :  { %v2551_v22 = vadd.f32 1.0, %v5540_v20 }
 0x52d   :  { %5008 = vmatpush1.bf16.msra.mxu0 %v5007_v55 }
 0x52e   :  { %5541 = vrcp.f32 %v2551_v22  ;;  %5010 = vmatprep.subr.bf16.mxu0 %v5009_v26  ;;  %5076 = vmatpush1.bf16.msra.mxu1 %v5075_v48  ;;  %v2607_v26 = vld [vmem:[#allocation13 + $0x870] sm:$0xff] }
 0x52f   :  { %5543 = vtanh.f32 %v2555_v42  ;;  %5142 = vmatprep.subr.bf16.mxu1 %v5141_v30  ;;  %v5143_v0 = vpack.c.bf16 %v2607_v26, %v2599_v29  ;;  %v2615_v48 = vld [vmem:[#allocation13 + $0x8b0] sm:$0xff]  ;;  %v2632_v30 = vld [vmem:[#allocation13 + $0x938] sm:$0xff]  ;;  %v2686_v29 = vld [vmem:[#allocation13 + $0xae8] sm:$0xff] }
 0x530   :  { %v2680_v26 = vld [vmem:[#allocation13 + $0xab8] sm:$0xff] }
 0x531   :  { %5012 = vmatpush1.bf16.msra.mxu0 %v5011_v33  ;;  %v2621_v33 = vld [vmem:[#allocation13 + $0x8e0] sm:$0xff] }
 0x532   :  { %5078 = vmatprep.subr.bf16.mxu0 %v5077_v56  ;;  %v5145_v56 = vpack.c.bf16 %v2624_v28, %v2616_v17  ;;  %v2677_v28 = vld [vmem:[#allocation13 + $0xaa0] sm:$0xff] }
 0x538   :  { %v5542_v38 = vpop.eup %5541 }
 0x539   :  { %v2559_v13 = vrot.slane %v5542_v38, 2  ;;  %v5544_v9 = vpop.eup %5543  ;;  %v2565_v5 = vrot.slane %v5542_v38, 4 }
 0x53a   :  { %v2562_v14 = vmul.f32 %v5544_v9, %v5542_v38  ;;  %v2640_v38 = vld [vmem:[#allocation13 + $0x978] sm:$0xff]  ;;  %v5147_v9 = vpack.c.bf16 %v2623_v24, %v2615_v48  ;;  %v2694_v48 = vld [vmem:[#allocation13 + $0xb28] sm:$0xff] }
 0x53b   :  { %v2561_v60 = vmul.f32 %v2559_v13, %v6466_v6  ;;  %v5083_v13 = vpack.c.bf16 %v2621_v33, %v2613_v11  ;;  %v2679_v11 = vld [vmem:[#allocation13 + $0xab0] sm:$0xff]  ;;  %v2702_v24 = vld [vmem:[#allocation13 + $0xb68] sm:$0xff] }
 0x53c   :  { %v2687_v33 = vld [vmem:[#allocation13 + $0xaf0] sm:$0xff] }
 0x53d   :  { %v2563_v12 = vadd.f32 %v2562_v14, %v2561_v60  ;;  %v2629_v60 = vld [vmem:[#allocation13 + $0x920] sm:$0xff] }
 0x53e   :  { %v2637_v14 = vld [vmem:[#allocation13 + $0x960] sm:$0xff] }
 0x53f   :  { %5545 = vtanh.f32 %v2563_v12  ;;  %v5085_v12 = vpack.c.bf16 %v2638_v10, %v2630_v34  ;;  %v2696_v34 = vld [vmem:[#allocation13 + $0xb38] sm:$0xff]  ;;  %v5163_v10 = vpack.c.bf16 %v2687_v33, %v2679_v11 }
 0x540   :  { %v2760_v11 = vld [vmem:[#allocation13 + $0xd38] sm:$0xff] }
 0x541   :  { %v2768_v33 = vld [vmem:[#allocation13 + $0xd78] sm:$0xff] }
 0x549   :  { %v5546_v43 = vpop.eup %5545 }
 0x54a   :  { %v2567_v46 = vmul.f32 %v5546_v43, %v2565_v5  ;;  %v5149_v5 = vpack.c.bf16 %v2640_v38, %v2632_v30  ;;  %v2631_v43 = vld [vmem:[#allocation13 + $0x930] sm:$0xff]  ;;  %v2693_v30 = vld [vmem:[#allocation13 + $0xb20] sm:$0xff] }
 0x54b   :  { %v2701_v38 = vld [vmem:[#allocation13 + $0xb60] sm:$0xff] }
 0x54c   :  { %2588 = vst [vmem:[#allocation2 + $0x4] sm:$0x3] %v2567_v46  ;;  %v2639_v46 = vld [vmem:[#allocation13 + $0x970] sm:$0xff] }
 0x573   :  { %v2449_v16 = vpop.f32.mrb[12].mxu0  ;;  %v2520_v20 = vpop.f32.mrb[14].mxu1 }
 0x574   :  { %v2451_v51 = vpop.f32.mrb[13].mxu0  ;;  %v2522_v32 = vpop.f32.mrb[15].mxu1 }
 0x575   :  { %v2529_v44 = vcombine.low %v2449_v16, %v2451_v51  ;;  %v2530_v36 = vcombine.low %v2520_v20, %v2522_v32  ;;  %v2646_v16 = vld [vmem:[#allocation13 + $0x9a8] sm:$0xff]  ;;  %v2648_v51 = vld [vmem:[#allocation13 + $0x9b8] sm:$0xff] }
 0x576   :  { %v2654_v20 = vld [vmem:[#allocation13 + $0x9e8] sm:$0xff]  ;;  %v2656_v32 = vld [vmem:[#allocation13 + $0x9f8] sm:$0xff] }
 0x577   :  { %v2537_v15 = vrot.slane %v2529_v44, %v6077_v8  ;;  %v2544_v22 = vrot.slane %v2530_v36, %v6077_v8  ;;  %v5087_v44 = vpack.c.bf16 %v2637_v14, %v2629_v60  ;;  %v5151_v36 = vpack.c.bf16 %v2639_v46, %v2631_v43  ;;  %v2695_v60 = vld [vmem:[#allocation13 + $0xb30] sm:$0xff]  ;;  %v2712_v43 = vld [vmem:[#allocation13 + $0xbb8] sm:$0xff] }
 0x578   :  { %v2703_v14 = vld [vmem:[#allocation13 + $0xb70] sm:$0xff]  ;;  %v2720_v46 = vld [vmem:[#allocation13 + $0xbf8] sm:$0xff] }
 0x579   :  { %v2545_v42 = vcombine.low %v2537_v15, %v2544_v22  ;;  %v2645_v15 = vld [vmem:[#allocation13 + $0x9a0] sm:$0xff] }
 0x57a   :  { %v2653_v22 = vld [vmem:[#allocation13 + $0x9e0] sm:$0xff] }
 0x57b   :  { %v2547_v6 = vadd.f32 %v2545_v42, %v1701_v23  ;;  %v2605_v23 = vld [vmem:[#allocation13 + $0x860] sm:$0xff]  ;;  %v5089_v42 = vpack.c.bf16 %v2654_v20, %v2646_v16  ;;  %v5103_v16 = vpack.c.bf16 %v2701_v38, %v2693_v30  ;;  %v5167_v20 = vpack.c.bf16 %v2703_v14, %v2695_v60  ;;  %v2759_v30 = vld [vmem:[#allocation13 + $0xd30] sm:$0xff]  ;;  %v2776_v60 = vld [vmem:[#allocation13 + $0xdb8] sm:$0xff] }
 0x57c   :  { %v5079_v31 = vpack.c.bf16 %v2605_v23, %v2597_v37  ;;  %v2671_v37 = vld [vmem:[#allocation13 + $0xa70] sm:$0xff]  ;;  %v2678_v23 = vld [vmem:[#allocation13 + $0xaa8] sm:$0xff]  ;;  %v2784_v14 = vld [vmem:[#allocation13 + $0xdf8] sm:$0xff] }
 0x57d   :  { %v4275_v47 = vmul.f32 -1.442695, %v2547_v6  ;;  %v2575_v45 = vrot.slane %v2547_v6, 6  ;;  %v5153_v6 = vpack.c.bf16 %v2656_v32, %v2648_v51  ;;  %v2709_v51 = vld [vmem:[#allocation13 + $0xba0] sm:$0xff]  ;;  %v2767_v38 = vld [vmem:[#allocation13 + $0xd70] sm:$0xff] }
 0x57e   :  { %v2717_v32 = vld [vmem:[#allocation13 + $0xbe0] sm:$0xff] }
 0x57f   :  { %5547 = vpow2.f32 %v4275_v47  ;;  %v2647_v47 = vld [vmem:[#allocation13 + $0x9b0] sm:$0xff] }
 0x589   :  { %v5548_v58 = vpop.eup %5547 }
 0x58a   :  { %v2571_v7 = vadd.f32 1.0, %v5548_v58  ;;  %v2655_v58 = vld [vmem:[#allocation13 + $0x9f0] sm:$0xff] }
 0x58c   :  { %5549 = vrcp.f32 %v2571_v7  ;;  %v2662_v7 = vld [vmem:[#allocation13 + $0xa28] sm:$0xff] }
 0x58d   :  { %5551 = vtanh.f32 %v2575_v45  ;;  %v2670_v45 = vld [vmem:[#allocation13 + $0xa68] sm:$0xff] }
 0x596   :  { %v5550_v2 = vpop.eup %5549 }
 0x597   :  { %v2579_v3 = vrot.slane %v5550_v2, 2  ;;  %v5552_v63 = vpop.eup %5551  ;;  %v2585_v39 = vrot.slane %v5550_v2, 4 }
 0x598   :  { %v2582_v4 = vmul.f32 %v5552_v63, %v5550_v2  ;;  %v2664_v2 = vld [vmem:[#allocation13 + $0xa38] sm:$0xff]  ;;  %v5091_v63 = vpack.c.bf16 %v2653_v22, %v2645_v15  ;;  %v2711_v15 = vld [vmem:[#allocation13 + $0xbb0] sm:$0xff] }
 0x599   :  { %v2581_v19 = vmul.f32 %v2579_v3, %v6524_v61  ;;  %v2672_v3 = vld [vmem:[#allocation13 + $0xa78] sm:$0xff]  ;;  %v2719_v22 = vld [vmem:[#allocation13 + $0xbf0] sm:$0xff] }
 0x59b   :  { %v2583_v55 = vadd.f32 %v2582_v4, %v2581_v19  ;;  %v5155_v19 = vpack.c.bf16 %v2655_v58, %v2647_v47  ;;  %v2661_v4 = vld [vmem:[#allocation13 + $0xa20] sm:$0xff]  ;;  %v2728_v47 = vld [vmem:[#allocation13 + $0xc38] sm:$0xff] }
 0x59c   :  { %v2736_v58 = vld [vmem:[#allocation13 + $0xc78] sm:$0xff] }
 0x59d   :  { %5553 = vtanh.f32 %v2583_v55  ;;  %v2669_v55 = vld [vmem:[#allocation13 + $0xa60] sm:$0xff] }
 0x59e   :  { %v5095_v25 = vpack.c.bf16 %v2669_v55, %v2661_v4  ;;  %v2727_v4 = vld [vmem:[#allocation13 + $0xc30] sm:$0xff] }
 0x59f   :  { %v2735_v55 = vld [vmem:[#allocation13 + $0xc70] sm:$0xff] }
 0x5a7   :  { %v5554_v50 = vpop.eup %5553 }
 0x5a8   :  { %v2587_v18 = vmul.f32 %v5554_v50, %v2585_v39  ;;  %v5093_v39 = vpack.c.bf16 %v2670_v45, %v2662_v7  ;;  %v5157_v50 = vpack.c.bf16 %v2672_v3, %v2664_v2  ;;  %v5107_v7 = vpack.c.bf16 %v2717_v32, %v2709_v51  ;;  %v2725_v2 = vld [vmem:[#allocation13 + $0xc20] sm:$0xff]  ;;  %v2775_v51 = vld [vmem:[#allocation13 + $0xdb0] sm:$0xff] }
 0x5a9   :  { %v5171_v45 = vpack.c.bf16 %v2719_v22, %v2711_v15  ;;  %v2733_v3 = vld [vmem:[#allocation13 + $0xc60] sm:$0xff]  ;;  %v2783_v32 = vld [vmem:[#allocation13 + $0xdf0] sm:$0xff]  ;;  %v2792_v15 = vld [vmem:[#allocation13 + $0xe38] sm:$0xff] }
 0x5aa   :  { %2589 = vst [vmem:[#allocation2 + $0x2] sm:$0x3] %v2587_v18  ;;  %v2663_v18 = vld [vmem:[#allocation13 + $0xa30] sm:$0xff]  ;;  %v2800_v22 = vld [vmem:[#allocation13 + $0xe78] sm:$0xff] }
 0x5ab   :  { %v5159_v17 = vpack.c.bf16 %v2671_v37, %v2663_v18  ;;  %v2744_v18 = vld [vmem:[#allocation13 + $0xcb8] sm:$0xff] }
 0x5ac   :  { %v2752_v37 = vld [vmem:[#allocation13 + $0xcf8] sm:$0xff] }
 0x5b1   :  { %v6543_v21 = vld.sshfl [vmem:[#allocation2] sm:$0xff pattern:$0x76325410] }
 0x5b2   :  { %v2902_v61 = vcombine.high %v6543_v21, %v6543_v21 }
 0x5b4   :  { %2969 = vmatprep.mubr.f32.mxu0 %v2902_v61  ;;  %3040 = vmatprep.mubr.f32.mxu1 %v2902_v61 }
 0x5b5   :  { %2970 = vmatmul.mubr.f32.vlgmr.msra.gmra.mrb[14].mxu0 %v6543_v21  ;;  %3041 = vmatmul.mubr.f32.vlgmr.msra.gmra.mrb[16].mxu1 %v6543_v21 }
 0x5b6   :  { %5080 = vmatpush1.bf16.msra.mxu0 %v5079_v31  ;;  %5144 = vmatpush1.bf16.msra.mxu1 %v5143_v0  ;;  %v5097_v31 = vpack.c.bf16 %v2686_v29, %v2678_v23  ;;  %v5161_v0 = vpack.c.bf16 %v2688_v40, %v2680_v26  ;;  %v5111_v23 = vpack.c.bf16 %v2733_v3, %v2725_v2  ;;  %v2741_v26 = vld [vmem:[#allocation13 + $0xca0] sm:$0xff]  ;;  %v2791_v2 = vld [vmem:[#allocation13 + $0xe30] sm:$0xff] }
 0x5b7   :  { %3111 = vmatprep.mubr.f32.mxu0 %v2902_v61  ;;  %3182 = vmatprep.mubr.f32.mxu1 %v2902_v61  ;;  %v2685_v61 = vld [vmem:[#allocation13 + $0xae0] sm:$0xff]  ;;  %v5175_v29 = vpack.c.bf16 %v2735_v55, %v2727_v4  ;;  %v2799_v3 = vld [vmem:[#allocation13 + $0xe70] sm:$0xff]  ;;  %v2808_v4 = vld [vmem:[#allocation13 + $0xeb8] sm:$0xff] }
 0x5b8   :  { %5082 = vmatprep.subr.bf16.mxu0 %v5081_v1  ;;  %5146 = vmatprep.subr.bf16.mxu1 %v5145_v56  ;;  %v2704_v1 = vld [vmem:[#allocation13 + $0xb78] sm:$0xff]  ;;  %v5099_v56 = vpack.c.bf16 %v2685_v61, %v2677_v28  ;;  %v2749_v40 = vld [vmem:[#allocation13 + $0xce0] sm:$0xff]  ;;  %v2743_v28 = vld [vmem:[#allocation13 + $0xcb0] sm:$0xff] }
 0x5b9   :  { %v2751_v61 = vld [vmem:[#allocation13 + $0xcf0] sm:$0xff]  ;;  %v2816_v55 = vld [vmem:[#allocation13 + $0xef8] sm:$0xff] }
 0x5ba   :  { %5084 = vmatpush1.bf16.msra.mxu0 %v5083_v13  ;;  %5148 = vmatpush1.bf16.msra.mxu1 %v5147_v9  ;;  %v5101_v13 = vpack.c.bf16 %v2702_v24, %v2694_v48  ;;  %v5165_v9 = vpack.c.bf16 %v2704_v1, %v2696_v34  ;;  %v5115_v48 = vpack.c.bf16 %v2749_v40, %v2741_v26  ;;  %v2757_v34 = vld [vmem:[#allocation13 + $0xd20] sm:$0xff]  ;;  %v2807_v26 = vld [vmem:[#allocation13 + $0xeb0] sm:$0xff] }
 0x5bb   :  { %5086 = vmatprep.subr.bf16.mxu0 %v5085_v12  ;;  %5150 = vmatprep.subr.bf16.mxu1 %v5149_v5  ;;  %v2710_v12 = vld [vmem:[#allocation13 + $0xba8] sm:$0xff]  ;;  %v5179_v24 = vpack.c.bf16 %v2751_v61, %v2743_v28  ;;  %v2765_v1 = vld [vmem:[#allocation13 + $0xd60] sm:$0xff]  ;;  %v2815_v40 = vld [vmem:[#allocation13 + $0xef0] sm:$0xff] }
 0x5bc   :  { %v2718_v5 = vld [vmem:[#allocation13 + $0xbe8] sm:$0xff]  ;;  %v2824_v28 = vld [vmem:[#allocation13 + $0xf38] sm:$0xff] }
 0x5bd   :  { %v2832_v61 = vld [vmem:[#allocation13 + $0xf78] sm:$0xff] }
 0x5be   :  { %5088 = vmatpush1.bf16.msra.mxu0 %v5087_v44  ;;  %5152 = vmatpush1.bf16.msra.mxu1 %v5151_v36  ;;  %v5105_v44 = vpack.c.bf16 %v2718_v5, %v2710_v12  ;;  %v5169_v36 = vpack.c.bf16 %v2720_v46, %v2712_v43  ;;  %v5119_v12 = vpack.c.bf16 %v2765_v1, %v2757_v34  ;;  %v2773_v43 = vld [vmem:[#allocation13 + $0xda0] sm:$0xff]  ;;  %v2823_v34 = vld [vmem:[#allocation13 + $0xf30] sm:$0xff] }
 0x5bf   :  { %5090 = vmatprep.subr.bf16.mxu0 %v5089_v42  ;;  %5154 = vmatprep.subr.bf16.mxu1 %v5153_v6  ;;  %v2726_v42 = vld [vmem:[#allocation13 + $0xc28] sm:$0xff]  ;;  %v5183_v5 = vpack.c.bf16 %v2767_v38, %v2759_v30  ;;  %v2781_v46 = vld [vmem:[#allocation13 + $0xde0] sm:$0xff]  ;;  %v2831_v1 = vld [vmem:[#allocation13 + $0xf70] sm:$0xff] }
 0x5c0   :  { %v2734_v6 = vld [vmem:[#allocation13 + $0xc68] sm:$0xff]  ;;  %v2840_v30 = vld [vmem:[#allocation13 + $0xfb8] sm:$0xff] }
 0x5c1   :  { %v2848_v38 = vld [vmem:[#allocation13 + $0xff8] sm:$0xff] }
 0x5c2   :  { %5092 = vmatpush1.bf16.msra.mxu0 %v5091_v63  ;;  %5156 = vmatpush1.bf16.msra.mxu1 %v5155_v19  ;;  %v5109_v63 = vpack.c.bf16 %v2734_v6, %v2726_v42  ;;  %v5173_v19 = vpack.c.bf16 %v2736_v58, %v2728_v47  ;;  %v5123_v42 = vpack.c.bf16 %v2781_v46, %v2773_v43  ;;  %v2789_v47 = vld [vmem:[#allocation13 + $0xe20] sm:$0xff]  ;;  %v2839_v43 = vld [vmem:[#allocation13 + $0xfb0] sm:$0xff] }
 0x5c3   :  { %5094 = vmatprep.subr.bf16.mxu0 %v5093_v39  ;;  %5158 = vmatprep.subr.bf16.mxu1 %v5157_v50  ;;  %v2742_v39 = vld [vmem:[#allocation13 + $0xca8] sm:$0xff]  ;;  %v5187_v6 = vpack.c.bf16 %v2783_v32, %v2775_v51  ;;  %v2797_v58 = vld [vmem:[#allocation13 + $0xe60] sm:$0xff]  ;;  %v2847_v46 = vld [vmem:[#allocation13 + $0xff0] sm:$0xff] }
 0x5c4   :  { %v2750_v50 = vld [vmem:[#allocation13 + $0xce8] sm:$0xff]  ;;  %v3245_v51 = vld [vmem:[#allocation15 + $0x418] sm:$0xff] }
 0x5c5   :  { %v3249_v32 = vld [vmem:[#allocation15 + $0x438] sm:$0xff] }
 0x5c6   :  { %5096 = vmatpush1.bf16.msra.mxu0 %v5095_v25  ;;  %5160 = vmatpush1.bf16.msra.mxu1 %v5159_v17  ;;  %v5113_v25 = vpack.c.bf16 %v2750_v50, %v2742_v39  ;;  %v5177_v17 = vpack.c.bf16 %v2752_v37, %v2744_v18  ;;  %v5127_v39 = vpack.c.bf16 %v2797_v58, %v2789_v47  ;;  %v2805_v18 = vld [vmem:[#allocation13 + $0xea0] sm:$0xff]  ;;  %v3244_v47 = vld [vmem:[#allocation15 + $0x410] sm:$0xff] }
 0x5c7   :  { %5098 = vmatprep.subr.bf16.mxu0 %v5097_v31  ;;  %5162 = vmatprep.subr.bf16.mxu1 %v5161_v0  ;;  %v2758_v31 = vld [vmem:[#allocation13 + $0xd28] sm:$0xff]  ;;  %v5191_v50 = vpack.c.bf16 %v2799_v3, %v2791_v2  ;;  %v2813_v37 = vld [vmem:[#allocation13 + $0xee0] sm:$0xff]  ;;  %v3248_v58 = vld [vmem:[#allocation15 + $0x430] sm:$0xff] }
 0x5c8   :  { %v2766_v0 = vld [vmem:[#allocation13 + $0xd68] sm:$0xff]  ;;  %v3253_v2 = vld [vmem:[#allocation15 + $0x458] sm:$0xff] }
 0x5c9   :  { %v3257_v3 = vld [vmem:[#allocation15 + $0x478] sm:$0xff] }
 0x5ca   :  { %5100 = vmatpush1.bf16.msra.mxu0 %v5099_v56  ;;  %5164 = vmatpush1.bf16.msra.mxu1 %v5163_v10  ;;  %v5117_v56 = vpack.c.bf16 %v2766_v0, %v2758_v31  ;;  %v5181_v10 = vpack.c.bf16 %v2768_v33, %v2760_v11  ;;  %v5131_v31 = vpack.c.bf16 %v2813_v37, %v2805_v18  ;;  %v2821_v11 = vld [vmem:[#allocation13 + $0xf20] sm:$0xff]  ;;  %v3252_v18 = vld [vmem:[#allocation15 + $0x450] sm:$0xff] }
 0x5cb   :  { %5102 = vmatprep.subr.bf16.mxu0 %v5101_v13  ;;  %5166 = vmatprep.subr.bf16.mxu1 %v5165_v9  ;;  %v2774_v13 = vld [vmem:[#allocation13 + $0xda8] sm:$0xff]  ;;  %v5195_v0 = vpack.c.bf16 %v2815_v40, %v2807_v26  ;;  %v2829_v33 = vld [vmem:[#allocation13 + $0xf60] sm:$0xff]  ;;  %v3256_v37 = vld [vmem:[#allocation15 + $0x470] sm:$0xff] }
 0x5cc   :  { %v2782_v9 = vld [vmem:[#allocation13 + $0xde8] sm:$0xff]  ;;  %v3261_v26 = vld [vmem:[#allocation15 + $0x498] sm:$0xff] }
 0x5cd   :  { %v3265_v40 = vld [vmem:[#allocation15 + $0x4b8] sm:$0xff] }
 0x5ce   :  { %5104 = vmatpush1.bf16.msra.mxu0 %v5103_v16  ;;  %5168 = vmatpush1.bf16.msra.mxu1 %v5167_v20  ;;  %v5121_v16 = vpack.c.bf16 %v2782_v9, %v2774_v13  ;;  %v5185_v20 = vpack.c.bf16 %v2784_v14, %v2776_v60  ;;  %v5135_v13 = vpack.c.bf16 %v2829_v33, %v2821_v11  ;;  %v2837_v60 = vld [vmem:[#allocation13 + $0xfa0] sm:$0xff]  ;;  %v3260_v11 = vld [vmem:[#allocation15 + $0x490] sm:$0xff]  ;;  %v3267_v33 = vld [vmem:[#allocation15 + $0x4c8] sm:$0xff] }
 0x5cf   :  { %5106 = vmatprep.subr.bf16.mxu0 %v5105_v44  ;;  %5170 = vmatprep.subr.bf16.mxu1 %v5169_v36  ;;  %v2790_v44 = vld [vmem:[#allocation13 + $0xe28] sm:$0xff]  ;;  %v5199_v9 = vpack.c.bf16 %v2831_v1, %v2823_v34  ;;  %v2845_v14 = vld [vmem:[#allocation13 + $0xfe0] sm:$0xff]  ;;  %v3273_v34 = vld [vmem:[#allocation15 + $0x4f8] sm:$0xff] }
 0x5d0   :  { %v2798_v36 = vld [vmem:[#allocation13 + $0xe68] sm:$0xff] }
 0x5d2   :  { %5108 = vmatpush1.bf16.msra.mxu0 %v5107_v7  ;;  %5172 = vmatpush1.bf16.msra.mxu1 %v5171_v45  ;;  %v5125_v7 = vpack.c.bf16 %v2798_v36, %v2790_v44  ;;  %v5189_v45 = vpack.c.bf16 %v2800_v22, %v2792_v15  ;;  %v5139_v44 = vpack.c.bf16 %v2845_v14, %v2837_v60  ;;  %v3242_v15 = vld [vmem:[#allocation15 + $0x400] sm:$0xff]  ;;  %v3272_v60 = vld [vmem:[#allocation15 + $0x4f0] sm:$0xff]  ;;  %v3275_v14 = vld [vmem:[#allocation15 + $0x508] sm:$0xff] }
 0x5d3   :  { %5110 = vmatprep.subr.bf16.mxu0 %v5109_v63  ;;  %5174 = vmatprep.subr.bf16.mxu1 %v5173_v19  ;;  %v2806_v63 = vld [vmem:[#allocation13 + $0xea8] sm:$0xff]  ;;  %v5203_v36 = vpack.c.bf16 %v2847_v46, %v2839_v43  ;;  %v3246_v22 = vld [vmem:[#allocation15 + $0x420] sm:$0xff]  ;;  %v3281_v43 = vld [vmem:[#allocation15 + $0x538] sm:$0xff] }
 0x5d4   :  { %v2814_v19 = vld [vmem:[#allocation13 + $0xee8] sm:$0xff] }
 0x5d6   :  { %5112 = vmatpush1.bf16.msra.mxu0 %v5111_v23  ;;  %5176 = vmatpush1.bf16.msra.mxu1 %v5175_v29  ;;  %v5129_v23 = vpack.c.bf16 %v2814_v19, %v2806_v63  ;;  %v5193_v29 = vpack.c.bf16 %v2816_v55, %v2808_v4  ;;  %v6553_v63 = vpack.c.bf16 %v3246_v22, %v3242_v15  ;;  %v3250_v4 = vld [vmem:[#allocation15 + $0x440] sm:$0xff]  ;;  %v3280_v15 = vld [vmem:[#allocation15 + $0x530] sm:$0xff]  ;;  %v3283_v22 = vld [vmem:[#allocation15 + $0x548] sm:$0xff] }
 0x5d7   :  { %5114 = vmatprep.subr.bf16.mxu0 %v5113_v25  ;;  %5178 = vmatprep.subr.bf16.mxu1 %v5177_v17  ;;  %v2822_v25 = vld [vmem:[#allocation13 + $0xf28] sm:$0xff]  ;;  %v6555_v19 = vpack.c.bf16 %v3248_v58, %v3244_v47  ;;  %v3254_v55 = vld [vmem:[#allocation15 + $0x460] sm:$0xff]  ;;  %v3285_v58 = vld [vmem:[#allocation15 + $0x558] sm:$0xff] }
 0x5d8   :  { %v2830_v17 = vld [vmem:[#allocation13 + $0xf68] sm:$0xff] }
 0x5d9   :  { %v3287_v47 = vld [vmem:[#allocation15 + $0x568] sm:$0xff] }
 0x5da   :  { %5116 = vmatpush1.bf16.msra.mxu0 %v5115_v48  ;;  %5180 = vmatpush1.bf16.msra.mxu1 %v5179_v24  ;;  %v5133_v48 = vpack.c.bf16 %v2830_v17, %v2822_v25  ;;  %v5197_v24 = vpack.c.bf16 %v2832_v61, %v2824_v28  ;;  %v6567_v25 = vpack.c.bf16 %v3254_v55, %v3250_v4  ;;  %v3258_v28 = vld [vmem:[#allocation15 + $0x480] sm:$0xff] }
 0x5db   :  { %5118 = vmatprep.subr.bf16.mxu0 %v5117_v56  ;;  %5182 = vmatprep.subr.bf16.mxu1 %v5181_v10  ;;  %v2838_v56 = vld [vmem:[#allocation13 + $0xfa8] sm:$0xff]  ;;  %v6569_v17 = vpack.c.bf16 %v3256_v37, %v3252_v18  ;;  %v3262_v61 = vld [vmem:[#allocation15 + $0x4a0] sm:$0xff]  ;;  %v6611_v55 = vpack.c.bf16 %v3287_v47, %v3283_v22  ;;  %v3284_v37 = vld [vmem:[#allocation15 + $0x550] sm:$0xff] }
 0x5dc   :  { %v2846_v10 = vld [vmem:[#allocation13 + $0xfe8] sm:$0xff]  ;;  %v6581_v1 = vpack.c.bf16 %v3262_v61, %v3258_v28  ;;  %v3286_v4 = vld [vmem:[#allocation15 + $0x560] sm:$0xff]  ;;  %v3297_v28 = vld [vmem:[#allocation15 + $0x5b8] sm:$0xff] }
 0x5dd   :  { %v3304_v22 = vld [vmem:[#allocation15 + $0x5f0] sm:$0xff]  ;;  %v3308_v47 = vld [vmem:[#allocation15 + $0x608] sm:$0xff] }
 0x5de   :  { %5120 = vmatpush1.bf16.msra.mxu0 %v5119_v12  ;;  %5184 = vmatpush1.bf16.msra.mxu1 %v5183_v5  ;;  %v5137_v12 = vpack.c.bf16 %v2846_v10, %v2838_v56  ;;  %v5201_v5 = vpack.c.bf16 %v2848_v38, %v2840_v30  ;;  %v3266_v10 = vld [vmem:[#allocation15 + $0x4c0] sm:$0xff] }
 0x5df   :  { %5122 = vmatprep.subr.bf16.mxu0 %v5121_v16  ;;  %5186 = vmatprep.subr.bf16.mxu1 %v5185_v20  ;;  %v3243_v16 = vld [vmem:[#allocation15 + $0x408] sm:$0xff]  ;;  %v3270_v30 = vld [vmem:[#allocation15 + $0x4e0] sm:$0xff] }
 0x5e0   :  { %v3247_v20 = vld [vmem:[#allocation15 + $0x428] sm:$0xff]  ;;  %v6593_v46 = vpack.c.bf16 %v3270_v30, %v3266_v10  ;;  %v3296_v10 = vld [vmem:[#allocation15 + $0x5b0] sm:$0xff] }
 0x5e1   :  { %v3299_v30 = vld [vmem:[#allocation15 + $0x5c8] sm:$0xff] }
 0x5e2   :  { %5124 = vmatpush1.bf16.msra.mxu0 %v5123_v42  ;;  %5188 = vmatpush1.bf16.msra.mxu1 %v5187_v6  ;;  %v6549_v42 = vpack.c.bf16 %v3247_v20, %v3243_v16  ;;  %v6551_v6 = vpack.c.bf16 %v3249_v32, %v3245_v51  ;;  %v3274_v20 = vld [vmem:[#allocation15 + $0x500] sm:$0xff] }
 0x5e3   :  { %5126 = vmatprep.subr.bf16.mxu0 %v5125_v7  ;;  %5190 = vmatprep.subr.bf16.mxu1 %v5189_v45  ;;  %v3251_v7 = vld [vmem:[#allocation15 + $0x448] sm:$0xff]  ;;  %v3278_v51 = vld [vmem:[#allocation15 + $0x520] sm:$0xff] }
 0x5e4   :  { %v3255_v45 = vld [vmem:[#allocation15 + $0x468] sm:$0xff] }
 0x5e6   :  { %5128 = vmatpush1.bf16.msra.mxu0 %v5127_v39  ;;  %5192 = vmatpush1.bf16.msra.mxu1 %v5191_v50  ;;  %v6559_v39 = vpack.c.bf16 %v3255_v45, %v3251_v7  ;;  %v6561_v50 = vpack.c.bf16 %v3257_v3, %v3253_v2  ;;  %v3289_v7 = vld [vmem:[#allocation15 + $0x578] sm:$0xff]  ;;  %v6605_v45 = vpack.c.bf16 %v3278_v51, %v3274_v20  ;;  %v3282_v3 = vld [vmem:[#allocation15 + $0x540] sm:$0xff] }
 0x5e7   :  { %5130 = vmatprep.subr.bf16.mxu0 %v5129_v23  ;;  %5194 = vmatprep.subr.bf16.mxu1 %v5193_v29  ;;  %v3259_v23 = vld [vmem:[#allocation15 + $0x488] sm:$0xff]  ;;  %v6613_v18 = vpack.c.bf16 %v3289_v7, %v3285_v58  ;;  %v6617_v61 = vpack.c.bf16 %v3286_v4, %v3282_v3  ;;  %v3302_v20 = vld [vmem:[#allocation15 + $0x5e0] sm:$0xff]  ;;  %v3310_v7 = vld [vmem:[#allocation15 + $0x618] sm:$0xff] }
 0x5e8   :  { %v3263_v29 = vld [vmem:[#allocation15 + $0x4a8] sm:$0xff]  ;;  %v3314_v3 = vld [vmem:[#allocation15 + $0x638] sm:$0xff] }
 0x5e9   :  { %v3312_v58 = vld [vmem:[#allocation15 + $0x628] sm:$0xff] }
 0x5ea   :  { %5132 = vmatpush1.bf16.msra.mxu0 %v5131_v31  ;;  %5196 = vmatpush1.bf16.msra.mxu1 %v5195_v0  ;;  %v6573_v31 = vpack.c.bf16 %v3263_v29, %v3259_v23  ;;  %v6575_v0 = vpack.c.bf16 %v3265_v40, %v3261_v26  ;;  %v3288_v23 = vld [vmem:[#allocation15 + $0x570] sm:$0xff]  ;;  %v3291_v29 = vld [vmem:[#allocation15 + $0x588] sm:$0xff]  ;;  %v3293_v40 = vld [vmem:[#allocation15 + $0x598] sm:$0xff] }
 0x5eb   :  { %5134 = vmatprep.subr.bf16.mxu0 %v5133_v48  ;;  %5198 = vmatprep.subr.bf16.mxu1 %v5197_v24  ;;  %v3271_v48 = vld [vmem:[#allocation15 + $0x4e8] sm:$0xff]  ;;  %v3269_v24 = vld [vmem:[#allocation15 + $0x4d8] sm:$0xff] }
 0x5ec   :  { %v6587_v38 = vpack.c.bf16 %v3271_v48, %v3267_v33  ;;  %v3295_v26 = vld [vmem:[#allocation15 + $0x5a8] sm:$0xff]  ;;  %v3294_v33 = vld [vmem:[#allocation15 + $0x5a0] sm:$0xff] }
 0x5ed   :  { %v6623_v48 = vpack.c.bf16 %v3295_v26, %v3291_v29  ;;  %v3311_v29 = vld [vmem:[#allocation15 + $0x620] sm:$0xff]  ;;  %v6647_v26 = vpack.c.bf16 %v3312_v58, %v3308_v47  ;;  %v3321_v47 = vld [vmem:[#allocation15 + $0x670] sm:$0xff]  ;;  %v3324_v58 = vld [vmem:[#allocation15 + $0x688] sm:$0xff] }
 0x5ee   :  { %5136 = vmatpush1.bf16.msra.mxu0 %v5135_v13  ;;  %5200 = vmatpush1.bf16.msra.mxu1 %v5199_v9  ;;  %v6589_v13 = vpack.c.bf16 %v3273_v34, %v3269_v24  ;;  %v3268_v9 = vld [vmem:[#allocation15 + $0x4d0] sm:$0xff]  ;;  %v6625_v24 = vpack.c.bf16 %v3297_v28, %v3293_v40  ;;  %v6649_v40 = vpack.c.bf16 %v3314_v3, %v3310_v7  ;;  %v3328_v7 = vld [vmem:[#allocation15 + $0x6a8] sm:$0xff]  ;;  %v3326_v3 = vld [vmem:[#allocation15 + $0x698] sm:$0xff] }
 0x5ef   :  { %5138 = vmatprep.subr.bf16.mxu0 %v5137_v12  ;;  %5202 = vmatprep.subr.bf16.mxu1 %v5201_v5  ;;  %v3279_v12 = vld [vmem:[#allocation15 + $0x528] sm:$0xff]  ;;  %v3277_v5 = vld [vmem:[#allocation15 + $0x518] sm:$0xff]  ;;  %v6595_v16 = vpack.c.bf16 %v3272_v60, %v3268_v9  ;;  %v3292_v34 = vld [vmem:[#allocation15 + $0x590] sm:$0xff] }
 0x5f0   :  { %v6599_v32 = vpack.c.bf16 %v3279_v12, %v3275_v14  ;;  %v3303_v9 = vld [vmem:[#allocation15 + $0x5e8] sm:$0xff]  ;;  %v3301_v60 = vld [vmem:[#allocation15 + $0x5d8] sm:$0xff]  ;;  %v3309_v28 = vld [vmem:[#allocation15 + $0x610] sm:$0xff] }
 0x5f1   :  { %v3305_v14 = vld [vmem:[#allocation15 + $0x5f8] sm:$0xff]  ;;  %v6635_v51 = vpack.c.bf16 %v3303_v9, %v3299_v30 }
 0x5f2   :  { %5140 = vmatpush1.bf16.msra.mxu0 %v5139_v44  ;;  %5204 = vmatpush1.bf16.msra.mxu1 %v5203_v36  ;;  %v6601_v44 = vpack.c.bf16 %v3281_v43, %v3277_v5  ;;  %v3276_v36 = vld [vmem:[#allocation15 + $0x510] sm:$0xff]  ;;  %v6631_v5 = vpack.c.bf16 %v3296_v10, %v3292_v34  ;;  %v3298_v43 = vld [vmem:[#allocation15 + $0x5c0] sm:$0xff]  ;;  %v3320_v34 = vld [vmem:[#allocation15 + $0x668] sm:$0xff] }
 0x5f3   :  { %5206 = vmatprep.subr.bf16.mxu0 %v6549_v42  ;;  %5238 = vmatprep.subr.bf16.mxu1 %v6551_v6  ;;  %v6607_v2 = vpack.c.bf16 %v3280_v15, %v3276_v36  ;;  %v6637_v36 = vpack.c.bf16 %v3305_v14, %v3301_v60  ;;  %v3300_v15 = vld [vmem:[#allocation15 + $0x5d0] sm:$0xff]  ;;  %v6641_v4 = vpack.c.bf16 %v3302_v20, %v3298_v43  ;;  %v3318_v10 = vld [vmem:[#allocation15 + $0x658] sm:$0xff]  ;;  %v3315_v14 = vld [vmem:[#allocation15 + $0x640] sm:$0xff] }
 0x5f4   :  { %v3322_v30 = vld [vmem:[#allocation15 + $0x678] sm:$0xff]  ;;  %v3319_v43 = vld [vmem:[#allocation15 + $0x660] sm:$0xff] }
 0x5f5   :  { %3112 = vmatmul.mubr.f32.vlgmr.msra.gmra.mrb[16].mxu0 %v6543_v21  ;;  %3183 = vmatmul.mubr.f32.vlgmr.msra.gmra.mrb[18].mxu1 %v6543_v21  ;;  %v3264_v21 = vld [vmem:[#allocation15 + $0x4b0] sm:$0xff] }
 0x5f6   :  { %5208 = vmatpush1.bf16.msra.mxu0 %v6553_v63  ;;  %5240 = vmatpush1.bf16.msra.mxu1 %v6555_v19  ;;  %v6583_v56 = vpack.c.bf16 %v3264_v21, %v3260_v11  ;;  %v6619_v11 = vpack.c.bf16 %v3288_v23, %v3284_v37  ;;  %v3290_v21 = vld [vmem:[#allocation15 + $0x580] sm:$0xff]  ;;  %v6643_v37 = vpack.c.bf16 %v3304_v22, %v3300_v15  ;;  %v3317_v22 = vld [vmem:[#allocation15 + $0x650] sm:$0xff] }
 0x5f7   :  { %5210 = vmatprep.subr.bf16.mxu0 %v6559_v39  ;;  %5242 = vmatprep.subr.bf16.mxu1 %v6561_v50  ;;  %v6629_v12 = vpack.c.bf16 %v3294_v33, %v3290_v21  ;;  %v3307_v23 = vld [vmem:[#allocation15 + $0x600] sm:$0xff]  ;;  %v3313_v21 = vld [vmem:[#allocation15 + $0x630] sm:$0xff]  ;;  %v3316_v33 = vld [vmem:[#allocation15 + $0x648] sm:$0xff]  ;;  %v6661_v15 = vpack.c.bf16 %v3322_v30, %v3318_v10 }
 0x5f8   :  { %3436 = vmatprep.mubr.f32.mxu0 %v6939_v57  ;;  %3507 = vmatprep.mubr.f32.mxu1 %v6939_v57  ;;  %v6653_v9 = vpack.c.bf16 %v3311_v29, %v3307_v23  ;;  %v6655_v60 = vpack.c.bf16 %v3313_v21, %v3309_v28  ;;  %v6659_v20 = vpack.c.bf16 %v3320_v34, %v3316_v33  ;;  %v3323_v28 = vld [vmem:[#allocation15 + $0x680] sm:$0xff]  ;;  %v3325_v10 = vld [vmem:[#allocation15 + $0x690] sm:$0xff] }
 0x5f9   :  { %6947 = vst [vmem:[#allocation29_spill] sm:$0xff] %v6661_v15  ;;  %v6667_v23 = vpack.c.bf16 %v3319_v43, %v3315_v14  ;;  %v6669_v29 = vpack.c.bf16 %v3321_v47, %v3317_v22  ;;  %v3327_v21 = vld [vmem:[#allocation15 + $0x6a0] sm:$0xff]  ;;  %v6673_v33 = vpack.c.bf16 %v3328_v7, %v3324_v58  ;;  %v6675_v34 = vpack.c.bf16 %v3330_v35, %v3326_v3  ;;  %v3329_v30 = vld [vmem:[#allocation15 + $0x6b0] sm:$0xff] }
 0x5fa   :  { %5212 = vmatpush1.bf16.msra.mxu0 %v6567_v25  ;;  %5244 = vmatpush1.bf16.msra.mxu1 %v6569_v17  ;;  %v6681_v14 = vpack.c.bf16 %v3327_v21, %v3323_v28  ;;  %v6683_v43 = vpack.c.bf16 %v3329_v30, %v3325_v10  ;;  %v3331_v35 = vld [vmem:[#allocation15 + $0x6c0] sm:$0xff]  ;;  %v6687_v47 = vpack.c.bf16 %v3336_v27, %v3332_v41  ;;  %v3333_v7 = vld [vmem:[#allocation15 + $0x6d0] sm:$0xff] }
 0x5fb   :  { %5214 = vmatprep.subr.bf16.mxu0 %v6573_v31  ;;  %5246 = vmatprep.subr.bf16.mxu1 %v6575_v0  ;;  %6948 = vst [vmem:[#allocation30_spill] sm:$0xff] %v6667_v23  ;;  %6949 = vst [vmem:[#allocation31_spill] sm:$0xff] %v6669_v29  ;;  %v3335_v22 = vld [vmem:[#allocation15 + $0x6e0] sm:$0xff]  ;;  %v6689_v58 = vpack.c.bf16 %v3338_v62, %v3334_v49  ;;  %v3337_v3 = vld [vmem:[#allocation15 + $0x6f0] sm:$0xff] }
 0x5fc   :  { %6950 = vst [vmem:[#allocation32_spill] sm:$0xff] %v6673_v33  ;;  %6951 = vst [vmem:[#allocation33_spill] sm:$0xff] %v6675_v34  ;;  %v6693_v28 = vpack.c.bf16 %v3335_v22, %v3331_v35  ;;  %v6695_v21 = vpack.c.bf16 %v3337_v3, %v3333_v7  ;;  %v3339_v10 = vld [vmem:[#allocation15 + $0x700] sm:$0xff]  ;;  %v3341_v62 = vld [vmem:[#allocation15 + $0x710] sm:$0xff] }
 0x5fd   :  { %6952 = vst [vmem:[#allocation34_spill] sm:$0xff] %v6681_v14  ;;  %6953 = vst [vmem:[#allocation35_spill] sm:$0xff] %v6683_v43  ;;  %v3343_v30 = vld [vmem:[#allocation15 + $0x720] sm:$0xff]  ;;  %v3345_v27 = vld [vmem:[#allocation15 + $0x730] sm:$0xff] }
 0x5fe   :  { %5216 = vmatpush1.bf16.msra.mxu0 %v6581_v1  ;;  %5248 = vmatpush1.bf16.msra.mxu1 %v6583_v56  ;;  %6954 = vst [vmem:[#allocation36_spill] sm:$0xff] %v6687_v47  ;;  %6955 = vst [vmem:[#allocation37_spill] sm:$0xff] %v6689_v58  ;;  %v6705_v35 = vpack.c.bf16 %v3343_v30, %v3339_v10  ;;  %v6707_v22 = vpack.c.bf16 %v3345_v27, %v3341_v62  ;;  %v3347_v7 = vld [vmem:[#allocation15 + $0x740] sm:$0xff] }
 0x5ff   :  { %5218 = vmatprep.subr.bf16.mxu0 %v6587_v38  ;;  %5250 = vmatprep.subr.bf16.mxu1 %v6589_v13  ;;  %6956 = vst [vmem:[#allocation38_spill] sm:$0xff] %v6693_v28  ;;  %6957 = vst [vmem:[#allocation39_spill] sm:$0xff] %v6695_v21  ;;  %v3351_v3 = vld [vmem:[#allocation15 + $0x760] sm:$0xff] }
 0x600   :  { %6960 = vst [vmem:[#allocation42_spill] sm:$0xff] %v6705_v35  ;;  %6961 = vst [vmem:[#allocation43_spill] sm:$0xff] %v6707_v22  ;;  %v6717_v10 = vpack.c.bf16 %v3351_v3, %v3347_v7  ;;  %v3355_v62 = vld [vmem:[#allocation15 + $0x780] sm:$0xff] }
 0x601   :  { %v3359_v27 = vld [vmem:[#allocation15 + $0x7a0] sm:$0xff] }
 0x602   :  { %5220 = vmatpush1.bf16.msra.mxu0 %v6593_v46  ;;  %5252 = vmatpush1.bf16.msra.mxu1 %v6595_v16  ;;  %v6729_v7 = vpack.c.bf16 %v3359_v27, %v3355_v62 }
 0x603   :  { %5222 = vmatprep.subr.bf16.mxu0 %v6599_v32  ;;  %5254 = vmatprep.subr.bf16.mxu1 %v6601_v44 }
 0x606   :  { %5224 = vmatpush1.bf16.msra.mxu0 %v6605_v45  ;;  %5256 = vmatpush1.bf16.msra.mxu1 %v6607_v2 }
 0x607   :  { %5226 = vmatprep.subr.bf16.mxu0 %v6611_v55  ;;  %5258 = vmatprep.subr.bf16.mxu1 %v6613_v18 }
 0x60a   :  { %5228 = vmatpush1.bf16.msra.mxu0 %v6617_v61  ;;  %5260 = vmatpush1.bf16.msra.mxu1 %v6619_v11 }
 0x60b   :  { %5230 = vmatprep.subr.bf16.mxu0 %v6623_v48  ;;  %5262 = vmatprep.subr.bf16.mxu1 %v6625_v24 }
 0x60e   :  { %5232 = vmatpush1.bf16.msra.mxu0 %v6629_v12  ;;  %5264 = vmatpush1.bf16.msra.mxu1 %v6631_v5 }
 0x60f   :  { %5234 = vmatprep.subr.bf16.mxu0 %v6635_v51  ;;  %5266 = vmatprep.subr.bf16.mxu1 %v6637_v36 }
 0x612   :  { %5236 = vmatpush1.bf16.msra.mxu0 %v6641_v4  ;;  %5268 = vmatpush1.bf16.msra.mxu1 %v6643_v37 }
 0x613   :  { %5270 = vmatprep.subr.bf16.mxu0 %v6647_v26  ;;  %5302 = vmatprep.subr.bf16.mxu1 %v6649_v40 }
 0x615   :  { %3437 = vmatmul.mubr.f32.vlgmr.msra.gmra.mrb[18].mxu0 %v6939_v57  ;;  %3508 = vmatmul.mubr.f32.vlgmr.msra.gmra.mrb[20].mxu1 %v6939_v57 }
 0x616   :  { %5272 = vmatpush1.bf16.msra.mxu0 %v6653_v9  ;;  %5304 = vmatpush1.bf16.msra.mxu1 %v6655_v60 }
 0x617   :  { %5274 = vmatprep.subr.bf16.mxu0 %v6659_v20  ;;  %5306 = vmatprep.subr.bf16.mxu1 %v6661_v15  ;;  %v3342_v15 = vld [vmem:[#allocation15 + $0x718] sm:$0xff] }
 0x618   :  { %3602 = vmatprep.mubr.f32.mxu0 %v6939_v57  ;;  %3673 = vmatprep.mubr.f32.mxu1 %v6939_v57 }
 0x61a   :  { %5276 = vmatpush1.bf16.msra.mxu0 %v6667_v23  ;;  %5308 = vmatpush1.bf16.msra.mxu1 %v6669_v29  ;;  %v3344_v23 = vld [vmem:[#allocation15 + $0x728] sm:$0xff]  ;;  %v3346_v29 = vld [vmem:[#allocation15 + $0x738] sm:$0xff] }
 0x61b   :  { %5278 = vmatprep.subr.bf16.mxu0 %v6673_v33  ;;  %5310 = vmatprep.subr.bf16.mxu1 %v6675_v34  ;;  %v6699_v49 = vpack.c.bf16 %v3344_v23, %v3340_v52  ;;  %v6701_v41 = vpack.c.bf16 %v3346_v29, %v3342_v15  ;;  %v3348_v34 = vld [vmem:[#allocation15 + $0x748] sm:$0xff]  ;;  %v3350_v33 = vld [vmem:[#allocation15 + $0x758] sm:$0xff]  ;;  %v3349_v23 = vld [vmem:[#allocation15 + $0x750] sm:$0xff] }
 0x61c   :  { %v3353_v29 = vld [vmem:[#allocation15 + $0x770] sm:$0xff] }
 0x61d   :  { %6958 = vst [vmem:[#allocation40_spill] sm:$0xff] %v6699_v49  ;;  %6959 = vst [vmem:[#allocation41_spill] sm:$0xff] %v6701_v41  ;;  %v6719_v30 = vpack.c.bf16 %v3353_v29, %v3349_v23  ;;  %v3363_v23 = vld [vmem:[#allocation15 + $0x7c0] sm:$0xff]  ;;  %v3369_v29 = vld [vmem:[#allocation15 + $0x7f0] sm:$0xff] }
 0x61e   :  { %5280 = vmatpush1.bf16.msra.mxu0 %v6681_v14  ;;  %5312 = vmatpush1.bf16.msra.mxu1 %v6683_v43  ;;  %v3352_v14 = vld [vmem:[#allocation15 + $0x768] sm:$0xff]  ;;  %v3354_v43 = vld [vmem:[#allocation15 + $0x778] sm:$0xff] }
 0x61f   :  { %5282 = vmatprep.subr.bf16.mxu0 %v6687_v47  ;;  %5314 = vmatprep.subr.bf16.mxu1 %v6689_v58  ;;  %v6711_v52 = vpack.c.bf16 %v3352_v14, %v3348_v34  ;;  %v6713_v15 = vpack.c.bf16 %v3354_v43, %v3350_v33  ;;  %v3356_v58 = vld [vmem:[#allocation15 + $0x788] sm:$0xff]  ;;  %v3358_v47 = vld [vmem:[#allocation15 + $0x798] sm:$0xff]  ;;  %v3357_v14 = vld [vmem:[#allocation15 + $0x790] sm:$0xff] }
 0x620   :  { %v3361_v43 = vld [vmem:[#allocation15 + $0x7b0] sm:$0xff] }
 0x621   :  { %v6731_v3 = vpack.c.bf16 %v3361_v43, %v3357_v14 }
 0x622   :  { %5284 = vmatpush1.bf16.msra.mxu0 %v6693_v28  ;;  %5316 = vmatpush1.bf16.msra.mxu1 %v6695_v21  ;;  %v3360_v28 = vld [vmem:[#allocation15 + $0x7a8] sm:$0xff]  ;;  %v3362_v21 = vld [vmem:[#allocation15 + $0x7b8] sm:$0xff] }
 0x623   :  { %5286 = vmatprep.subr.bf16.mxu0 %v6699_v49  ;;  %5318 = vmatprep.subr.bf16.mxu1 %v6701_v41  ;;  %v6723_v33 = vpack.c.bf16 %v3360_v28, %v3356_v58  ;;  %v6725_v34 = vpack.c.bf16 %v3362_v21, %v3358_v47  ;;  %v3364_v41 = vld [vmem:[#allocation15 + $0x7c8] sm:$0xff]  ;;  %v3366_v49 = vld [vmem:[#allocation15 + $0x7d8] sm:$0xff]  ;;  %v3367_v28 = vld [vmem:[#allocation15 + $0x7e0] sm:$0xff] }
 0x624   :  { %v3365_v21 = vld [vmem:[#allocation15 + $0x7d0] sm:$0xff]  ;;  %v6741_v62 = vpack.c.bf16 %v3367_v28, %v3363_v23 }
 0x625   :  { %v6743_v27 = vpack.c.bf16 %v3369_v29, %v3365_v21 }
 0x626   :  { %5288 = vmatpush1.bf16.msra.mxu0 %v6705_v35  ;;  %5320 = vmatpush1.bf16.msra.mxu1 %v6707_v22  ;;  %v3368_v35 = vld [vmem:[#allocation15 + $0x7e8] sm:$0xff]  ;;  %v3370_v22 = vld [vmem:[#allocation15 + $0x7f8] sm:$0xff] }
 0x627   :  { %5290 = vmatprep.subr.bf16.mxu0 %v6711_v52  ;;  %5322 = vmatprep.subr.bf16.mxu1 %v6713_v15  ;;  %v6735_v47 = vpack.c.bf16 %v3368_v35, %v3364_v41  ;;  %v6737_v58 = vpack.c.bf16 %v3370_v22, %v3366_v49 }
 0x62a   :  { %5292 = vmatpush1.bf16.msra.mxu0 %v6717_v10  ;;  %5324 = vmatpush1.bf16.msra.mxu1 %v6719_v30 }
 0x62b   :  { %5294 = vmatprep.subr.bf16.mxu0 %v6723_v33  ;;  %5326 = vmatprep.subr.bf16.mxu1 %v6725_v34 }
 0x62e   :  { %5296 = vmatpush1.bf16.msra.mxu0 %v6729_v7  ;;  %5328 = vmatpush1.bf16.msra.mxu1 %v6731_v3 }
 0x62f   :  { %5298 = vmatprep.subr.bf16.mxu0 %v6735_v47  ;;  %5330 = vmatprep.subr.bf16.mxu1 %v6737_v58 }
 0x632   :  { %5300 = vmatpush1.bf16.msra.mxu0 %v6741_v62  ;;  %5332 = vmatpush1.bf16.msra.mxu1 %v6743_v27 }
 0x633   :  { %5334 = vmatprep.subr.bf16.mxu0 %v6549_v42  ;;  %5366 = vmatprep.subr.bf16.mxu1 %v6551_v6  ;;  %v2850_v42 = vld [vmem:[#allocation16 + $0x8] sm:$0xff] }
 0x634   :  { %v2855_v6 = vrot.slane %v2850_v42, %v6150_v54 }
 0x635   :  { %3603 = vmatmul.mubr.f32.vlgmr.msra.gmra.mrb[20].mxu0 %v6939_v57  ;;  %3674 = vmatmul.mubr.f32.vlgmr.msra.gmra.mrb[22].mxu1 %v6939_v57 }
 0x636   :  { %5336 = vmatpush1.bf16.msra.mxu0 %v6553_v63  ;;  %5368 = vmatpush1.bf16.msra.mxu1 %v6555_v19  ;;  %v6962_v63 = vsub.s32 2, %v6074_v59 }
 0x637   :  { %5338 = vmatprep.subr.bf16.mxu0 %v6559_v39  ;;  %5370 = vmatprep.subr.bf16.mxu1 %v6561_v50  ;;  %v2859_v39 = vrot.slane %v2850_v42, %v6153_v53  ;;  %v6963_v50 = vsub.s32 3, %v6074_v59 }
 0x638   :  { %3810 = vmatprep.mubr.f32.mxu0 %v6939_v57  ;;  %3881 = vmatprep.mubr.f32.mxu1 %v6939_v57  ;;  %v2863_v19 = vrot.slane %v2850_v42, %v6962_v63 }
 0x63a   :  { %5340 = vmatpush1.bf16.msra.mxu0 %v6567_v25  ;;  %5372 = vmatpush1.bf16.msra.mxu1 %v6569_v17  ;;  %v2867_v25 = vrot.slane %v2850_v42, %v6963_v50 }
 0x63b   :  { %5342 = vmatprep.subr.bf16.mxu0 %v6573_v31  ;;  %5374 = vmatprep.subr.bf16.mxu1 %v6575_v0 }
 0x63e   :  { %5344 = vmatpush1.bf16.msra.mxu0 %v6581_v1  ;;  %5376 = vmatpush1.bf16.msra.mxu1 %v6583_v56 }
 0x63f   :  { %5346 = vmatprep.subr.bf16.mxu0 %v6587_v38  ;;  %5378 = vmatprep.subr.bf16.mxu1 %v6589_v13 }
 0x642   :  { %5348 = vmatpush1.bf16.msra.mxu0 %v6593_v46  ;;  %5380 = vmatpush1.bf16.msra.mxu1 %v6595_v16 }
 0x643   :  { %5350 = vmatprep.subr.bf16.mxu0 %v6599_v32  ;;  %5382 = vmatprep.subr.bf16.mxu1 %v6601_v44 }
 0x646   :  { %5352 = vmatpush1.bf16.msra.mxu0 %v6605_v45  ;;  %5384 = vmatpush1.bf16.msra.mxu1 %v6607_v2  ;;  %v6964_v2 = vsub.s32 4, %v6074_v59 }
 0x647   :  { %5354 = vmatprep.subr.bf16.mxu0 %v6611_v55  ;;  %5386 = vmatprep.subr.bf16.mxu1 %v6613_v18  ;;  %v6965_v18 = vsub.s32 6, %v6074_v59 }
 0x648   :  { %v2871_v55 = vrot.slane %v2850_v42, %v6964_v2 }
 0x64a   :  { %5356 = vmatpush1.bf16.msra.mxu0 %v6617_v61  ;;  %5388 = vmatpush1.bf16.msra.mxu1 %v6619_v11  ;;  %v2879_v61 = vrot.slane %v2850_v42, %v6965_v18  ;;  %v6966_v11 = vsub.s32 5, %v6074_v59 }
 0x64b   :  { %5358 = vmatprep.subr.bf16.mxu0 %v6623_v48  ;;  %5390 = vmatprep.subr.bf16.mxu1 %v6625_v24  ;;  %v6967_v24 = vsub.s32 7, %v6074_v59 }
 0x64c   :  { %v2875_v48 = vrot.slane %v2850_v42, %v6966_v11 }
 0x64e   :  { %5360 = vmatpush1.bf16.msra.mxu0 %v6629_v12  ;;  %5392 = vmatpush1.bf16.msra.mxu1 %v6631_v5  ;;  %v2883_v12 = vrot.slane %v2850_v42, %v6967_v24 }
 0x64f   :  { %5362 = vmatprep.subr.bf16.mxu0 %v6635_v51  ;;  %5394 = vmatprep.subr.bf16.mxu1 %v6637_v36 }
 0x652   :  { %5364 = vmatpush1.bf16.msra.mxu0 %v6641_v4  ;;  %5396 = vmatpush1.bf16.msra.mxu1 %v6643_v37 }
 0x653   :  { %5398 = vmatprep.subr.bf16.mxu0 %v6647_v26  ;;  %5430 = vmatprep.subr.bf16.mxu1 %v6649_v40 }
 0x688   :  { %v2971_v17 = vpop.f32.mrb[14].mxu0  ;;  %v3042_v31 = vpop.f32.mrb[16].mxu1 }
 0x689   :  { %v2972_v0 = vadd.f32 %v2971_v17, %v2855_v6  ;;  %v3043_v1 = vadd.f32 %v3042_v31, %v2863_v19  ;;  %v2973_v56 = vpop.f32.mrb[15].mxu0  ;;  %v3044_v38 = vpop.f32.mrb[17].mxu1 }
 0x68a   :  { %v2974_v13 = vadd.f32 %v2973_v56, %v2859_v39  ;;  %v3045_v46 = vadd.f32 %v3044_v38, %v2867_v25 }
 0x68c   :  { %v3197_v16 = vcombine.low %v2972_v0, %v2974_v13  ;;  %v3198_v32 = vcombine.low %v3043_v1, %v3045_v46 }
 0x68e   :  { %v6794_v54 = vrot.slane %v3197_v16, %v6077_v8  ;;  %v6797_v44 = vrot.slane %v3198_v32, %v6077_v8 }
 0x690   :  { %v3213_v53 = vcombine.low %v6794_v54, %v6797_v44  ;;  %v3214_v45 = vcombine.high %v6794_v54, %v6797_v44 }
 0x6c8   :  { %v3113_v5 = vpop.f32.mrb[16].mxu0  ;;  %v3184_v51 = vpop.f32.mrb[18].mxu1 }
 0x6c9   :  { %v3114_v36 = vadd.f32 %v3113_v5, %v2871_v55  ;;  %v3185_v4 = vadd.f32 %v3184_v51, %v2879_v61  ;;  %v3115_v37 = vpop.f32.mrb[17].mxu0  ;;  %v3186_v26 = vpop.f32.mrb[19].mxu1 }
 0x6ca   :  { %v3116_v40 = vadd.f32 %v3115_v37, %v2875_v48  ;;  %v3187_v49 = vadd.f32 %v3186_v26, %v2883_v12 }
 0x6cc   :  { %v3215_v41 = vcombine.low %v3114_v36, %v3116_v40  ;;  %v3216_v35 = vcombine.low %v3185_v4, %v3187_v49  ;;  %v6968_v49 = vld [vmem:[#allocation29_spill] sm:$0xff] }
 0x6ce   :  { %v6812_v22 = vrot.slane %v3215_v41, %v6077_v8  ;;  %v6815_v14 = vrot.slane %v3216_v35, %v6077_v8  ;;  %v6969_v41 = vld [vmem:[#allocation30_spill] sm:$0xff]  ;;  %v6970_v35 = vld [vmem:[#allocation31_spill] sm:$0xff] }
 0x6d0   :  { %v3231_v59 = vcombine.low %v6812_v22, %v6815_v14  ;;  %v3232_v43 = vcombine.high %v6812_v22, %v6815_v14 }
 0x6e8   :  { %v3438_v23 = vpop.f32.mrb[18].mxu0  ;;  %v3509_v28 = vpop.f32.mrb[20].mxu1 }
 0x6e9   :  { %v3440_v21 = vpop.f32.mrb[19].mxu0  ;;  %v3511_v29 = vpop.f32.mrb[21].mxu1 }
 0x6ea   :  { %v3518_v42 = vcombine.low %v3438_v23, %v3440_v21  ;;  %v3519_v6 = vcombine.low %v3509_v28, %v3511_v29  ;;  %v6972_v23 = vld [vmem:[#allocation33_spill] sm:$0xff]  ;;  %v6977_v29 = vld [vmem:[#allocation38_spill] sm:$0xff] }
 0x6eb   :  { %v6976_v28 = vld [vmem:[#allocation37_spill] sm:$0xff] }
 0x6ec   :  { %v3526_v63 = vrot.slane %v3518_v42, %v6077_v8  ;;  %v3533_v19 = vrot.slane %v3519_v6, %v6077_v8 }
 0x6ee   :  { %v3534_v39 = vcombine.low %v3526_v63, %v3533_v19  ;;  %v6979_v63 = vld [vmem:[#allocation40_spill] sm:$0xff]  ;;  %v6980_v19 = vld [vmem:[#allocation41_spill] sm:$0xff] }
 0x6f0   :  { %v3536_v50 = vadd.f32 %v3534_v39, %v3213_v53 }
 0x6f2   :  { %v4276_v25 = vmul.f32 -1.442695, %v3536_v50  ;;  %v3710_v0 = vrot.slane %v3536_v50, 6 }
 0x6f4   :  { %5555 = vpow2.f32 %v4276_v25  ;;  %v6981_v25 = vld [vmem:[#allocation42_spill] sm:$0xff] }
 0x6fe   :  { %v5556_v17 = vpop.eup %5555 }
 0x6ff   :  { %v3706_v31 = vadd.f32 1.0, %v5556_v17  ;;  %v6982_v17 = vld [vmem:[#allocation43_spill] sm:$0xff] }
 0x701   :  { %5557 = vrcp.f32 %v3706_v31 }
 0x702   :  { %5559 = vtanh.f32 %v3710_v0  ;;  %v4121_v0 = vld [vmem:[#allocation18 + $0x8] sm:$0xff] }
 0x708   :  { %v3604_v1 = vpop.f32.mrb[20].mxu0  ;;  %v3675_v56 = vpop.f32.mrb[22].mxu1 }
 0x709   :  { %v3606_v38 = vpop.f32.mrb[21].mxu0  ;;  %v3677_v13 = vpop.f32.mrb[23].mxu1 }
 0x70a   :  { %v3684_v46 = vcombine.low %v3604_v1, %v3606_v38  ;;  %v3685_v16 = vcombine.low %v3675_v56, %v3677_v13  ;;  %v4122_v56 = vld [vmem:[#allocation18 + $0x10] sm:$0xff]  ;;  %v4123_v38 = vld [vmem:[#allocation18 + $0x18] sm:$0xff]  ;;  %v4141_v13 = vld [vmem:[#allocation18 + $0xa8] sm:$0xff] }
 0x70b   :  { %v5558_v32 = vpop.eup %5557 }
 0x70c   :  { %v3692_v2 = vrot.slane %v3684_v46, %v6077_v8  ;;  %v3699_v55 = vrot.slane %v3685_v16, %v6077_v8  ;;  %v3714_v18 = vrot.slane %v5558_v32, 2  ;;  %v5560_v53 = vpop.eup %5559  ;;  %v3720_v51 = vrot.slane %v5558_v32, 4  ;;  %v4124_v16 = vld [vmem:[#allocation18 + $0x20] sm:$0xff] }
 0x70d   :  { %v3717_v61 = vmul.f32 %v5560_v53, %v5558_v32  ;;  %v4125_v32 = vld [vmem:[#allocation18 + $0x28] sm:$0xff] }
 0x70e   :  { %v3700_v11 = vcombine.low %v3692_v2, %v3699_v55  ;;  %v3716_v48 = vmul.f32 0.0, %v3714_v18  ;;  %v5471_v2 = vpack.c.bf16 %v4125_v32, %v4124_v16  ;;  %v4142_v55 = vld [vmem:[#allocation18 + $0xb0] sm:$0xff]  ;;  %v4143_v18 = vld [vmem:[#allocation18 + $0xb8] sm:$0xff] }
 0x70f   :  { %v5473_v53 = vpack.c.bf16 %v4143_v18, %v4142_v55 }
 0x710   :  { %v3702_v24 = vadd.f32 %v3700_v11, %v3232_v43  ;;  %v6825_v12 = vadd.f32 %v3717_v61, %v3716_v48  ;;  %v6971_v43 = vld [vmem:[#allocation32_spill] sm:$0xff]  ;;  %v4126_v61 = vld [vmem:[#allocation18 + $0x30] sm:$0xff] }
 0x711   :  { %v4127_v11 = vld [vmem:[#allocation18 + $0x38] sm:$0xff] }
 0x712   :  { %v4277_v5 = vmul.f32 -1.442695, %v3702_v24  ;;  %5561 = vtanh.f32 %v6825_v12  ;;  %v3730_v40 = vrot.slane %v3702_v24, 6  ;;  %v5475_v48 = vpack.c.bf16 %v4127_v11, %v4126_v61  ;;  %v4144_v24 = vld [vmem:[#allocation18 + $0xc0] sm:$0xff] }
 0x714   :  { %5563 = vpow2.f32 %v4277_v5  ;;  %v4145_v5 = vld [vmem:[#allocation18 + $0xc8] sm:$0xff] }
 0x71c   :  { %v5562_v36 = vpop.eup %5561 }
 0x71d   :  { %v3722_v4 = vmul.f32 %v5562_v36, %v3720_v51  ;;  %v5477_v51 = vpack.c.bf16 %v4145_v5, %v4144_v24  ;;  %v4128_v36 = vld [vmem:[#allocation18 + $0x40] sm:$0xff] }
 0x71e   :  { %v5564_v37 = vpop.eup %5563 }
 0x71f   :  { %v3726_v26 = vadd.f32 1.0, %v5564_v37  ;;  %3743 = vst [vmem:[#allocation2] sm:$0x3] %v3722_v4  ;;  %3811 = vmatmul.mubr.f32.vlgmr.msra.gmra.mrb[22].mxu0 %v3722_v4  ;;  %3882 = vmatmul.mubr.f32.vlgmr.msra.gmra.mrb[24].mxu1 %v3722_v4  ;;  %v4129_v4 = vld [vmem:[#allocation18 + $0x48] sm:$0xff] }
 0x720   :  { %5400 = vmatpush1.bf16.msra.mxu0 %v6653_v9  ;;  %5432 = vmatpush1.bf16.msra.mxu1 %v6655_v60  ;;  %v6973_v9 = vld [vmem:[#allocation34_spill] sm:$0xff]  ;;  %v6974_v60 = vld [vmem:[#allocation35_spill] sm:$0xff]  ;;  %v5479_v37 = vpack.c.bf16 %v4129_v4, %v4128_v36 }
 0x721   :  { %5565 = vrcp.f32 %v3726_v26  ;;  %5402 = vmatprep.subr.bf16.mxu0 %v6659_v20  ;;  %5434 = vmatprep.subr.bf16.mxu1 %v6968_v49  ;;  %v6975_v20 = vld [vmem:[#allocation36_spill] sm:$0xff]  ;;  %v4146_v26 = vld [vmem:[#allocation18 + $0xd0] sm:$0xff] }
 0x722   :  { %3976 = vmatprep.mubr.f32.mxu0 %v6939_v57  ;;  %4047 = vmatprep.mubr.f32.mxu1 %v6939_v57  ;;  %5567 = vtanh.f32 %v3730_v40  ;;  %v6978_v57 = vld [vmem:[#allocation39_spill] sm:$0xff] }
 0x723   :  { %v4147_v40 = vld [vmem:[#allocation18 + $0xd8] sm:$0xff] }
 0x724   :  { %5404 = vmatpush1.bf16.msra.mxu0 %v6969_v41  ;;  %5436 = vmatpush1.bf16.msra.mxu1 %v6970_v35  ;;  %v5481_v49 = vpack.c.bf16 %v4147_v40, %v4146_v26  ;;  %v4130_v41 = vld [vmem:[#allocation18 + $0x50] sm:$0xff]  ;;  %v4131_v35 = vld [vmem:[#allocation18 + $0x58] sm:$0xff] }
 0x725   :  { %5406 = vmatprep.subr.bf16.mxu0 %v6971_v43  ;;  %5438 = vmatprep.subr.bf16.mxu1 %v6972_v23  ;;  %v5483_v43 = vpack.c.bf16 %v4131_v35, %v4130_v41  ;;  %v4148_v23 = vld [vmem:[#allocation18 + $0xe0] sm:$0xff] }
 0x726   :  { %v4280_v35 = vld [vmem:[#allocation19] ss:$0 sm:$0xff] }
 0x728   :  { %5408 = vmatpush1.bf16.msra.mxu0 %v6973_v9  ;;  %5440 = vmatpush1.bf16.msra.mxu1 %v6974_v60  ;;  %v4149_v9 = vld [vmem:[#allocation18 + $0xe8] sm:$0xff] }
 0x729   :  { %5410 = vmatprep.subr.bf16.mxu0 %v6975_v20  ;;  %5442 = vmatprep.subr.bf16.mxu1 %v6976_v28  ;;  %v5485_v60 = vpack.c.bf16 %v4149_v9, %v4148_v23  ;;  %v4132_v20 = vld [vmem:[#allocation18 + $0x60] sm:$0xff]  ;;  %v4133_v28 = vld [vmem:[#allocation18 + $0x68] sm:$0xff] }
 0x72b   :  { %v5566_v21 = vpop.eup %5565 }
 0x72c   :  { %5412 = vmatpush1.bf16.msra.mxu0 %v6977_v29  ;;  %5444 = vmatpush1.bf16.msra.mxu1 %v6978_v57  ;;  %v3734_v42 = vrot.slane %v5566_v21, 2  ;;  %v5568_v6 = vpop.eup %5567  ;;  %v4150_v29 = vld [vmem:[#allocation18 + $0xf0] sm:$0xff]  ;;  %v4151_v57 = vld [vmem:[#allocation18 + $0xf8] sm:$0xff] }
 0x72d   :  { %5414 = vmatprep.subr.bf16.mxu0 %v6979_v63  ;;  %5446 = vmatprep.subr.bf16.mxu1 %v6980_v19  ;;  %v3737_v39 = vmul.f32 %v5568_v6, %v5566_v21  ;;  %v4134_v6 = vld [vmem:[#allocation18 + $0x70] sm:$0xff]  ;;  %v4135_v63 = vld [vmem:[#allocation18 + $0x78] sm:$0xff] }
 0x72e   :  { %v3736_v50 = vmul.f32 0.0, %v3734_v42  ;;  %v5489_v42 = vpack.c.bf16 %v4151_v57, %v4150_v29  ;;  %v5491_v19 = vpack.c.bf16 %v4135_v63, %v4134_v6 }
 0x730   :  { %5416 = vmatpush1.bf16.msra.mxu0 %v6981_v25  ;;  %5448 = vmatpush1.bf16.msra.mxu1 %v6982_v17  ;;  %v6848_v31 = vadd.f32 %v3737_v39, %v3736_v50 }
 0x731   :  { %5418 = vmatprep.subr.bf16.mxu0 %v6711_v52  ;;  %5450 = vmatprep.subr.bf16.mxu1 %v6713_v15  ;;  %v3740_v52 = vrot.slane %v5566_v21, 4  ;;  %v5487_v21 = vpack.c.bf16 %v4133_v28, %v4132_v20 }
 0x732   :  { %5569 = vtanh.f32 %v6848_v31 }
 0x734   :  { %5420 = vmatpush1.bf16.msra.mxu0 %v6717_v10  ;;  %5452 = vmatpush1.bf16.msra.mxu1 %v6719_v30  ;;  %v4136_v30 = vld [vmem:[#allocation18 + $0x80] sm:$0xff] }
 0x735   :  { %5422 = vmatprep.subr.bf16.mxu0 %v6723_v33  ;;  %5454 = vmatprep.subr.bf16.mxu1 %v6725_v34  ;;  %v4137_v33 = vld [vmem:[#allocation18 + $0x88] sm:$0xff] }
 0x736   :  { %v5461_v34 = vpack.c.bf16 %v4137_v33, %v4136_v30 }
 0x738   :  { %5424 = vmatpush1.bf16.msra.mxu0 %v6729_v7  ;;  %5456 = vmatpush1.bf16.msra.mxu1 %v6731_v3  ;;  %v4120_v7 = vld [vmem:[#allocation18] sm:$0xff] }
 0x739   :  { %5426 = vmatprep.subr.bf16.mxu0 %v6735_v47  ;;  %5458 = vmatprep.subr.bf16.mxu1 %v6737_v58  ;;  %v5463_v3 = vpack.c.bf16 %v4121_v0, %v4120_v7  ;;  %v4138_v47 = vld [vmem:[#allocation18 + $0x90] sm:$0xff]  ;;  %v4139_v58 = vld [vmem:[#allocation18 + $0x98] sm:$0xff] }
 0x73a   :  { %v5465_v1 = vpack.c.bf16 %v4139_v58, %v4138_v47 }
 0x73c   :  { %v5570_v15 = vpop.eup %5569  ;;  %5428 = vmatpush1.bf16.msra.mxu0 %v6741_v62  ;;  %5460 = vmatpush1.bf16.msra.mxu1 %v6743_v27  ;;  %v5467_v62 = vpack.c.bf16 %v4123_v38, %v4122_v56  ;;  %v4140_v27 = vld [vmem:[#allocation18 + $0xa0] sm:$0xff] }
 0x73d   :  { %v3742_v10 = vmul.f32 %v5570_v15, %v3740_v52  ;;  %5462 = vmatprep.subr.bf16.mxu0 %v5461_v34  ;;  %v5469_v46 = vpack.c.bf16 %v4141_v13, %v4140_v27 }
 0x73f   :  { %3744 = vst [vmem:[#allocation2 + $0x6] sm:$0x3] %v3742_v10  ;;  %3977 = vmatmul.mubr.f32.vlgmr.msra.gmra.mrb[24].mxu0 %v3742_v10  ;;  %4048 = vmatmul.mubr.f32.vlgmr.msra.gmra.mrb[26].mxu1 %v3742_v10 }
 0x740   :  { %5464 = vmatpush3.bf16.msra.mxu0 %v5463_v3 }
 0x741   :  { %5466 = vmatprep.subr.bf16.mxu0 %v5465_v1 }
 0x744   :  { %5468 = vmatpush3.bf16.msra.mxu0 %v5467_v62 }
 0x745   :  { %5470 = vmatprep.subr.bf16.mxu0 %v5469_v46 }
 0x748   :  { %5472 = vmatpush3.bf16.msra.mxu0 %v5471_v2 }
 0x749   :  { %5474 = vmatprep.subr.bf16.mxu0 %v5473_v53 }
 0x74c   :  { %5476 = vmatpush3.bf16.msra.mxu0 %v5475_v48 }
 0x74d   :  { %5478 = vmatprep.subr.bf16.mxu0 %v5477_v51 }
 0x750   :  { %5480 = vmatpush3.bf16.msra.mxu0 %v5479_v37 }
 0x751   :  { %5482 = vmatprep.subr.bf16.mxu0 %v5481_v49 }
 0x754   :  { %5484 = vmatpush3.bf16.msra.mxu0 %v5483_v43 }
 0x755   :  { %5486 = vmatprep.subr.bf16.mxu0 %v5485_v60 }
 0x758   :  { %5488 = vmatpush3.bf16.msra.mxu0 %v5487_v21 }
 0x759   :  { %5490 = vmatprep.subr.bf16.mxu0 %v5489_v42 }
 0x75c   :  { %5492 = vmatpush3.bf16.msra.mxu0 %v5491_v19 }
 0x7f2   :  { %v3812_v39 = vpop.f32.mrb[22].mxu0  ;;  %v3883_v50 = vpop.f32.mrb[24].mxu1 }
 0x7f3   :  { %v3814_v25 = vpop.f32.mrb[23].mxu0  ;;  %v3885_v17 = vpop.f32.mrb[25].mxu1 }
 0x7f4   :  { %v3892_v52 = vcombine.low %v3812_v39, %v3814_v25  ;;  %v3893_v15 = vcombine.low %v3883_v50, %v3885_v17 }
 0x7f6   :  { %v3900_v10 = vrot.slane %v3892_v52, %v6077_v8  ;;  %v3907_v30 = vrot.slane %v3893_v15, %v6077_v8 }
 0x7f8   :  { %v3908_v33 = vcombine.low %v3900_v10, %v3907_v30 }
 0x7fa   :  { %v3910_v34 = vadd.f32 %v3908_v33, %v3214_v45 }
 0x7fc   :  { %v4278_v7 = vmul.f32 -1.442695, %v3910_v34  ;;  %v4084_v47 = vrot.slane %v3910_v34, 6 }
 0x7fe   :  { %5571 = vpow2.f32 %v4278_v7 }
 0x808   :  { %v5572_v0 = vpop.eup %5571 }
 0x809   :  { %v4080_v3 = vadd.f32 1.0, %v5572_v0 }
 0x80b   :  { %5573 = vrcp.f32 %v4080_v3 }
 0x80c   :  { %5575 = vtanh.f32 %v4084_v47 }
 0x812   :  { %v3978_v58 = vpop.f32.mrb[24].mxu0  ;;  %v4049_v1 = vpop.f32.mrb[26].mxu1 }
 0x813   :  { %v3980_v56 = vpop.f32.mrb[25].mxu0  ;;  %v4051_v38 = vpop.f32.mrb[27].mxu1 }
 0x814   :  { %v4058_v62 = vcombine.low %v3978_v58, %v3980_v56  ;;  %v4059_v27 = vcombine.low %v4049_v1, %v4051_v38 }
 0x815   :  { %v5574_v13 = vpop.eup %5573 }
 0x816   :  { %v4088_v46 = vrot.slane %v5574_v13, 2  ;;  %v4066_v16 = vrot.slane %v4058_v62, %v6077_v8  ;;  %v5576_v32 = vpop.eup %5575  ;;  %v4073_v54 = vrot.slane %v4059_v27, %v6077_v8  ;;  %v4094_v61 = vrot.slane %v5574_v13, 4 }
 0x817   :  { %v4091_v45 = vmul.f32 %v5576_v32, %v5574_v13 }
 0x818   :  { %v4090_v44 = vmul.f32 %v4088_v46, %v6825_v12  ;;  %v4074_v2 = vcombine.low %v4066_v16, %v4073_v54 }
 0x81a   :  { %v4092_v55 = vadd.f32 %v4091_v45, %v4090_v44  ;;  %v4076_v18 = vadd.f32 %v4074_v2, %v3231_v59 }
 0x81c   :  { %5577 = vtanh.f32 %v4092_v55  ;;  %v4279_v53 = vmul.f32 -1.442695, %v4076_v18  ;;  %v4104_v51 = vrot.slane %v4076_v18, 6 }
 0x81e   :  { %5579 = vpow2.f32 %v4279_v53 }
 0x826   :  { %v5578_v11 = vpop.eup %5577 }
 0x827   :  { %v4096_v48 = vmul.f32 %v5578_v11, %v4094_v61 }
 0x828   :  { %v5580_v24 = vpop.eup %5579 }
 0x829   :  { %4117 = vst [vmem:[#allocation2 + $0x4] sm:$0x3] %v4096_v48  ;;  %v4100_v5 = vadd.f32 1.0, %v5580_v24 }
 0x82b   :  { %5581 = vrcp.f32 %v4100_v5 }
 0x82c   :  { %5583 = vtanh.f32 %v4104_v51 }
 0x830   :  { %v4281_v8 = vld.sshfl [vmem:[#allocation2 + $0x4] sm:$0x33 pattern:$0x76325410] }
 0x831   :  { %v4167_v12 = vcombine.high %v4281_v8, %v4281_v8 }
 0x833   :  { %4234 = vmatprep.mubr.f32.mxu0 %v4167_v12 }
 0x834   :  { %4235 = vmatmul.mubr.f32.vlgmr.msra.gmra.mrb[26].mxu0 %v4281_v8 }
 0x835   :  { %v5582_v36 = vpop.eup %5581 }
 0x836   :  { %v4108_v4 = vrot.slane %v5582_v36, 2  ;;  %v5584_v22 = vpop.eup %5583  ;;  %v4114_v26 = vrot.slane %v5582_v36, 4 }
 0x837   :  { %v4111_v59 = vmul.f32 %v5584_v22, %v5582_v36 }
 0x838   :  { %v4110_v14 = vmul.f32 %v4108_v4, %v6848_v31 }
 0x83a   :  { %v4112_v37 = vadd.f32 %v4111_v59, %v4110_v14 }
 0x83c   :  { %5585 = vtanh.f32 %v4112_v37 }
 0x846   :  { %v5586_v40 = vpop.eup %5585 }
 0x847   :  { %v4116_v49 = vmul.f32 %v5586_v40, %v4114_v26 }
 0x849   :  { %4118 = vst [vmem:[#allocation2 + $0x2] sm:$0x3] %v4116_v49 }
 0x907   :  { %v4323_v41 = vpop.f32.mrb[26].mxu0 }
 0x908   :  { %v4324_v43 = vpop.f32.mrb[27].mxu0 }
 0x909   :  { %v4325_v23 = vadd.f32 %v4324_v43, %v4323_v41 }
 0x90b   :  { %v4237_v9 = vadd.f32 %v4325_v23, %v4280_v35 }
 0x90d   :  { %4240 = vst [vmem:[#allocation21] sm:$0x3] %v4237_v9 }
 0x90e   :  { %5819 = shalt.err (!%p5816_p0)
}
 0x90f   :  { %s5820_s11 = scalar_lea.hbm %s6897_s10, 32 }
 0x910   :  { %p5821_p1 = scmp.ne.s32.totalorder %s6897_s10, %s5820_s11  ;;  %p5824_p2 = scmp.lt.u32.totalorder %s5820_s11, %s6897_s10 }
 0x912   :  { %p5826_p3 = pnand %p5824_p2, %p5821_p1 }
 0x914   :  { %5829 = shalt.err (!%p5826_p3)
}
 0x915   :  { %4250 = dma.vmem_to_hbm [thread:$0]  %s4248_s26, 32, %s6897_s10, [#allocation6]  }
 0x916   :  { %5842 = dma.done.wait [#allocation6], 32  }
 0x917   :  { %5843 = vsyncadd [#allocation6], 4294967264 }
 0x918   :  { %4254 = vsyncpa [#allocation5], 1 }
 0x919   :  { %4255 = vsyncpa [#allocation8], 1 }
 0x91a   :  { %4256 = vsyncpa [#allocation11], 1 }
 0x91b   :  { %4257 = vsyncpa [#allocation14], 1 }
 0x91c   :  { %4258 = vsyncpa [#allocation17], 1 }
 0x91d   :  { %4259 = vsyncpa [#allocation20], 1 }
 0x91e   :  { %4260 = vsyncpa [#allocation6], 1 }

</bundles_post_ra>
